<compile_context>
chip_gen: v7x
topology: tpu7x:2x2x1
jax: 0.10.0
libtpu: 0.0.40
codegen_flags: <defaults>
</compile_context>

<pallas_src>
import functools

import jax
import jax.numpy as jnp
from jax import lax
from jax.experimental import pallas as pl
from jax.experimental.pallas import tpu as pltpu

EPS = 1e-5  # matches mean_variance_norm's calc_mean_std eps


# ------------------------------------------------------------------ helpers

def _vmem_limit_bytes():
    """Generation-aware scoped-VMEM limit: ~3/4 of physical, capped at 96 MiB.

    -> ~96 MiB on v5e/v6e (128 MiB parts), ~48 MiB on v7x (64 MiB part)."""
    cap = 64 * 1024 * 1024  # conservative fallback (v7x-sized)
    try:
        cap = int(getattr(pltpu.get_tpu_info(), "vmem_capacity_bytes", cap))
    except Exception:
        pass
    return max(32 * 1024 * 1024, min(cap * 3 // 4, 96 * 1024 * 1024))


def _pick_tile(n, candidates, max_full=8192):
    """Largest candidate dividing n, else the full dim (allowed by BlockSpec)."""
    for t in candidates:
        if n % t == 0:
            return t
    if n > max_full:
        raise ValueError(
            f"no tile candidate divides {n}; add a padding path for this size")
    return n


def _mvn_stats(x):
    """Per-channel mean / reciprocal-std over spatial dim for (B, N, C).

    Unbiased variance (n-1) to match torch .var(); eps inside the sqrt.
    Cheap memory-bound pre-pass kept in plain JAX (feeds kernels as (B,1,C))."""
    n = x.shape[1]
    mean = jnp.mean(x, axis=1, keepdims=True)
    var = jnp.sum((x - mean) ** 2, axis=1, keepdims=True) / max(n - 1, 1)
    rstd = lax.rsqrt(var + EPS)
    return mean, rstd


# ------------------------------------------------------------------ kernels

def _kv_proj_kernel(s_ref, mean_ref, rstd_ref, wk_ref, bk_ref, wv_ref, bv_ref,
                    k_out_ref, v_out_ref):
    """K = mvn(style) @ WkT + bk ; V = style @ WvT + bv   (per (tk, C) style tile)."""
    s = s_ref[...].astype(jnp.float32)                              # (tk, C)
    sn = ((s - mean_ref[...]) * rstd_ref[...]).astype(jnp.bfloat16)
    k = jnp.dot(sn, wk_ref[...], preferred_element_type=jnp.float32) + bk_ref[...]
    v = jnp.dot(s.astype(jnp.bfloat16), wv_ref[...],
                preferred_element_type=jnp.float32) + bv_ref[...]
    k_out_ref[...] = k.astype(k_out_ref.dtype)
    v_out_ref[...] = v.astype(v_out_ref.dtype)


def _attn_kernel(c_ref, mc_ref, rs_ref, wq_ref, bq_ref, wo_ref, bo_ref,
                 k_ref, v_ref, out_ref, *, tk):
    """Fused Q projection + attention + out_conv + residual for one (tq, C) tile.

    K/V blocks are the full (Ns, C) maps per batch (constant block index across
    q-tiles), so they are DMA'd once per batch and stay VMEM-resident; the kernel
    loops over Ns tiles with an online-softmax carry (fp32)."""
    tq, C = out_ref.shape
    Ns = k_ref.shape[0]
    nk = Ns // tk

    c = c_ref[...].astype(jnp.float32)                              # (tq, C)
    cn = ((c - mc_ref[...]) * rs_ref[...]).astype(jnp.bfloat16)
    q = (jnp.dot(cn, wq_ref[...], preferred_element_type=jnp.float32)
         + bq_ref[...]).astype(jnp.bfloat16)                        # (tq, C)

    def body(j, carry):
        m, l, acc = carry
        off = pl.multiple_of(j * tk, tk)                            # sublane-aligned
        k = k_ref[pl.ds(off, tk), :]                                # (tk, C) bf16
        v = v_ref[pl.ds(off, tk), :]
        # energy tile: (tq, C) . (tk, C)^T -> (tq, tk), bf16 operands, fp32 acc
        s = lax.dot_general(q, k, (((1,), (1,)), ((), ())),
                            preferred_element_type=jnp.float32)
        m_new = jnp.maximum(m, jnp.max(s, axis=-1, keepdims=True))
        alpha = jnp.exp(m - m_new)
        p = jnp.exp(s - m_new)
        l = alpha * l + jnp.sum(p, axis=-1, keepdims=True)
        acc = alpha * acc + jnp.dot(p.astype(jnp.bfloat16), v,
                                    preferred_element_type=jnp.float32)
        return m_new, l, acc

    m0 = jnp.full((tq, 1), -jnp.inf, jnp.float32)
    l0 = jnp.zeros((tq, 1), jnp.float32)
    a0 = jnp.zeros((tq, C), jnp.float32)
    m, l, acc = lax.fori_loop(0, nk, body, (m0, l0, a0))

    o = acc * pl.reciprocal(l, approx=False)                        # exact, EUP slot
    o = jnp.dot(o.astype(jnp.bfloat16), wo_ref[...],
                preferred_element_type=jnp.float32) + bo_ref[...]
    out_ref[...] = (o + c).astype(out_ref.dtype)


def _merge_kernel(x_ref, w_ref, b_ref, out_ref):
    """3x3 conv over one (th, W) output row tile; full 9-tap reduction in-kernel.

    x_ref:   (H+2, Wp, C) bf16 -- full reflect-padded map for this batch,
                                  VMEM-resident across row tiles (constant index)
    w_ref:   (3, 3, Cin, Cout) bf16 -- resident (constant index map)
    b_ref:   (1, C) f32
    out_ref: (th, W, C)
    """
    th, wd, c = out_ref.shape
    row0 = pl.program_id(1) * th
    acc = jnp.zeros((th * wd, c), jnp.float32)
    for ky in range(3):                                             # static unroll
        rows = x_ref[pl.ds(row0 + ky, th), :, :]                    # (th, Wp, C)
        for kx in range(3):
            # NOTE: kx offsets 1/2 are not sublane-aligned; if the Mosaic bundle
            # shows relayout copies here, restructure per the perf review
            # (full-Wp matmul + shift-accumulate, or pltpu.roll on the sublane axis).
            xs = rows[:, kx:kx + wd, :].reshape(th * wd, c)
            acc = acc + jnp.dot(xs, w_ref[ky, kx],
                                preferred_element_type=jnp.float32)
    out_ref[...] = (acc + b_ref[...]).reshape(th, wd, c).astype(out_ref.dtype)


# ------------------------------------------------------------------ wrappers

def _project_kv(style, mean_s, rstd_s, wk, bk, wv, bv, tk):
    """style: (B, Ns, C) f32 -> K, V: (B, Ns, C) bf16."""
    B, Ns, C = style.shape
    feat_spec = pl.BlockSpec((None, tk, C), lambda b, i: (b, i, 0))
    stat_spec = pl.BlockSpec((None, 1, C), lambda b, i: (b, 0, 0))
    w_spec = pl.BlockSpec((C, C), lambda b, i: (0, 0))
    b_spec = pl.BlockSpec((1, C), lambda b, i: (0, 0))
    return pl.pallas_call(
        _kv_proj_kernel,
        out_shape=(jax.ShapeDtypeStruct((B, Ns, C), jnp.bfloat16),
                   jax.ShapeDtypeStruct((B, Ns, C), jnp.bfloat16)),
        grid=(B, Ns // tk),
        in_specs=[feat_spec, stat_spec, stat_spec,
                  w_spec, b_spec, w_spec, b_spec],
        out_specs=[feat_spec, feat_spec],
        compiler_params=pltpu.CompilerParams(
            dimension_semantics=("parallel", "parallel"),
            vmem_limit_bytes=_vmem_limit_bytes()),
    )(style, mean_s, rstd_s,
      wk.astype(jnp.bfloat16), bk, wv.astype(jnp.bfloat16), bv)


def attention_block(content, style, params):
    """content: (B, Nc, C), style: (B, Ns, C) -> (B, Nc, C)  (channel-last)."""
    B, Nc, C = content.shape
    _, Ns, _ = style.shape
    wq, bq, wk, bk, wv, bv, wo, bo = params

    mean_c, rstd_c = _mvn_stats(content)
    mean_s, rstd_s = _mvn_stats(style)

    tq = _pick_tile(Nc, (256, 128, 64, 32, 16, 8))
    tk_proj = _pick_tile(Ns, (512, 256, 128, 64, 32, 16, 8))
    # inner online-softmax tile; 256 keeps the (tq, tk) fp32 intermediate small
    # enough for v5e's single vst slot / vreg budget.
    tk = _pick_tile(Ns, (256, 128, 64, 32, 16, 8))

    # TODO(synk): K/V projection could be fused into the attention kernel
    # (compute into VMEM scratch at qi==0) to drop its HBM round trip; kept
    # separate to stay within v7x's 64 MiB VMEM with double-buffered blocks.
    k, v = _project_kv(style, mean_s, rstd_s, wk, bk, wv, bv, tk_proj)

    cost = pl.CostEstimate(
        flops=int(B * (4 * Nc * C * C + 4 * Nc * Ns * C)),
        transcendentals=int(B * Nc * Ns),
        bytes_accessed=int(B * (8 * Nc * C + 4 * Ns * C) + 8 * C * C))

    c_spec = pl.BlockSpec((None, tq, C), lambda b, qi: (b, qi, 0))
    stat_spec = pl.BlockSpec((None, 1, C), lambda b, qi: (b, 0, 0))
    w_spec = pl.BlockSpec((C, C), lambda b, qi: (0, 0))
    b_spec = pl.BlockSpec((1, C), lambda b, qi: (0, 0))
    # full-extent K/V per batch: DMA'd once per batch, resident across q-tiles
    kv_spec = pl.BlockSpec((None, Ns, C), lambda b, qi: (b, 0, 0))

    return pl.pallas_call(
        functools.partial(_attn_kernel, tk=tk),
        out_shape=jax.ShapeDtypeStruct((B, Nc, C), content.dtype),
        grid=(B, Nc // tq),
        in_specs=[c_spec, stat_spec, stat_spec,
                  w_spec, b_spec, w_spec, b_spec,
                  kv_spec, kv_spec],
        out_specs=c_spec,
        compiler_params=pltpu.CompilerParams(
            dimension_semantics=("parallel", "parallel"),
            vmem_limit_bytes=_vmem_limit_bytes()),
        cost_estimate=cost,
    )(content, mean_c, rstd_c,
      wq.astype(jnp.bfloat16), bq, wo.astype(jnp.bfloat16), bo, k, v)


def merge_conv(x, w, b):
    """ReflectionPad(1) + 3x3 conv.  x: (B, H, W, C) f32; w: (3,3,Cin,Cout); b: (1,C)."""
    B, H, Wd, C = x.shape
    Wp = Wd + 2
    # single reflect-padded bf16 map (no 3x ky-shifted stack -> ~3x less HBM traffic)
    xp = jnp.pad(x, ((0, 0), (1, 1), (1, 1), (0, 0)),
                 mode="reflect").astype(jnp.bfloat16)               # (B, H+2, Wp, C)
    th = _pick_tile(H, (32, 16, 8, 4, 2, 1))

    return pl.pallas_call(
        _merge_kernel,
        out_shape=jax.ShapeDtypeStruct((B, H, Wd, C), x.dtype),
        grid=(B, H // th),
        in_specs=[
            # full padded map per batch: DMA'd once per batch, resident across row tiles
            pl.BlockSpec((None, H + 2, Wp, C), lambda b, i: (b, 0, 0, 0)),
            # full 3x3 weight, constant index map -> loaded once for the whole call
            pl.BlockSpec((3, 3, C, C), lambda b, i: (0, 0, 0, 0)),
            pl.BlockSpec((1, C), lambda b, i: (0, 0)),
        ],
        out_specs=pl.BlockSpec((None, th, Wd, C), lambda b, i: (b, i, 0, 0)),
        compiler_params=pltpu.CompilerParams(
            dimension_semantics=("parallel", "parallel"),
            vmem_limit_bytes=_vmem_limit_bytes()),
    )(xp, w.astype(jnp.bfloat16), b)


def upsample_nearest_nhwc(x, out_h, out_w):
    """torch nn.Upsample(mode='nearest'): src = floor(dst * in / out). JAX glue."""
    B, H, Wd, C = x.shape
    h_idx = (jnp.arange(out_h) * H // out_h).astype(jnp.int32)
    w_idx = (jnp.arange(out_w) * Wd // out_w).astype(jnp.int32)
    return x[:, h_idx[:, None], w_idx[None, :], :]


def transform_net_forward(content4_1, style4_1, content5_1, style5_1, params):
    """Inputs/outputs are NCHW (matching the PyTorch module)."""
    B, C, H4, W4 = content4_1.shape
    _, _, H5, W5 = content5_1.shape

    # TODO(synk): mvn stats, NCHW<->NHWC transposes, nearest upsample and the
    # residual merge remain plain-JAX glue (memory-bound layout plumbing).
    def to_nc(t):  # (B, C, H, W) -> (B, H*W, C)   (lane dim = C)
        Bx, Cx, Hx, Wx = t.shape
        return jnp.transpose(t, (0, 2, 3, 1)).reshape(Bx, Hx * Wx, Cx)

    o41 = attention_block(to_nc(content4_1), to_nc(style4_1), params["ab4_1"])
    o51 = attention_block(to_nc(content5_1), to_nc(style5_1), params["ab5_1"])

    o41 = o41.reshape(B, H4, W4, C)
    o51 = o51.reshape(B, H5, W5, C)
    merged = o41 + upsample_nearest_nhwc(o51, H4, W4)

    out = merge_conv(merged, params["merge_w"], params["merge_b"])      # (B, H4, W4, C)
    return jnp.transpose(out, (0, 3, 1, 2))                              # back to NCHW


# ------------------------------------------------------------------ params

def init_params(key, C):
    keys = jax.random.split(key, 10)

    def conv1x1(k):
        # torch weight (Cout, Cin, 1, 1) is stored transposed as (Cin, Cout) so the
        # kernel computes y = x @ w + b with x laid out (N, C).
        kw, kb = jax.random.split(k)
        w = jax.random.normal(kw, (C, C), jnp.float32) * (1.0 / jnp.sqrt(C))
        b = jax.random.normal(kb, (1, C), jnp.float32) * 0.01
        return w, b

    def attn_params(ks):
        wq, bq = conv1x1(ks[0]); wk, bk = conv1x1(ks[1])
        wv, bv = conv1x1(ks[2]); wo, bo = conv1x1(ks[3])
        return (wq, bq, wk, bk, wv, bv, wo, bo)

    params = {
        "ab4_1": attn_params(keys[0:4]),
        "ab5_1": attn_params(keys[4:8]),
    }
    # torch merge_conv weight (Cout, Cin, 3, 3) stored as (ky, kx, Cin, Cout)
    mw = jax.random.normal(keys[8], (3, 3, C, C), jnp.float32) * (1.0 / jnp.sqrt(9 * C))
    mb = jax.random.normal(keys[9], (1, C), jnp.float32) * 0.01
    params["merge_w"] = mw
    params["merge_b"] = mb
    return params


# ------------------------------------------------------------------ fp32 reference

def _ref_mvn(x):  # x: (B, C, N)
    n = x.shape[-1]
    mean = x.mean(-1, keepdims=True)
    var = jnp.sum((x - mean) ** 2, -1, keepdims=True) / max(n - 1, 1)
    return (x - mean) / jnp.sqrt(var + EPS)


def _ref_attention(content, style, p):
    wq, bq, wk, bk, wv, bv, wo, bo = p
    B, C, H, Wd = content.shape
    c = content.reshape(B, C, H * Wd)
    s = style.reshape(B, C, -1)

    def conv1x1(x, w, b):  # w: (Cin, Cout), b: (1, C)
        return jnp.einsum('io,bin->bon', w, x) + b.reshape(1, C, 1)

    q = conv1x1(_ref_mvn(c), wq, bq)
    k = conv1x1(_ref_mvn(s), wk, bk)
    v = conv1x1(s, wv, bv)
    energy = jnp.einsum('bcn,bcm->bnm', q, k)
    attn = jax.nn.softmax(energy, axis=-1)
    o = jnp.einsum('bcm,bnm->bcn', v, attn)
    o = conv1x1(o, wo, bo)
    return (o + c).reshape(B, C, H, Wd)


def _ref_forward(c41, s41, c51, s51, params):
    B, C, H4, W4 = c41.shape
    H5, W5 = c51.shape[2:]
    o41 = _ref_attention(c41, s41, params["ab4_1"])
    o51 = _ref_attention(c51, s51, params["ab5_1"])
    h_idx = jnp.arange(H4) * H5 // H4
    w_idx = jnp.arange(W4) * W5 // W4
    merged = o41 + o51[:, :, h_idx[:, None], w_idx[None, :]]
    xp = jnp.pad(merged, ((0, 0), (0, 0), (1, 1), (1, 1)), mode="reflect")
    w, b = params["merge_w"], params["merge_b"]
    out = jnp.zeros_like(merged)
    for ky in range(3):
        for kx in range(3):
            out = out + jnp.einsum('io,bihw->bohw', w[ky, kx],
                                   xp[:, :, ky:ky + H4, kx:kx + W4])
    return out + b.reshape(1, C, 1, 1)


# ------------------------------------------------------------------ main

if __name__ == "__main__":
    key = jax.random.PRNGKey(0)
    kp, k1, k2, k3, k4 = jax.random.split(key, 5)

    B, C = 2, 32                    # small stand-in for in_planes=512
    content4_1 = jax.random.normal(k1, (B, C, 8, 8), jnp.float32)
    style4_1 = jax.random.normal(k2, (B, C, 8, 8), jnp.float32)
    content5_1 = jax.random.normal(k3, (B, C, 4, 4), jnp.float32)
    style5_1 = jax.random.normal(k4, (B, C, 4, 4), jnp.float32)

    params = init_params(kp, C)

    out = jax.jit(transform_net_forward)(content4_1, style4_1,
                                         content5_1, style5_1, params)
    jax.block_until_ready(out)
    assert out.shape == (B, C, 8, 8)
    assert bool(jnp.all(jnp.isfinite(out)))

    # loose sanity check vs an fp32 pure-JAX reference (kernel uses bf16 MXU operands)
    ref = _ref_forward(content4_1, style4_1, content5_1, style5_1, params)
    max_err = float(jnp.max(jnp.abs(out - ref)))
    scale = float(jnp.max(jnp.abs(ref))) + 1e-6
    assert max_err <= 0.1 * scale + 1e-3, f"mismatch: max_err={max_err}, scale={scale}"

    print("KERNEL_OK")
</pallas_src>

<mosaic_0001>
module attributes {stable_mosaic.version = 11 : i64} {
  func.func @_kv_proj_kernel(%arg0: i32, %arg1: i32, %arg2: memref<1x16x32xf32, #tpu.memory_space<vmem>>, %arg3: memref<1x1x32xf32, #tpu.memory_space<vmem>>, %arg4: memref<1x1x32xf32, #tpu.memory_space<vmem>>, %arg5: memref<32x32xbf16, #tpu.memory_space<vmem>>, %arg6: memref<1x32xf32, #tpu.memory_space<vmem>>, %arg7: memref<32x32xbf16, #tpu.memory_space<vmem>>, %arg8: memref<1x32xf32, #tpu.memory_space<vmem>>, %arg9: memref<1x16x32xbf16, #tpu.memory_space<vmem>>, %arg10: memref<1x16x32xbf16, #tpu.memory_space<vmem>>) attributes {dimension_semantics = [#tpu.dimension_semantics<parallel>, #tpu.dimension_semantics<parallel>], iteration_bounds = array<i64: 2, 1>, scalar_prefetch = 0 : i64, scratch_operands = 0 : i64, tpu.core_type = #tpu.core_type<tc>, window_params = [{transform_indices = @transform_0, window_bounds = array<i64: 1, 16, 32>}, {transform_indices = @transform_1, window_bounds = array<i64: 1, 1, 32>}, {transform_indices = @transform_2, window_bounds = array<i64: 1, 1, 32>}, {pipeline_mode = #tpu.pipeline_mode<synchronous>, transform_indices = @transform_3, window_bounds = array<i64: 32, 32>}, {pipeline_mode = #tpu.pipeline_mode<synchronous>, transform_indices = @transform_4, window_bounds = array<i64: 1, 32>}, {pipeline_mode = #tpu.pipeline_mode<synchronous>, transform_indices = @transform_5, window_bounds = array<i64: 32, 32>}, {pipeline_mode = #tpu.pipeline_mode<synchronous>, transform_indices = @transform_6, window_bounds = array<i64: 1, 32>}, {transform_indices = @transform_7, window_bounds = array<i64: 1, 16, 32>}, {transform_indices = @transform_8, window_bounds = array<i64: 1, 16, 32>}]} {
    %c0 = arith.constant 0 : index
    %c0_0 = arith.constant 0 : index
    %c0_1 = arith.constant 0 : index
    %0 = vector.load %arg2[%c0, %c0_0, %c0_1] : memref<1x16x32xf32, #tpu.memory_space<vmem>>, vector<1x16x32xf32>
    %1 = vector.shape_cast %0 : vector<1x16x32xf32> to vector<16x32xf32>
    %c0_2 = arith.constant 0 : index
    %c0_3 = arith.constant 0 : index
    %c0_4 = arith.constant 0 : index
    %2 = vector.load %arg3[%c0_2, %c0_3, %c0_4] : memref<1x1x32xf32, #tpu.memory_space<vmem>>, vector<1x1x32xf32>
    %3 = vector.shape_cast %2 : vector<1x1x32xf32> to vector<1x32xf32>
    %4 = vector.broadcast %3 : vector<1x32xf32> to vector<16x32xf32>
    %5 = arith.subf %1, %4 : vector<16x32xf32>
    %c0_5 = arith.constant 0 : index
    %c0_6 = arith.constant 0 : index
    %c0_7 = arith.constant 0 : index
    %6 = vector.load %arg4[%c0_5, %c0_6, %c0_7] : memref<1x1x32xf32, #tpu.memory_space<vmem>>, vector<1x1x32xf32>
    %7 = vector.shape_cast %6 : vector<1x1x32xf32> to vector<1x32xf32>
    %8 = vector.broadcast %7 : vector<1x32xf32> to vector<16x32xf32>
    %9 = arith.mulf %5, %8 : vector<16x32xf32>
    %10 = arith.truncf %9 : vector<16x32xf32> to vector<16x32xbf16>
    %c0_8 = arith.constant 0 : index
    %c0_9 = arith.constant 0 : index
    %11 = vector.load %arg5[%c0_8, %c0_9] : memref<32x32xbf16, #tpu.memory_space<vmem>>, vector<32x32xbf16>
    %cst = arith.constant dense<0.000000e+00> : vector<16x32xf32>
    %12 = tpu.matmul %10, %11, %cst {dimension_numbers = #tpu.dot_dimension_numbers<[1], [0], [0], [1], [0, 0, 1, 1], [], []>} : vector<16x32xbf16>, vector<32x32xbf16>, vector<16x32xf32> -> vector<16x32xf32>
    %c0_10 = arith.constant 0 : index
    %c0_11 = arith.constant 0 : index
    %13 = vector.load %arg6[%c0_10, %c0_11] : memref<1x32xf32, #tpu.memory_space<vmem>>, vector<1x32xf32>
    %14 = vector.broadcast %13 : vector<1x32xf32> to vector<16x32xf32>
    %15 = arith.addf %12, %14 : vector<16x32xf32>
    %16 = arith.truncf %1 : vector<16x32xf32> to vector<16x32xbf16>
    %c0_12 = arith.constant 0 : index
    %c0_13 = arith.constant 0 : index
    %17 = vector.load %arg7[%c0_12, %c0_13] : memref<32x32xbf16, #tpu.memory_space<vmem>>, vector<32x32xbf16>
    %cst_14 = arith.constant dense<0.000000e+00> : vector<16x32xf32>
    %18 = tpu.matmul %16, %17, %cst_14 {dimension_numbers = #tpu.dot_dimension_numbers<[1], [0], [0], [1], [0, 0, 1, 1], [], []>} : vector<16x32xbf16>, vector<32x32xbf16>, vector<16x32xf32> -> vector<16x32xf32>
    %c0_15 = arith.constant 0 : index
    %c0_16 = arith.constant 0 : index
    %19 = vector.load %arg8[%c0_15, %c0_16] : memref<1x32xf32, #tpu.memory_space<vmem>>, vector<1x32xf32>
    %20 = vector.broadcast %19 : vector<1x32xf32> to vector<16x32xf32>
    %21 = arith.addf %18, %20 : vector<16x32xf32>
    %22 = arith.truncf %15 : vector<16x32xf32> to vector<16x32xbf16>
    %c0_17 = arith.constant 0 : index
    %c0_18 = arith.constant 0 : index
    %c0_19 = arith.constant 0 : index
    %23 = vector.load %arg9[%c0_17, %c0_18, %c0_19] : memref<1x16x32xbf16, #tpu.memory_space<vmem>>, vector<1x16x32xbf16>
    %24 = vector.shape_cast %23 : vector<1x16x32xbf16> to vector<16x32xbf16>
    %25 = vector.shape_cast %22 : vector<16x32xbf16> to vector<1x16x32xbf16>
    tpu.vector_store %arg9[%c0_17, %c0_18, %c0_19], %25 {strides = array<i32>} : memref<1x16x32xbf16, #tpu.memory_space<vmem>>, vector<1x16x32xbf16>,
    %26 = arith.truncf %21 : vector<16x32xf32> to vector<16x32xbf16>
    %c0_20 = arith.constant 0 : index
    %c0_21 = arith.constant 0 : index
    %c0_22 = arith.constant 0 : index
    %27 = vector.load %arg10[%c0_20, %c0_21, %c0_22] : memref<1x16x32xbf16, #tpu.memory_space<vmem>>, vector<1x16x32xbf16>
    %28 = vector.shape_cast %27 : vector<1x16x32xbf16> to vector<16x32xbf16>
    %29 = vector.shape_cast %26 : vector<16x32xbf16> to vector<1x16x32xbf16>
    tpu.vector_store %arg10[%c0_20, %c0_21, %c0_22], %29 {strides = array<i32>} : memref<1x16x32xbf16, #tpu.memory_space<vmem>>, vector<1x16x32xbf16>,
    return
  }
  func.func @transform_0(%arg0: i32, %arg1: i32) -> (i32, i32, i32) {
    %c0_i32 = arith.constant 0 : i32
    %c0_i32_0 = arith.constant 0 : i32
    return %arg0, %arg1, %c0_i32 : i32, i32, i32
  }
  func.func @transform_1(%arg0: i32, %arg1: i32) -> (i32, i32, i32) {
    %c0_i32 = arith.constant 0 : i32
    %c0_i32_0 = arith.constant 0 : i32
    %c0_i32_1 = arith.constant 0 : i32
    return %arg0, %c0_i32, %c0_i32_0 : i32, i32, i32
  }
  func.func @transform_2(%arg0: i32, %arg1: i32) -> (i32, i32, i32) {
    %c0_i32 = arith.constant 0 : i32
    %c0_i32_0 = arith.constant 0 : i32
    %c0_i32_1 = arith.constant 0 : i32
    return %arg0, %c0_i32, %c0_i32_0 : i32, i32, i32
  }
  func.func @transform_3(%arg0: i32, %arg1: i32) -> (i32, i32) {
    %c0_i32 = arith.constant 0 : i32
    %c0_i32_0 = arith.constant 0 : i32
    %c0_i32_1 = arith.constant 0 : i32
    return %c0_i32, %c0_i32_0 : i32, i32
  }
  func.func @transform_4(%arg0: i32, %arg1: i32) -> (i32, i32) {
    %c0_i32 = arith.constant 0 : i32
    %c0_i32_0 = arith.constant 0 : i32
    %c0_i32_1 = arith.constant 0 : i32
    return %c0_i32, %c0_i32_0 : i32, i32
  }
  func.func @transform_5(%arg0: i32, %arg1: i32) -> (i32, i32) {
    %c0_i32 = arith.constant 0 : i32
    %c0_i32_0 = arith.constant 0 : i32
    %c0_i32_1 = arith.constant 0 : i32
    return %c0_i32, %c0_i32_0 : i32, i32
  }
  func.func @transform_6(%arg0: i32, %arg1: i32) -> (i32, i32) {
    %c0_i32 = arith.constant 0 : i32
    %c0_i32_0 = arith.constant 0 : i32
    %c0_i32_1 = arith.constant 0 : i32
    return %c0_i32, %c0_i32_0 : i32, i32
  }
  func.func @transform_7(%arg0: i32, %arg1: i32) -> (i32, i32, i32) {
    %c0_i32 = arith.constant 0 : i32
    %c0_i32_0 = arith.constant 0 : i32
    return %arg0, %arg1, %c0_i32 : i32, i32, i32
  }
  func.func @transform_8(%arg0: i32, %arg1: i32) -> (i32, i32, i32) {
    %c0_i32 = arith.constant 0 : i32
    %c0_i32_0 = arith.constant 0 : i32
    return %arg0, %arg1, %c0_i32 : i32, i32, i32
  }
}

module attributes {stable_mosaic.version = 11 : i64} {
  func.func @_attn_kernel(%arg0: i32, %arg1: i32, %arg2: memref<1x16x32xf32, #tpu.memory_space<vmem>>, %arg3: memref<1x1x32xf32, #tpu.memory_space<vmem>>, %arg4: memref<1x1x32xf32, #tpu.memory_space<vmem>>, %arg5: memref<32x32xbf16, #tpu.memory_space<vmem>>, %arg6: memref<1x32xf32, #tpu.memory_space<vmem>>, %arg7: memref<32x32xbf16, #tpu.memory_space<vmem>>, %arg8: memref<1x32xf32, #tpu.memory_space<vmem>>, %arg9: memref<1x16x32xbf16, #tpu.memory_space<vmem>>, %arg10: memref<1x16x32xbf16, #tpu.memory_space<vmem>>, %arg11: memref<1x16x32xf32, #tpu.memory_space<vmem>>) attributes {dimension_semantics = [#tpu.dimension_semantics<parallel>, #tpu.dimension_semantics<parallel>], iteration_bounds = array<i64: 2, 1>, scalar_prefetch = 0 : i64, scratch_operands = 0 : i64, tpu.core_type = #tpu.core_type<tc>, window_params = [{transform_indices = @transform_0, window_bounds = array<i64: 1, 16, 32>}, {transform_indices = @transform_1, window_bounds = array<i64: 1, 1, 32>}, {transform_indices = @transform_2, window_bounds = array<i64: 1, 1, 32>}, {pipeline_mode = #tpu.pipeline_mode<synchronous>, transform_indices = @transform_3, window_bounds = array<i64: 32, 32>}, {pipeline_mode = #tpu.pipeline_mode<synchronous>, transform_indices = @transform_4, window_bounds = array<i64: 1, 32>}, {pipeline_mode = #tpu.pipeline_mode<synchronous>, transform_indices = @transform_5, window_bounds = array<i64: 32, 32>}, {pipeline_mode = #tpu.pipeline_mode<synchronous>, transform_indices = @transform_6, window_bounds = array<i64: 1, 32>}, {transform_indices = @transform_7, window_bounds = array<i64: 1, 16, 32>}, {transform_indices = @transform_8, window_bounds = array<i64: 1, 16, 32>}, {transform_indices = @transform_9, window_bounds = array<i64: 1, 16, 32>}]} {
    %c0 = arith.constant 0 : index
    %c0_0 = arith.constant 0 : index
    %c0_1 = arith.constant 0 : index
    %0 = vector.load %arg2[%c0, %c0_0, %c0_1] : memref<1x16x32xf32, #tpu.memory_space<vmem>>, vector<1x16x32xf32>
    %1 = vector.shape_cast %0 : vector<1x16x32xf32> to vector<16x32xf32>
    %c0_2 = arith.constant 0 : index
    %c0_3 = arith.constant 0 : index
    %c0_4 = arith.constant 0 : index
    %2 = vector.load %arg3[%c0_2, %c0_3, %c0_4] : memref<1x1x32xf32, #tpu.memory_space<vmem>>, vector<1x1x32xf32>
    %3 = vector.shape_cast %2 : vector<1x1x32xf32> to vector<1x32xf32>
    %4 = vector.broadcast %3 : vector<1x32xf32> to vector<16x32xf32>
    %5 = arith.subf %1, %4 : vector<16x32xf32>
    %c0_5 = arith.constant 0 : index
    %c0_6 = arith.constant 0 : index
    %c0_7 = arith.constant 0 : index
    %6 = vector.load %arg4[%c0_5, %c0_6, %c0_7] : memref<1x1x32xf32, #tpu.memory_space<vmem>>, vector<1x1x32xf32>
    %7 = vector.shape_cast %6 : vector<1x1x32xf32> to vector<1x32xf32>
    %8 = vector.broadcast %7 : vector<1x32xf32> to vector<16x32xf32>
    %9 = arith.mulf %5, %8 : vector<16x32xf32>
    %10 = arith.truncf %9 : vector<16x32xf32> to vector<16x32xbf16>
    %c0_8 = arith.constant 0 : index
    %c0_9 = arith.constant 0 : index
    %11 = vector.load %arg5[%c0_8, %c0_9] : memref<32x32xbf16, #tpu.memory_space<vmem>>, vector<32x32xbf16>
    %cst = arith.constant dense<0.000000e+00> : vector<16x32xf32>
    %12 = tpu.matmul %10, %11, %cst {dimension_numbers = #tpu.dot_dimension_numbers<[1], [0], [0], [1], [0, 0, 1, 1], [], []>} : vector<16x32xbf16>, vector<32x32xbf16>, vector<16x32xf32> -> vector<16x32xf32>
    %c0_10 = arith.constant 0 : index
    %c0_11 = arith.constant 0 : index
    %13 = vector.load %arg6[%c0_10, %c0_11] : memref<1x32xf32, #tpu.memory_space<vmem>>, vector<1x32xf32>
    %14 = vector.broadcast %13 : vector<1x32xf32> to vector<16x32xf32>
    %15 = arith.addf %12, %14 : vector<16x32xf32>
    %16 = arith.truncf %15 : vector<16x32xf32> to vector<16x32xbf16>
    %cst_12 = arith.constant 0xFF800000 : f32
    %17 = vector.broadcast %cst_12 : f32 to vector<16x1xf32>
    %cst_13 = arith.constant 0.000000e+00 : f32
    %18 = vector.broadcast %cst_13 : f32 to vector<16x1xf32>
    %cst_14 = arith.constant 0.000000e+00 : f32
    %19 = vector.broadcast %cst_14 : f32 to vector<16x32xf32>
    %c0_i32 = arith.constant 0 : i32
    %c16_i32 = arith.constant 16 : i32
    %20 = arith.muli %c0_i32, %c16_i32 : i32
    %21 = tpu.assume_multiple %20, 16 : i32
    %c0_15 = arith.constant 0 : index
    %22 = arith.index_cast %21 : i32 to index
    %c0_16 = arith.constant 0 : index
    %23 = vector.load %arg9[%c0_15, %22, %c0_16] : memref<1x16x32xbf16, #tpu.memory_space<vmem>>, vector<1x16x32xbf16>
    %24 = vector.shape_cast %23 : vector<1x16x32xbf16> to vector<16x32xbf16>
    %c0_17 = arith.constant 0 : index
    %25 = arith.index_cast %21 : i32 to index
    %c0_18 = arith.constant 0 : index
    %26 = vector.load %arg10[%c0_17, %25, %c0_18] : memref<1x16x32xbf16, #tpu.memory_space<vmem>>, vector<1x16x32xbf16>
    %27 = vector.shape_cast %26 : vector<1x16x32xbf16> to vector<16x32xbf16>
    %cst_19 = arith.constant dense<0.000000e+00> : vector<16x16xf32>
    %28 = tpu.matmul %16, %24, %cst_19 {dimension_numbers = #tpu.dot_dimension_numbers<[1], [1], [0], [0], [0, 0, 1, 0], [], []>} : vector<16x32xbf16>, vector<16x32xbf16>, vector<16x16xf32> -> vector<16x16xf32>
    %cst_20 = arith.constant dense<0xFF800000> : vector<16xf32>
    %29 = vector.multi_reduction <maximumf>, %28, %cst_20 [1] : vector<16x16xf32> to vector<16xf32>
    %30 = vector.shape_cast %29 : vector<16xf32> to vector<16x1xf32>
    %31 = arith.maximumf %17, %30 : vector<16x1xf32>
    %32 = arith.subf %17, %31 : vector<16x1xf32>
    %33 = math.exp %32 : vector<16x1xf32>
    %34 = vector.broadcast %31 : vector<16x1xf32> to vector<16x16xf32>
    %35 = arith.subf %28, %34 : vector<16x16xf32>
    %36 = math.exp %35 : vector<16x16xf32>
    %37 = arith.mulf %33, %18 : vector<16x1xf32>
    %cst_21 = arith.constant dense<0.000000e+00> : vector<16xf32>
    %38 = vector.multi_reduction <add>, %36, %cst_21 [1] : vector<16x16xf32> to vector<16xf32>
    %39 = vector.shape_cast %38 : vector<16xf32> to vector<16x1xf32>
    %40 = arith.addf %37, %39 : vector<16x1xf32>
    %41 = vector.broadcast %33 : vector<16x1xf32> to vector<16x32xf32>
    %42 = arith.mulf %41, %19 : vector<16x32xf32>
    %43 = arith.truncf %36 : vector<16x16xf32> to vector<16x16xbf16>
    %cst_22 = arith.constant dense<0.000000e+00> : vector<16x32xf32>
    %44 = tpu.matmul %43, %27, %cst_22 {dimension_numbers = #tpu.dot_dimension_numbers<[1], [0], [0], [1], [0, 0, 1, 1], [], []>} : vector<16x16xbf16>, vector<16x32xbf16>, vector<16x32xf32> -> vector<16x32xf32>
    %45 = arith.addf %42, %44 : vector<16x32xf32>
    %c1_i32 = arith.constant 1 : i32
    %46 = tpu.reciprocal %40 : vector<16x1xf32> -> vector<16x1xf32>
    %47 = vector.broadcast %46 : vector<16x1xf32> to vector<16x32xf32>
    %48 = arith.mulf %45, %47 : vector<16x32xf32>
    %49 = arith.truncf %48 : vector<16x32xf32> to vector<16x32xbf16>
    %c0_23 = arith.constant 0 : index
    %c0_24 = arith.constant 0 : index
    %50 = vector.load %arg7[%c0_23, %c0_24] : memref<32x32xbf16, #tpu.memory_space<vmem>>, vector<32x32xbf16>
    %cst_25 = arith.constant dense<0.000000e+00> : vector<16x32xf32>
    %51 = tpu.matmul %49, %50, %cst_25 {dimension_numbers = #tpu.dot_dimension_numbers<[1], [0], [0], [1], [0, 0, 1, 1], [], []>} : vector<16x32xbf16>, vector<32x32xbf16>, vector<16x32xf32> -> vector<16x32xf32>
    %c0_26 = arith.constant 0 : index
    %c0_27 = arith.constant 0 : index
    %52 = vector.load %arg8[%c0_26, %c0_27] : memref<1x32xf32, #tpu.memory_space<vmem>>, vector<1x32xf32>
    %53 = vector.broadcast %52 : vector<1x32xf32> to vector<16x32xf32>
    %54 = arith.addf %51, %53 : vector<16x32xf32>
    %55 = arith.addf %54, %1 : vector<16x32xf32>
    %c0_28 = arith.constant 0 : index
    %c0_29 = arith.constant 0 : index
    %c0_30 = arith.constant 0 : index
    %56 = vector.load %arg11[%c0_28, %c0_29, %c0_30] : memref<1x16x32xf32, #tpu.memory_space<vmem>>, vector<1x16x32xf32>
    %57 = vector.shape_cast %56 : vector<1x16x32xf32> to vector<16x32xf32>
    %58 = vector.shape_cast %55 : vector<16x32xf32> to vector<1x16x32xf32>
    tpu.vector_store %arg11[%c0_28, %c0_29, %c0_30], %58 {strides = array<i32>} : memref<1x16x32xf32, #tpu.memory_space<vmem>>, vector<1x16x32xf32>,
    return
  }
  func.func @transform_0(%arg0: i32, %arg1: i32) -> (i32, i32, i32) {
    %c0_i32 = arith.constant 0 : i32
    %c0_i32_0 = arith.constant 0 : i32
    return %arg0, %arg1, %c0_i32 : i32, i32, i32
  }
  func.func @transform_1(%arg0: i32, %arg1: i32) -> (i32, i32, i32) {
    %c0_i32 = arith.constant 0 : i32
    %c0_i32_0 = arith.constant 0 : i32
    %c0_i32_1 = arith.constant 0 : i32
    return %arg0, %c0_i32, %c0_i32_0 : i32, i32, i32
  }
  func.func @transform_2(%arg0: i32, %arg1: i32) -> (i32, i32, i32) {
    %c0_i32 = arith.constant 0 : i32
    %c0_i32_0 = arith.constant 0 : i32
    %c0_i32_1 = arith.constant 0 : i32
    return %arg0, %c0_i32, %c0_i32_0 : i32, i32, i32
  }
  func.func @transform_3(%arg0: i32, %arg1: i32) -> (i32, i32) {
    %c0_i32 = arith.constant 0 : i32
    %c0_i32_0 = arith.constant 0 : i32
    %c0_i32_1 = arith.constant 0 : i32
    return %c0_i32, %c0_i32_0 : i32, i32
  }
  func.func @transform_4(%arg0: i32, %arg1: i32) -> (i32, i32) {
    %c0_i32 = arith.constant 0 : i32
    %c0_i32_0 = arith.constant 0 : i32
    %c0_i32_1 = arith.constant 0 : i32
    return %c0_i32, %c0_i32_0 : i32, i32
  }
  func.func @transform_5(%arg0: i32, %arg1: i32) -> (i32, i32) {
    %c0_i32 = arith.constant 0 : i32
    %c0_i32_0 = arith.constant 0 : i32
    %c0_i32_1 = arith.constant 0 : i32
    return %c0_i32, %c0_i32_0 : i32, i32
  }
  func.func @transform_6(%arg0: i32, %arg1: i32) -> (i32, i32) {
    %c0_i32 = arith.constant 0 : i32
    %c0_i32_0 = arith.constant 0 : i32
    %c0_i32_1 = arith.constant 0 : i32
    return %c0_i32, %c0_i32_0 : i32, i32
  }
  func.func @transform_7(%arg0: i32, %arg1: i32) -> (i32, i32, i32) {
    %c0_i32 = arith.constant 0 : i32
    %c0_i32_0 = arith.constant 0 : i32
    %c0_i32_1 = arith.constant 0 : i32
    return %arg0, %c0_i32, %c0_i32_0 : i32, i32, i32
  }
  func.func @transform_8(%arg0: i32, %arg1: i32) -> (i32, i32, i32) {
    %c0_i32 = arith.constant 0 : i32
    %c0_i32_0 = arith.constant 0 : i32
    %c0_i32_1 = arith.constant 0 : i32
    return %arg0, %c0_i32, %c0_i32_0 : i32, i32, i32
  }
  func.func @transform_9(%arg0: i32, %arg1: i32) -> (i32, i32, i32) {
    %c0_i32 = arith.constant 0 : i32
    %c0_i32_0 = arith.constant 0 : i32
    return %arg0, %arg1, %c0_i32 : i32, i32, i32
  }
}

module attributes {stable_mosaic.version = 11 : i64} {
  func.func @_kv_proj_kernel(%arg0: i32, %arg1: i32, %arg2: memref<1x64x32xf32, #tpu.memory_space<vmem>>, %arg3: memref<1x1x32xf32, #tpu.memory_space<vmem>>, %arg4: memref<1x1x32xf32, #tpu.memory_space<vmem>>, %arg5: memref<32x32xbf16, #tpu.memory_space<vmem>>, %arg6: memref<1x32xf32, #tpu.memory_space<vmem>>, %arg7: memref<32x32xbf16, #tpu.memory_space<vmem>>, %arg8: memref<1x32xf32, #tpu.memory_space<vmem>>, %arg9: memref<1x64x32xbf16, #tpu.memory_space<vmem>>, %arg10: memref<1x64x32xbf16, #tpu.memory_space<vmem>>) attributes {dimension_semantics = [#tpu.dimension_semantics<parallel>, #tpu.dimension_semantics<parallel>], iteration_bounds = array<i64: 2, 1>, scalar_prefetch = 0 : i64, scratch_operands = 0 : i64, tpu.core_type = #tpu.core_type<tc>, window_params = [{transform_indices = @transform_0, window_bounds = array<i64: 1, 64, 32>}, {transform_indices = @transform_1, window_bounds = array<i64: 1, 1, 32>}, {transform_indices = @transform_2, window_bounds = array<i64: 1, 1, 32>}, {pipeline_mode = #tpu.pipeline_mode<synchronous>, transform_indices = @transform_3, window_bounds = array<i64: 32, 32>}, {pipeline_mode = #tpu.pipeline_mode<synchronous>, transform_indices = @transform_4, window_bounds = array<i64: 1, 32>}, {pipeline_mode = #tpu.pipeline_mode<synchronous>, transform_indices = @transform_5, window_bounds = array<i64: 32, 32>}, {pipeline_mode = #tpu.pipeline_mode<synchronous>, transform_indices = @transform_6, window_bounds = array<i64: 1, 32>}, {transform_indices = @transform_7, window_bounds = array<i64: 1, 64, 32>}, {transform_indices = @transform_8, window_bounds = array<i64: 1, 64, 32>}]} {
    %c0 = arith.constant 0 : index
    %c0_0 = arith.constant 0 : index
    %c0_1 = arith.constant 0 : index
    %0 = vector.load %arg2[%c0, %c0_0, %c0_1] : memref<1x64x32xf32, #tpu.memory_space<vmem>>, vector<1x64x32xf32>
    %1 = vector.shape_cast %0 : vector<1x64x32xf32> to vector<64x32xf32>
    %c0_2 = arith.constant 0 : index
    %c0_3 = arith.constant 0 : index
    %c0_4 = arith.constant 0 : index
    %2 = vector.load %arg3[%c0_2, %c0_3, %c0_4] : memref<1x1x32xf32, #tpu.memory_space<vmem>>, vector<1x1x32xf32>
    %3 = vector.shape_cast %2 : vector<1x1x32xf32> to vector<1x32xf32>
    %4 = vector.broadcast %3 : vector<1x32xf32> to vector<64x32xf32>
    %5 = arith.subf %1, %4 : vector<64x32xf32>
    %c0_5 = arith.constant 0 : index
    %c0_6 = arith.constant 0 : index
    %c0_7 = arith.constant 0 : index
    %6 = vector.load %arg4[%c0_5, %c0_6, %c0_7] : memref<1x1x32xf32, #tpu.memory_space<vmem>>, vector<1x1x32xf32>
    %7 = vector.shape_cast %6 : vector<1x1x32xf32> to vector<1x32xf32>
    %8 = vector.broadcast %7 : vector<1x32xf32> to vector<64x32xf32>
    %9 = arith.mulf %5, %8 : vector<64x32xf32>
    %10 = arith.truncf %9 : vector<64x32xf32> to vector<64x32xbf16>
    %c0_8 = arith.constant 0 : index
    %c0_9 = arith.constant 0 : index
    %11 = vector.load %arg5[%c0_8, %c0_9] : memref<32x32xbf16, #tpu.memory_space<vmem>>, vector<32x32xbf16>
    %cst = arith.constant dense<0.000000e+00> : vector<64x32xf32>
    %12 = tpu.matmul %10, %11, %cst {dimension_numbers = #tpu.dot_dimension_numbers<[1], [0], [0], [1], [0, 0, 1, 1], [], []>} : vector<64x32xbf16>, vector<32x32xbf16>, vector<64x32xf32> -> vector<64x32xf32>
    %c0_10 = arith.constant 0 : index
    %c0_11 = arith.constant 0 : index
    %13 = vector.load %arg6[%c0_10, %c0_11] : memref<1x32xf32, #tpu.memory_space<vmem>>, vector<1x32xf32>
    %14 = vector.broadcast %13 : vector<1x32xf32> to vector<64x32xf32>
    %15 = arith.addf %12, %14 : vector<64x32xf32>
    %16 = arith.truncf %1 : vector<64x32xf32> to vector<64x32xbf16>
    %c0_12 = arith.constant 0 : index
    %c0_13 = arith.constant 0 : index
    %17 = vector.load %arg7[%c0_12, %c0_13] : memref<32x32xbf16, #tpu.memory_space<vmem>>, vector<32x32xbf16>
    %cst_14 = arith.constant dense<0.000000e+00> : vector<64x32xf32>
    %18 = tpu.matmul %16, %17, %cst_14 {dimension_numbers = #tpu.dot_dimension_numbers<[1], [0], [0], [1], [0, 0, 1, 1], [], []>} : vector<64x32xbf16>, vector<32x32xbf16>, vector<64x32xf32> -> vector<64x32xf32>
    %c0_15 = arith.constant 0 : index
    %c0_16 = arith.constant 0 : index
    %19 = vector.load %arg8[%c0_15, %c0_16] : memref<1x32xf32, #tpu.memory_space<vmem>>, vector<1x32xf32>
    %20 = vector.broadcast %19 : vector<1x32xf32> to vector<64x32xf32>
    %21 = arith.addf %18, %20 : vector<64x32xf32>
    %22 = arith.truncf %15 : vector<64x32xf32> to vector<64x32xbf16>
    %c0_17 = arith.constant 0 : index
    %c0_18 = arith.constant 0 : index
    %c0_19 = arith.constant 0 : index
    %23 = vector.load %arg9[%c0_17, %c0_18, %c0_19] : memref<1x64x32xbf16, #tpu.memory_space<vmem>>, vector<1x64x32xbf16>
    %24 = vector.shape_cast %23 : vector<1x64x32xbf16> to vector<64x32xbf16>
    %25 = vector.shape_cast %22 : vector<64x32xbf16> to vector<1x64x32xbf16>
    tpu.vector_store %arg9[%c0_17, %c0_18, %c0_19], %25 {strides = array<i32>} : memref<1x64x32xbf16, #tpu.memory_space<vmem>>, vector<1x64x32xbf16>,
    %26 = arith.truncf %21 : vector<64x32xf32> to vector<64x32xbf16>
    %c0_20 = arith.constant 0 : index
    %c0_21 = arith.constant 0 : index
    %c0_22 = arith.constant 0 : index
    %27 = vector.load %arg10[%c0_20, %c0_21, %c0_22] : memref<1x64x32xbf16, #tpu.memory_space<vmem>>, vector<1x64x32xbf16>
    %28 = vector.shape_cast %27 : vector<1x64x32xbf16> to vector<64x32xbf16>
    %29 = vector.shape_cast %26 : vector<64x32xbf16> to vector<1x64x32xbf16>
    tpu.vector_store %arg10[%c0_20, %c0_21, %c0_22], %29 {strides = array<i32>} : memref<1x64x32xbf16, #tpu.memory_space<vmem>>, vector<1x64x32xbf16>,
    return
  }
  func.func @transform_0(%arg0: i32, %arg1: i32) -> (i32, i32, i32) {
    %c0_i32 = arith.constant 0 : i32
    %c0_i32_0 = arith.constant 0 : i32
    return %arg0, %arg1, %c0_i32 : i32, i32, i32
  }
  func.func @transform_1(%arg0: i32, %arg1: i32) -> (i32, i32, i32) {
    %c0_i32 = arith.constant 0 : i32
    %c0_i32_0 = arith.constant 0 : i32
    %c0_i32_1 = arith.constant 0 : i32
    return %arg0, %c0_i32, %c0_i32_0 : i32, i32, i32
  }
  func.func @transform_2(%arg0: i32, %arg1: i32) -> (i32, i32, i32) {
    %c0_i32 = arith.constant 0 : i32
    %c0_i32_0 = arith.constant 0 : i32
    %c0_i32_1 = arith.constant 0 : i32
    return %arg0, %c0_i32, %c0_i32_0 : i32, i32, i32
  }
  func.func @transform_3(%arg0: i32, %arg1: i32) -> (i32, i32) {
    %c0_i32 = arith.constant 0 : i32
    %c0_i32_0 = arith.constant 0 : i32
    %c0_i32_1 = arith.constant 0 : i32
    return %c0_i32, %c0_i32_0 : i32, i32
  }
  func.func @transform_4(%arg0: i32, %arg1: i32) -> (i32, i32) {
    %c0_i32 = arith.constant 0 : i32
    %c0_i32_0 = arith.constant 0 : i32
    %c0_i32_1 = arith.constant 0 : i32
    return %c0_i32, %c0_i32_0 : i32, i32
  }
  func.func @transform_5(%arg0: i32, %arg1: i32) -> (i32, i32) {
    %c0_i32 = arith.constant 0 : i32
    %c0_i32_0 = arith.constant 0 : i32
    %c0_i32_1 = arith.constant 0 : i32
    return %c0_i32, %c0_i32_0 : i32, i32
  }
  func.func @transform_6(%arg0: i32, %arg1: i32) -> (i32, i32) {
    %c0_i32 = arith.constant 0 : i32
    %c0_i32_0 = arith.constant 0 : i32
    %c0_i32_1 = arith.constant 0 : i32
    return %c0_i32, %c0_i32_0 : i32, i32
  }
  func.func @transform_7(%arg0: i32, %arg1: i32) -> (i32, i32, i32) {
    %c0_i32 = arith.constant 0 : i32
    %c0_i32_0 = arith.constant 0 : i32
    return %arg0, %arg1, %c0_i32 : i32, i32, i32
  }
  func.func @transform_8(%arg0: i32, %arg1: i32) -> (i32, i32, i32) {
    %c0_i32 = arith.constant 0 : i32
    %c0_i32_0 = arith.constant 0 : i32
    return %arg0, %arg1, %c0_i32 : i32, i32, i32
  }
}

module attributes {stable_mosaic.version = 11 : i64} {
  func.func @_attn_kernel(%arg0: i32, %arg1: i32, %arg2: memref<1x64x32xf32, #tpu.memory_space<vmem>>, %arg3: memref<1x1x32xf32, #tpu.memory_space<vmem>>, %arg4: memref<1x1x32xf32, #tpu.memory_space<vmem>>, %arg5: memref<32x32xbf16, #tpu.memory_space<vmem>>, %arg6: memref<1x32xf32, #tpu.memory_space<vmem>>, %arg7: memref<32x32xbf16, #tpu.memory_space<vmem>>, %arg8: memref<1x32xf32, #tpu.memory_space<vmem>>, %arg9: memref<1x64x32xbf16, #tpu.memory_space<vmem>>, %arg10: memref<1x64x32xbf16, #tpu.memory_space<vmem>>, %arg11: memref<1x64x32xf32, #tpu.memory_space<vmem>>) attributes {dimension_semantics = [#tpu.dimension_semantics<parallel>, #tpu.dimension_semantics<parallel>], iteration_bounds = array<i64: 2, 1>, scalar_prefetch = 0 : i64, scratch_operands = 0 : i64, tpu.core_type = #tpu.core_type<tc>, window_params = [{transform_indices = @transform_0, window_bounds = array<i64: 1, 64, 32>}, {transform_indices = @transform_1, window_bounds = array<i64: 1, 1, 32>}, {transform_indices = @transform_2, window_bounds = array<i64: 1, 1, 32>}, {pipeline_mode = #tpu.pipeline_mode<synchronous>, transform_indices = @transform_3, window_bounds = array<i64: 32, 32>}, {pipeline_mode = #tpu.pipeline_mode<synchronous>, transform_indices = @transform_4, window_bounds = array<i64: 1, 32>}, {pipeline_mode = #tpu.pipeline_mode<synchronous>, transform_indices = @transform_5, window_bounds = array<i64: 32, 32>}, {pipeline_mode = #tpu.pipeline_mode<synchronous>, transform_indices = @transform_6, window_bounds = array<i64: 1, 32>}, {transform_indices = @transform_7, window_bounds = array<i64: 1, 64, 32>}, {transform_indices = @transform_8, window_bounds = array<i64: 1, 64, 32>}, {transform_indices = @transform_9, window_bounds = array<i64: 1, 64, 32>}]} {
    %c0 = arith.constant 0 : index
    %c0_0 = arith.constant 0 : index
    %c0_1 = arith.constant 0 : index
    %0 = vector.load %arg2[%c0, %c0_0, %c0_1] : memref<1x64x32xf32, #tpu.memory_space<vmem>>, vector<1x64x32xf32>
    %1 = vector.shape_cast %0 : vector<1x64x32xf32> to vector<64x32xf32>
    %c0_2 = arith.constant 0 : index
    %c0_3 = arith.constant 0 : index
    %c0_4 = arith.constant 0 : index
    %2 = vector.load %arg3[%c0_2, %c0_3, %c0_4] : memref<1x1x32xf32, #tpu.memory_space<vmem>>, vector<1x1x32xf32>
    %3 = vector.shape_cast %2 : vector<1x1x32xf32> to vector<1x32xf32>
    %4 = vector.broadcast %3 : vector<1x32xf32> to vector<64x32xf32>
    %5 = arith.subf %1, %4 : vector<64x32xf32>
    %c0_5 = arith.constant 0 : index
    %c0_6 = arith.constant 0 : index
    %c0_7 = arith.constant 0 : index
    %6 = vector.load %arg4[%c0_5, %c0_6, %c0_7] : memref<1x1x32xf32, #tpu.memory_space<vmem>>, vector<1x1x32xf32>
    %7 = vector.shape_cast %6 : vector<1x1x32xf32> to vector<1x32xf32>
    %8 = vector.broadcast %7 : vector<1x32xf32> to vector<64x32xf32>
    %9 = arith.mulf %5, %8 : vector<64x32xf32>
    %10 = arith.truncf %9 : vector<64x32xf32> to vector<64x32xbf16>
    %c0_8 = arith.constant 0 : index
    %c0_9 = arith.constant 0 : index
    %11 = vector.load %arg5[%c0_8, %c0_9] : memref<32x32xbf16, #tpu.memory_space<vmem>>, vector<32x32xbf16>
    %cst = arith.constant dense<0.000000e+00> : vector<64x32xf32>
    %12 = tpu.matmul %10, %11, %cst {dimension_numbers = #tpu.dot_dimension_numbers<[1], [0], [0], [1], [0, 0, 1, 1], [], []>} : vector<64x32xbf16>, vector<32x32xbf16>, vector<64x32xf32> -> vector<64x32xf32>
    %c0_10 = arith.constant 0 : index
    %c0_11 = arith.constant 0 : index
    %13 = vector.load %arg6[%c0_10, %c0_11] : memref<1x32xf32, #tpu.memory_space<vmem>>, vector<1x32xf32>
    %14 = vector.broadcast %13 : vector<1x32xf32> to vector<64x32xf32>
    %15 = arith.addf %12, %14 : vector<64x32xf32>
    %16 = arith.truncf %15 : vector<64x32xf32> to vector<64x32xbf16>
    %cst_12 = arith.constant 0xFF800000 : f32
    %17 = vector.broadcast %cst_12 : f32 to vector<64x1xf32>
    %cst_13 = arith.constant 0.000000e+00 : f32
    %18 = vector.broadcast %cst_13 : f32 to vector<64x1xf32>
    %cst_14 = arith.constant 0.000000e+00 : f32
    %19 = vector.broadcast %cst_14 : f32 to vector<64x32xf32>
    %c0_i32 = arith.constant 0 : i32
    %c64_i32 = arith.constant 64 : i32
    %20 = arith.muli %c0_i32, %c64_i32 : i32
    %21 = tpu.assume_multiple %20, 64 : i32
    %c0_15 = arith.constant 0 : index
    %22 = arith.index_cast %21 : i32 to index
    %c0_16 = arith.constant 0 : index
    %23 = vector.load %arg9[%c0_15, %22, %c0_16] : memref<1x64x32xbf16, #tpu.memory_space<vmem>>, vector<1x64x32xbf16>
    %24 = vector.shape_cast %23 : vector<1x64x32xbf16> to vector<64x32xbf16>
    %c0_17 = arith.constant 0 : index
    %25 = arith.index_cast %21 : i32 to index
    %c0_18 = arith.constant 0 : index
    %26 = vector.load %arg10[%c0_17, %25, %c0_18] : memref<1x64x32xbf16, #tpu.memory_space<vmem>>, vector<1x64x32xbf16>
    %27 = vector.shape_cast %26 : vector<1x64x32xbf16> to vector<64x32xbf16>
    %cst_19 = arith.constant dense<0.000000e+00> : vector<64x64xf32>
    %28 = tpu.matmul %16, %24, %cst_19 {dimension_numbers = #tpu.dot_dimension_numbers<[1], [1], [0], [0], [0, 0, 1, 0], [], []>} : vector<64x32xbf16>, vector<64x32xbf16>, vector<64x64xf32> -> vector<64x64xf32>
    %cst_20 = arith.constant dense<0xFF800000> : vector<64xf32>
    %29 = vector.multi_reduction <maximumf>, %28, %cst_20 [1] : vector<64x64xf32> to vector<64xf32>
    %30 = vector.shape_cast %29 : vector<64xf32> to vector<64x1xf32>
    %31 = arith.maximumf %17, %30 : vector<64x1xf32>
    %32 = arith.subf %17, %31 : vector<64x1xf32>
    %33 = math.exp %32 : vector<64x1xf32>
    %34 = vector.broadcast %31 : vector<64x1xf32> to vector<64x64xf32>
    %35 = arith.subf %28, %34 : vector<64x64xf32>
    %36 = math.exp %35 : vector<64x64xf32>
    %37 = arith.mulf %33, %18 : vector<64x1xf32>
    %cst_21 = arith.constant dense<0.000000e+00> : vector<64xf32>
    %38 = vector.multi_reduction <add>, %36, %cst_21 [1] : vector<64x64xf32> to vector<64xf32>
    %39 = vector.shape_cast %38 : vector<64xf32> to vector<64x1xf32>
    %40 = arith.addf %37, %39 : vector<64x1xf32>
    %41 = vector.broadcast %33 : vector<64x1xf32> to vector<64x32xf32>
    %42 = arith.mulf %41, %19 : vector<64x32xf32>
    %43 = arith.truncf %36 : vector<64x64xf32> to vector<64x64xbf16>
    %cst_22 = arith.constant dense<0.000000e+00> : vector<64x32xf32>
    %44 = tpu.matmul %43, %27, %cst_22 {dimension_numbers = #tpu.dot_dimension_numbers<[1], [0], [0], [1], [0, 0, 1, 1], [], []>} : vector<64x64xbf16>, vector<64x32xbf16>, vector<64x32xf32> -> vector<64x32xf32>
    %45 = arith.addf %42, %44 : vector<64x32xf32>
    %c1_i32 = arith.constant 1 : i32
    %46 = tpu.reciprocal %40 : vector<64x1xf32> -> vector<64x1xf32>
    %47 = vector.broadcast %46 : vector<64x1xf32> to vector<64x32xf32>
    %48 = arith.mulf %45, %47 : vector<64x32xf32>
    %49 = arith.truncf %48 : vector<64x32xf32> to vector<64x32xbf16>
    %c0_23 = arith.constant 0 : index
    %c0_24 = arith.constant 0 : index
    %50 = vector.load %arg7[%c0_23, %c0_24] : memref<32x32xbf16, #tpu.memory_space<vmem>>, vector<32x32xbf16>
    %cst_25 = arith.constant dense<0.000000e+00> : vector<64x32xf32>
    %51 = tpu.matmul %49, %50, %cst_25 {dimension_numbers = #tpu.dot_dimension_numbers<[1], [0], [0], [1], [0, 0, 1, 1], [], []>} : vector<64x32xbf16>, vector<32x32xbf16>, vector<64x32xf32> -> vector<64x32xf32>
    %c0_26 = arith.constant 0 : index
    %c0_27 = arith.constant 0 : index
    %52 = vector.load %arg8[%c0_26, %c0_27] : memref<1x32xf32, #tpu.memory_space<vmem>>, vector<1x32xf32>
    %53 = vector.broadcast %52 : vector<1x32xf32> to vector<64x32xf32>
    %54 = arith.addf %51, %53 : vector<64x32xf32>
    %55 = arith.addf %54, %1 : vector<64x32xf32>
    %c0_28 = arith.constant 0 : index
    %c0_29 = arith.constant 0 : index
    %c0_30 = arith.constant 0 : index
    %56 = vector.load %arg11[%c0_28, %c0_29, %c0_30] : memref<1x64x32xf32, #tpu.memory_space<vmem>>, vector<1x64x32xf32>
    %57 = vector.shape_cast %56 : vector<1x64x32xf32> to vector<64x32xf32>
    %58 = vector.shape_cast %55 : vector<64x32xf32> to vector<1x64x32xf32>
    tpu.vector_store %arg11[%c0_28, %c0_29, %c0_30], %58 {strides = array<i32>} : memref<1x64x32xf32, #tpu.memory_space<vmem>>, vector<1x64x32xf32>,
    return
  }
  func.func @transform_0(%arg0: i32, %arg1: i32) -> (i32, i32, i32) {
    %c0_i32 = arith.constant 0 : i32
    %c0_i32_0 = arith.constant 0 : i32
    return %arg0, %arg1, %c0_i32 : i32, i32, i32
  }
  func.func @transform_1(%arg0: i32, %arg1: i32) -> (i32, i32, i32) {
    %c0_i32 = arith.constant 0 : i32
    %c0_i32_0 = arith.constant 0 : i32
    %c0_i32_1 = arith.constant 0 : i32
    return %arg0, %c0_i32, %c0_i32_0 : i32, i32, i32
  }
  func.func @transform_2(%arg0: i32, %arg1: i32) -> (i32, i32, i32) {
    %c0_i32 = arith.constant 0 : i32
    %c0_i32_0 = arith.constant 0 : i32
    %c0_i32_1 = arith.constant 0 : i32
    return %arg0, %c0_i32, %c0_i32_0 : i32, i32, i32
  }
  func.func @transform_3(%arg0: i32, %arg1: i32) -> (i32, i32) {
    %c0_i32 = arith.constant 0 : i32
    %c0_i32_0 = arith.constant 0 : i32
    %c0_i32_1 = arith.constant 0 : i32
    return %c0_i32, %c0_i32_0 : i32, i32
  }
  func.func @transform_4(%arg0: i32, %arg1: i32) -> (i32, i32) {
    %c0_i32 = arith.constant 0 : i32
    %c0_i32_0 = arith.constant 0 : i32
    %c0_i32_1 = arith.constant 0 : i32
    return %c0_i32, %c0_i32_0 : i32, i32
  }
  func.func @transform_5(%arg0: i32, %arg1: i32) -> (i32, i32) {
    %c0_i32 = arith.constant 0 : i32
    %c0_i32_0 = arith.constant 0 : i32
    %c0_i32_1 = arith.constant 0 : i32
    return %c0_i32, %c0_i32_0 : i32, i32
  }
  func.func @transform_6(%arg0: i32, %arg1: i32) -> (i32, i32) {
    %c0_i32 = arith.constant 0 : i32
    %c0_i32_0 = arith.constant 0 : i32
    %c0_i32_1 = arith.constant 0 : i32
    return %c0_i32, %c0_i32_0 : i32, i32
  }
  func.func @transform_7(%arg0: i32, %arg1: i32) -> (i32, i32, i32) {
    %c0_i32 = arith.constant 0 : i32
    %c0_i32_0 = arith.constant 0 : i32
    %c0_i32_1 = arith.constant 0 : i32
    return %arg0, %c0_i32, %c0_i32_0 : i32, i32, i32
  }
  func.func @transform_8(%arg0: i32, %arg1: i32) -> (i32, i32, i32) {
    %c0_i32 = arith.constant 0 : i32
    %c0_i32_0 = arith.constant 0 : i32
    %c0_i32_1 = arith.constant 0 : i32
    return %arg0, %c0_i32, %c0_i32_0 : i32, i32, i32
  }
  func.func @transform_9(%arg0: i32, %arg1: i32) -> (i32, i32, i32) {
    %c0_i32 = arith.constant 0 : i32
    %c0_i32_0 = arith.constant 0 : i32
    return %arg0, %arg1, %c0_i32 : i32, i32, i32
  }
}

module attributes {stable_mosaic.version = 11 : i64} {
  func.func @_merge_kernel(%arg0: i32, %arg1: i32, %arg2: memref<1x10x10x32xbf16, #tpu.memory_space<vmem>>, %arg3: memref<3x3x32x32xbf16, #tpu.memory_space<vmem>>, %arg4: memref<1x32xf32, #tpu.memory_space<vmem>>, %arg5: memref<1x8x8x32xf32, #tpu.memory_space<vmem>>) attributes {dimension_semantics = [#tpu.dimension_semantics<parallel>, #tpu.dimension_semantics<parallel>], iteration_bounds = array<i64: 2, 1>, scalar_prefetch = 0 : i64, scratch_operands = 0 : i64, tpu.core_type = #tpu.core_type<tc>, window_params = [{transform_indices = @transform_0, window_bounds = array<i64: 1, 10, 10, 32>}, {pipeline_mode = #tpu.pipeline_mode<synchronous>, transform_indices = @transform_1, window_bounds = array<i64: 3, 3, 32, 32>}, {pipeline_mode = #tpu.pipeline_mode<synchronous>, transform_indices = @transform_2, window_bounds = array<i64: 1, 32>}, {transform_indices = @transform_3, window_bounds = array<i64: 1, 8, 8, 32>}]} {
    %c8_i32 = arith.constant 8 : i32
    %0 = arith.muli %arg1, %c8_i32 : i32
    %cst = arith.constant 0.000000e+00 : f32
    %1 = vector.broadcast %cst : f32 to vector<64x32xf32>
    %c0_i32 = arith.constant 0 : i32
    %2 = arith.addi %0, %c0_i32 : i32
    %c0 = arith.constant 0 : index
    %3 = arith.index_cast %2 : i32 to index
    %c0_0 = arith.constant 0 : index
    %c0_1 = arith.constant 0 : index
    %4 = vector.load %arg2[%c0, %3, %c0_0, %c0_1] : memref<1x10x10x32xbf16, #tpu.memory_space<vmem>>, vector<1x8x10x32xbf16>
    %5 = vector.shape_cast %4 : vector<1x8x10x32xbf16> to vector<8x10x32xbf16>
    %6 = vector.extract_strided_slice %5 {offsets = [0, 0, 0], sizes = [8, 8, 32], strides = [1, 1, 1]} : vector<8x10x32xbf16> to vector<8x8x32xbf16>
    %7 = vector.shape_cast %6 : vector<8x8x32xbf16> to vector<64x32xbf16>
    %c0_2 = arith.constant 0 : index
    %c0_3 = arith.constant 0 : index
    %c0_4 = arith.constant 0 : index
    %c0_5 = arith.constant 0 : index
    %8 = vector.load %arg3[%c0_2, %c0_3, %c0_4, %c0_5] : memref<3x3x32x32xbf16, #tpu.memory_space<vmem>>, vector<1x1x32x32xbf16>
    %9 = vector.shape_cast %8 : vector<1x1x32x32xbf16> to vector<32x32xbf16>
    %cst_6 = arith.constant dense<0.000000e+00> : vector<64x32xf32>
    %10 = tpu.matmul %7, %9, %cst_6 {dimension_numbers = #tpu.dot_dimension_numbers<[1], [0], [0], [1], [0, 0, 1, 1], [], []>} : vector<64x32xbf16>, vector<32x32xbf16>, vector<64x32xf32> -> vector<64x32xf32>
    %11 = arith.addf %1, %10 : vector<64x32xf32>
    %12 = vector.extract_strided_slice %5 {offsets = [0, 1, 0], sizes = [8, 8, 32], strides = [1, 1, 1]} : vector<8x10x32xbf16> to vector<8x8x32xbf16>
    %13 = vector.shape_cast %12 : vector<8x8x32xbf16> to vector<64x32xbf16>
    %c0_7 = arith.constant 0 : index
    %c1 = arith.constant 1 : index
    %c0_8 = arith.constant 0 : index
    %c0_9 = arith.constant 0 : index
    %14 = vector.load %arg3[%c0_7, %c1, %c0_8, %c0_9] : memref<3x3x32x32xbf16, #tpu.memory_space<vmem>>, vector<1x1x32x32xbf16>
    %15 = vector.shape_cast %14 : vector<1x1x32x32xbf16> to vector<32x32xbf16>
    %cst_10 = arith.constant dense<0.000000e+00> : vector<64x32xf32>
    %16 = tpu.matmul %13, %15, %cst_10 {dimension_numbers = #tpu.dot_dimension_numbers<[1], [0], [0], [1], [0, 0, 1, 1], [], []>} : vector<64x32xbf16>, vector<32x32xbf16>, vector<64x32xf32> -> vector<64x32xf32>
    %17 = arith.addf %11, %16 : vector<64x32xf32>
    %18 = vector.extract_strided_slice %5 {offsets = [0, 2, 0], sizes = [8, 8, 32], strides = [1, 1, 1]} : vector<8x10x32xbf16> to vector<8x8x32xbf16>
    %19 = vector.shape_cast %18 : vector<8x8x32xbf16> to vector<64x32xbf16>
    %c0_11 = arith.constant 0 : index
    %c2 = arith.constant 2 : index
    %c0_12 = arith.constant 0 : index
    %c0_13 = arith.constant 0 : index
    %20 = vector.load %arg3[%c0_11, %c2, %c0_12, %c0_13] : memref<3x3x32x32xbf16, #tpu.memory_space<vmem>>, vector<1x1x32x32xbf16>
    %21 = vector.shape_cast %20 : vector<1x1x32x32xbf16> to vector<32x32xbf16>
    %cst_14 = arith.constant dense<0.000000e+00> : vector<64x32xf32>
    %22 = tpu.matmul %19, %21, %cst_14 {dimension_numbers = #tpu.dot_dimension_numbers<[1], [0], [0], [1], [0, 0, 1, 1], [], []>} : vector<64x32xbf16>, vector<32x32xbf16>, vector<64x32xf32> -> vector<64x32xf32>
    %23 = arith.addf %17, %22 : vector<64x32xf32>
    %c1_i32 = arith.constant 1 : i32
    %24 = arith.addi %0, %c1_i32 : i32
    %c0_15 = arith.constant 0 : index
    %25 = arith.index_cast %24 : i32 to index
    %c0_16 = arith.constant 0 : index
    %c0_17 = arith.constant 0 : index
    %26 = vector.load %arg2[%c0_15, %25, %c0_16, %c0_17] : memref<1x10x10x32xbf16, #tpu.memory_space<vmem>>, vector<1x8x10x32xbf16>
    %27 = vector.shape_cast %26 : vector<1x8x10x32xbf16> to vector<8x10x32xbf16>
    %28 = vector.extract_strided_slice %27 {offsets = [0, 0, 0], sizes = [8, 8, 32], strides = [1, 1, 1]} : vector<8x10x32xbf16> to vector<8x8x32xbf16>
    %29 = vector.shape_cast %28 : vector<8x8x32xbf16> to vector<64x32xbf16>
    %c1_18 = arith.constant 1 : index
    %c0_19 = arith.constant 0 : index
    %c0_20 = arith.constant 0 : index
    %c0_21 = arith.constant 0 : index
    %30 = vector.load %arg3[%c1_18, %c0_19, %c0_20, %c0_21] : memref<3x3x32x32xbf16, #tpu.memory_space<vmem>>, vector<1x1x32x32xbf16>
    %31 = vector.shape_cast %30 : vector<1x1x32x32xbf16> to vector<32x32xbf16>
    %cst_22 = arith.constant dense<0.000000e+00> : vector<64x32xf32>
    %32 = tpu.matmul %29, %31, %cst_22 {dimension_numbers = #tpu.dot_dimension_numbers<[1], [0], [0], [1], [0, 0, 1, 1], [], []>} : vector<64x32xbf16>, vector<32x32xbf16>, vector<64x32xf32> -> vector<64x32xf32>
    %33 = arith.addf %23, %32 : vector<64x32xf32>
    %34 = vector.extract_strided_slice %27 {offsets = [0, 1, 0], sizes = [8, 8, 32], strides = [1, 1, 1]} : vector<8x10x32xbf16> to vector<8x8x32xbf16>
    %35 = vector.shape_cast %34 : vector<8x8x32xbf16> to vector<64x32xbf16>
    %c1_23 = arith.constant 1 : index
    %c1_24 = arith.constant 1 : index
    %c0_25 = arith.constant 0 : index
    %c0_26 = arith.constant 0 : index
    %36 = vector.load %arg3[%c1_23, %c1_24, %c0_25, %c0_26] : memref<3x3x32x32xbf16, #tpu.memory_space<vmem>>, vector<1x1x32x32xbf16>
    %37 = vector.shape_cast %36 : vector<1x1x32x32xbf16> to vector<32x32xbf16>
    %cst_27 = arith.constant dense<0.000000e+00> : vector<64x32xf32>
    %38 = tpu.matmul %35, %37, %cst_27 {dimension_numbers = #tpu.dot_dimension_numbers<[1], [0], [0], [1], [0, 0, 1, 1], [], []>} : vector<64x32xbf16>, vector<32x32xbf16>, vector<64x32xf32> -> vector<64x32xf32>
    %39 = arith.addf %33, %38 : vector<64x32xf32>
    %40 = vector.extract_strided_slice %27 {offsets = [0, 2, 0], sizes = [8, 8, 32], strides = [1, 1, 1]} : vector<8x10x32xbf16> to vector<8x8x32xbf16>
    %41 = vector.shape_cast %40 : vector<8x8x32xbf16> to vector<64x32xbf16>
    %c1_28 = arith.constant 1 : index
    %c2_29 = arith.constant 2 : index
    %c0_30 = arith.constant 0 : index
    %c0_31 = arith.constant 0 : index
    %42 = vector.load %arg3[%c1_28, %c2_29, %c0_30, %c0_31] : memref<3x3x32x32xbf16, #tpu.memory_space<vmem>>, vector<1x1x32x32xbf16>
    %43 = vector.shape_cast %42 : vector<1x1x32x32xbf16> to vector<32x32xbf16>
    %cst_32 = arith.constant dense<0.000000e+00> : vector<64x32xf32>
    %44 = tpu.matmul %41, %43, %cst_32 {dimension_numbers = #tpu.dot_dimension_numbers<[1], [0], [0], [1], [0, 0, 1, 1], [], []>} : vector<64x32xbf16>, vector<32x32xbf16>, vector<64x32xf32> -> vector<64x32xf32>
    %45 = arith.addf %39, %44 : vector<64x32xf32>
    %c2_i32 = arith.constant 2 : i32
    %46 = arith.addi %0, %c2_i32 : i32
    %c0_33 = arith.constant 0 : index
    %47 = arith.index_cast %46 : i32 to index
    %c0_34 = arith.constant 0 : index
    %c0_35 = arith.constant 0 : index
    %48 = vector.load %arg2[%c0_33, %47, %c0_34, %c0_35] : memref<1x10x10x32xbf16, #tpu.memory_space<vmem>>, vector<1x8x10x32xbf16>
    %49 = vector.shape_cast %48 : vector<1x8x10x32xbf16> to vector<8x10x32xbf16>
    %50 = vector.extract_strided_slice %49 {offsets = [0, 0, 0], sizes = [8, 8, 32], strides = [1, 1, 1]} : vector<8x10x32xbf16> to vector<8x8x32xbf16>
    %51 = vector.shape_cast %50 : vector<8x8x32xbf16> to vector<64x32xbf16>
    %c2_36 = arith.constant 2 : index
    %c0_37 = arith.constant 0 : index
    %c0_38 = arith.constant 0 : index
    %c0_39 = arith.constant 0 : index
    %52 = vector.load %arg3[%c2_36, %c0_37, %c0_38, %c0_39] : memref<3x3x32x32xbf16, #tpu.memory_space<vmem>>, vector<1x1x32x32xbf16>
    %53 = vector.shape_cast %52 : vector<1x1x32x32xbf16> to vector<32x32xbf16>
    %cst_40 = arith.constant dense<0.000000e+00> : vector<64x32xf32>
    %54 = tpu.matmul %51, %53, %cst_40 {dimension_numbers = #tpu.dot_dimension_numbers<[1], [0], [0], [1], [0, 0, 1, 1], [], []>} : vector<64x32xbf16>, vector<32x32xbf16>, vector<64x32xf32> -> vector<64x32xf32>
    %55 = arith.addf %45, %54 : vector<64x32xf32>
    %56 = vector.extract_strided_slice %49 {offsets = [0, 1, 0], sizes = [8, 8, 32], strides = [1, 1, 1]} : vector<8x10x32xbf16> to vector<8x8x32xbf16>
    %57 = vector.shape_cast %56 : vector<8x8x32xbf16> to vector<64x32xbf16>
    %c2_41 = arith.constant 2 : index
    %c1_42 = arith.constant 1 : index
    %c0_43 = arith.constant 0 : index
    %c0_44 = arith.constant 0 : index
    %58 = vector.load %arg3[%c2_41, %c1_42, %c0_43, %c0_44] : memref<3x3x32x32xbf16, #tpu.memory_space<vmem>>, vector<1x1x32x32xbf16>
    %59 = vector.shape_cast %58 : vector<1x1x32x32xbf16> to vector<32x32xbf16>
    %cst_45 = arith.constant dense<0.000000e+00> : vector<64x32xf32>
    %60 = tpu.matmul %57, %59, %cst_45 {dimension_numbers = #tpu.dot_dimension_numbers<[1], [0], [0], [1], [0, 0, 1, 1], [], []>} : vector<64x32xbf16>, vector<32x32xbf16>, vector<64x32xf32> -> vector<64x32xf32>
    %61 = arith.addf %55, %60 : vector<64x32xf32>
    %62 = vector.extract_strided_slice %49 {offsets = [0, 2, 0], sizes = [8, 8, 32], strides = [1, 1, 1]} : vector<8x10x32xbf16> to vector<8x8x32xbf16>
    %63 = vector.shape_cast %62 : vector<8x8x32xbf16> to vector<64x32xbf16>
    %c2_46 = arith.constant 2 : index
    %c2_47 = arith.constant 2 : index
    %c0_48 = arith.constant 0 : index
    %c0_49 = arith.constant 0 : index
    %64 = vector.load %arg3[%c2_46, %c2_47, %c0_48, %c0_49] : memref<3x3x32x32xbf16, #tpu.memory_space<vmem>>, vector<1x1x32x32xbf16>
    %65 = vector.shape_cast %64 : vector<1x1x32x32xbf16> to vector<32x32xbf16>
    %cst_50 = arith.constant dense<0.000000e+00> : vector<64x32xf32>
    %66 = tpu.matmul %63, %65, %cst_50 {dimension_numbers = #tpu.dot_dimension_numbers<[1], [0], [0], [1], [0, 0, 1, 1], [], []>} : vector<64x32xbf16>, vector<32x32xbf16>, vector<64x32xf32> -> vector<64x32xf32>
    %67 = arith.addf %61, %66 : vector<64x32xf32>
    %c0_51 = arith.constant 0 : index
    %c0_52 = arith.constant 0 : index
    %68 = vector.load %arg4[%c0_51, %c0_52] : memref<1x32xf32, #tpu.memory_space<vmem>>, vector<1x32xf32>
    %69 = vector.broadcast %68 : vector<1x32xf32> to vector<64x32xf32>
    %70 = arith.addf %67, %69 : vector<64x32xf32>
    %71 = vector.shape_cast %70 : vector<64x32xf32> to vector<8x8x32xf32>
    %c0_53 = arith.constant 0 : index
    %c0_54 = arith.constant 0 : index
    %c0_55 = arith.constant 0 : index
    %c0_56 = arith.constant 0 : index
    %72 = vector.load %arg5[%c0_53, %c0_54, %c0_55, %c0_56] : memref<1x8x8x32xf32, #tpu.memory_space<vmem>>, vector<1x8x8x32xf32>
    %73 = vector.shape_cast %72 : vector<1x8x8x32xf32> to vector<8x8x32xf32>
    %74 = vector.shape_cast %71 : vector<8x8x32xf32> to vector<1x8x8x32xf32>
    tpu.vector_store %arg5[%c0_53, %c0_54, %c0_55, %c0_56], %74 {strides = array<i32>} : memref<1x8x8x32xf32, #tpu.memory_space<vmem>>, vector<1x8x8x32xf32>,
    return
  }
  func.func @transform_0(%arg0: i32, %arg1: i32) -> (i32, i32, i32, i32) {
    %c0_i32 = arith.constant 0 : i32
    %c0_i32_0 = arith.constant 0 : i32
    %c0_i32_1 = arith.constant 0 : i32
    %c0_i32_2 = arith.constant 0 : i32
    return %arg0, %c0_i32, %c0_i32_0, %c0_i32_1 : i32, i32, i32, i32
  }
  func.func @transform_1(%arg0: i32, %arg1: i32) -> (i32, i32, i32, i32) {
    %c0_i32 = arith.constant 0 : i32
    %c0_i32_0 = arith.constant 0 : i32
    %c0_i32_1 = arith.constant 0 : i32
    %c0_i32_2 = arith.constant 0 : i32
    %c0_i32_3 = arith.constant 0 : i32
    return %c0_i32, %c0_i32_0, %c0_i32_1, %c0_i32_2 : i32, i32, i32, i32
  }
  func.func @transform_2(%arg0: i32, %arg1: i32) -> (i32, i32) {
    %c0_i32 = arith.constant 0 : i32
    %c0_i32_0 = arith.constant 0 : i32
    %c0_i32_1 = arith.constant 0 : i32
    return %c0_i32, %c0_i32_0 : i32, i32
  }
  func.func @transform_3(%arg0: i32, %arg1: i32) -> (i32, i32, i32, i32) {
    %c0_i32 = arith.constant 0 : i32
    %c0_i32_0 = arith.constant 0 : i32
    %c0_i32_1 = arith.constant 0 : i32
    return %arg0, %arg1, %c0_i32, %c0_i32_0 : i32, i32, i32, i32
  }
}

</mosaic_0001>

<bundles_post_ra>
// kernel: transform_net_forward.7
= control target key start
LH: loop header
LB: loop body
LE: loop exit
PB: predicated region body
PF: predicated region fallthrough
CT: control target
= control target key end

     0   :  { %s888_s27 = smov 0   ;;  %s890_s28 = smov 0   ;;  %s958_s0 = inlined_call_operand.vmem [shape: f32[2,16,32], index: 0, kind: input, shape index: {}]   ;;  %s959_s1 = inlined_call_operand.vmem [shape: f32[2,1,32], index: 1, kind: input, shape index: {}]   ;;  %s960_s2 = inlined_call_operand.vmem [shape: f32[2,1,32], index: 2, kind: input, shape index: {}]   ;;  %s961_s3 = inlined_call_operand.vmem [shape: bf16[32,32], index: 3, kind: input, shape index: {}]   ;;  %s962_s4 = inlined_call_operand.vmem [shape: f32[1,32], index: 4, kind: input, shape index: {}]   ;;  %s963_s5 = inlined_call_operand.vmem [shape: bf16[32,32], index: 5, kind: input, shape index: {}]   ;;  %s964_s6 = inlined_call_operand.vmem [shape: f32[1,32], index: 6, kind: input, shape index: {}]   ;;  %s965_s7 = inlined_call_operand.vmem [shape: bf16[2,16,32], index: 7, kind: output, shape index: {0}]   ;;  %s966_s8 = inlined_call_operand.vmem [shape: bf16[2,16,32], index: 8, kind: output, shape index: {1}]  }
   0x1   :  { %s892_s29 = smov 0  }
   0x2 LB: > { %s31_s30 = sadd.s32 1, %s835_s28  ;;  %p735_p0 = scmp.ge.s32.totalorder %s839_s29, 1  ;;  %s839_s29 = sphi %s892_s29, %s19_s29   ;;  %s835_s28 = sphi %s890_s28, %s968_s28   ;;  %s831_s27 = sphi %s888_s27, %s967_s27  }
   0x3   : > { %p33_p1 = scmp.ge.s32.totalorder %s31_s30, 2  ;;  %p304_p2 = scmp.lt.s32.totalorder %s839_s29, 3 }
   0x5   : > { %s970_s30 = smov (%p33_p1, %s31_s30), 0  ;;  %p305_p3 = pnand %p735_p0, %p304_p2 }
   0x6   : > { %v813_v0 = vld [vmem:[%s963_s5] sm:$0xff] (!%p305_p3)   ;;  %v841_v1 = vmov (!%p305_p3), 0.0   ;;  %v815_v3 = vld [vmem:[%s963_s5 + $0x8] sm:$0xff] (!%p305_p3)   ;;  %vm842_vm0 = vmmov (!%p305_p3), 0   ;;  %p362_p4 = scmp.lt.s32.totalorder (!%p305_p3), %s831_s27, 1  ;;  %vm442_vm1 = vcmask (!%p305_p3), 261120  }
   0x7   : > { %308 = sbr.rel (%p305_p3) target bundleno = 243 (0xf3), region = 48  ;;  %779 = vmatprep.subr.bf16.mxu1 (!%p305_p3), %v841_v1  ;;  %771 = vmatprep.subr.bf16.mxu0 (!%p305_p3), %v841_v1  ;;  %v814_v2 = vld [vmem:[%s961_s3] sm:$0xff] (!%p305_p3)   ;;  %v816_v4 = vld [vmem:[%s961_s3 + $0x8] sm:$0xff] (!%p305_p3)   ;;  %vm563_vm2 = vcmask (!%p305_p3), 257024  }
   0x8   : > { %780 = vmatpush3.bf16.msra.mxu1 (!%p305_p3), %v813_v0  ;;  %783 = vmatprep.mubr.msk.bf16.mxu1 (!%p305_p3), %vm842_vm0, %v841_v1  ;;  %v748_v15 = vld [vmem:[%s964_s6] ss:$0 sm:$0xff] (!%p305_p3) }
   0x9   : > { %772 = vmatpush3.bf16.msra.mxu0 (!%p305_p3), %v814_v2  ;;  %781 = vmatprep.subr.bf16.mxu1 (!%p305_p3), %v841_v1  ;;  %v744_v20 = vld [vmem:[%s962_s4] ss:$0 sm:$0xff] (!%p305_p3) }
   0xa   : > { %773 = vmatprep.subr.bf16.mxu0 (!%p305_p3), %v841_v1  ;;  %775 = vmatprep.mubr.msk.bf16.mxu0 (!%p305_p3), %vm842_vm0, %v841_v1 }
   0xc   : > { %782 = vmatpush3.bf16.msra.mxu1 (!%p305_p3), %v815_v3 }
   0xd   : > { %774 = vmatpush3.bf16.msra.mxu0 (!%p305_p3), %v816_v4 }
   0xe   : > { %s972_s27 = smov (!%p362_p4, %s831_s27), 1 }
   0xf   : > { %s758_s17 = sshll.u32 %s972_s27, 4  ;;  %s373_s20 = scalar_lea.vmem %s959_s1, %s972_s27 }
  0x10   : > { %s369_s23 = scalar_lea.vmem %s958_s0, %s758_s17  ;;  %v742_v5 = vld [vmem:[%s373_s20] ss:$0 sm:$0xff]  ;;  %s376_s26 = scalar_lea.vmem %s960_s2, %s972_s27 }
  0x11   : > { %v398_v6 = vld [vmem:[%s369_s23] sm:$0xff]  ;;  %v399_v7 = vld [vmem:[%s369_s23 + $0x8] sm:$0xff]  ;;  %s759_s11 = sshll.u32 %s972_s27, 3 }
  0x12   : > { %v743_v8 = vld [vmem:[%s376_s26] ss:$0 sm:$0xff]  ;;  %v407_v9 = vsub.f32 %v398_v6, %v742_v5  ;;  %v408_v10 = vsub.f32 %v399_v7, %v742_v5  ;;  %v487_v11 = vpack.c.bf16 %v399_v7, %v398_v6  ;;  %s395_s14 = scalar_lea.vmem %s966_s8, %s759_s11  ;;  %s385_s18 = scalar_lea.vmem %s965_s7, %s759_s11 }
  0x14   : > { %784 = vmatmul.mubr.msk.bf16.vlgmr.msra.gmra.mrb[0].mxu1 %vm442_vm1, %v487_v11  ;;  %v416_v12 = vmul.f32 %v743_v8, %v407_v9  ;;  %v417_v13 = vmul.f32 %v743_v8, %v408_v10 }
  0x16   : > { %v418_v14 = vpack.c.bf16 %v417_v13, %v416_v12 }
  0x18   : > { %776 = vmatmul.mubr.msk.bf16.vlgmr.msra.gmra.mrb[0].mxu0 %vm442_vm1, %v418_v14 }
  0xe7   : > { %v548_v16 = vpop.f32.mrb[0].mxu1 }
  0xe8   : > { %v549_v17 = vadd.f32 %v748_v15, %v548_v16  ;;  %v785_v18 = vpop.f32.mrb[1].mxu1 }
  0xe9   : > { %v551_v19 = vpop.f32.mrb[2].mxu1 }
  0xea   : > { %v763_v21 = vpack.c.bf16 %v549_v17, %v549_v17  ;;  %v552_v22 = vadd.f32 %v748_v15, %v551_v19  ;;  %v786_v23 = vpop.f32.mrb[3].mxu1 }
  0xeb   : > { %v480_v24 = vpop.f32.mrb[0].mxu0 }
  0xec   : > { %574 = vst.msk [vmem:[%s395_s14] sm:$0xf] %vm563_vm2, %v763_v21  ;;  %v764_v25 = vpack.c.bf16 %v552_v22, %v552_v22  ;;  %v481_v26 = vadd.f32 %v744_v20, %v480_v24  ;;  %v777_v27 = vpop.f32.mrb[1].mxu0 }
  0xed   : > { %v483_v28 = vpop.f32.mrb[2].mxu0 }
  0xee   : > { %575 = vst.msk [vmem:[%s395_s14 + $0x4] sm:$0xf] %vm563_vm2, %v764_v25  ;;  %v761_v29 = vpack.c.bf16 %v481_v26, %v481_v26  ;;  %v484_v30 = vadd.f32 %v744_v20, %v483_v28  ;;  %v778_v31 = vpop.f32.mrb[3].mxu0 }
  0xf0   : > { %564 = vst.msk [vmem:[%s385_s18] sm:$0xf] %vm563_vm2, %v761_v29  ;;  %v762_v32 = vpack.c.bf16 %v484_v30, %v484_v30 }
  0xf2   : > { %565 = vst.msk [vmem:[%s385_s18 + $0x4] sm:$0xf] %vm563_vm2, %v762_v32 }
  0xf3 PF: > { %s19_s29 = sadd.s32 1, %s839_s29   ;;  %s967_s27 = smov %s835_s28 }
  0xf4   : > { %p16_p5 = scmp.ge.s32.totalorder %s19_s29, 4   ;;  %s968_s28 = smov %s970_s30 }
  0xf6   :  { %18 = sbr.rel (!%p16_p5) target bundleno = 2 (0x2), region = 96 }

// kernel: transform_net_forward.8
= control target key start
LH: loop header
LB: loop body
LE: loop exit
PB: predicated region body
PF: predicated region fallthrough
CT: control target
= control target key end

     0   :  { %s1065_s30 = smov 0   ;;  %s1067_s10 = smov 0   ;;  %s1171_s0 = inlined_call_operand.vmem [shape: f32[2,16,32], index: 0, kind: input, shape index: {}]   ;;  %s1172_s1 = inlined_call_operand.vmem [shape: f32[2,1,32], index: 1, kind: input, shape index: {}]   ;;  %s1173_s2 = inlined_call_operand.vmem [shape: f32[2,1,32], index: 2, kind: input, shape index: {}]   ;;  %s1174_s3 = inlined_call_operand.vmem [shape: bf16[32,32], index: 3, kind: input, shape index: {}]   ;;  %s1175_s4 = inlined_call_operand.vmem [shape: f32[1,32], index: 4, kind: input, shape index: {}]   ;;  %s1176_s5 = inlined_call_operand.vmem [shape: bf16[32,32], index: 5, kind: input, shape index: {}]   ;;  %s1177_s6 = inlined_call_operand.vmem [shape: f32[1,32], index: 6, kind: input, shape index: {}]   ;;  %s1178_s7 = inlined_call_operand.vmem [shape: bf16[2,16,32], index: 7, kind: input, shape index: {}]   ;;  %s1179_s8 = inlined_call_operand.vmem [shape: bf16[2,16,32], index: 8, kind: input, shape index: {}]   ;;  %s1180_s9 = inlined_call_operand.vmem [shape: f32[2,16,32], index: 9, kind: output, shape index: {}]  }
   0x1   :  { %s1069_s11 = smov 0  }
   0x2 LB: > { %s31_s12 = sadd.s32 1, %s1007_s10  ;;  %p878_p0 = scmp.ge.s32.totalorder %s1011_s11, 1  ;;  %s1011_s11 = sphi %s1069_s11, %s19_s11   ;;  %s1007_s10 = sphi %s1067_s10, %s1182_s10   ;;  %s1003_s30 = sphi %s1065_s30, %s1181_s30  }
   0x3   : > { %p33_p1 = scmp.ge.s32.totalorder %s31_s12, 2  ;;  %p344_p2 = scmp.lt.s32.totalorder %s1011_s11, 3 }
   0x5   : > { %s1184_s12 = smov (%p33_p1, %s31_s12), 0  ;;  %p345_p3 = pnand %p878_p0, %p344_p2 }
   0x6   : > { %v971_v0 = vld [vmem:[%s1174_s3] sm:$0xff] (!%p345_p3)   ;;  %v1013_v1 = vmov (!%p345_p3), 0.0   ;;  %v972_v2 = vld [vmem:[%s1174_s3 + $0x8] sm:$0xff] (!%p345_p3)   ;;  %vm1014_vm0 = vmmov (!%p345_p3), 0   ;;  %p405_p4 = scmp.lt.s32.totalorder (!%p345_p3), %s1003_s30, 1  ;;  %vm485_vm1 = vcmask (!%p345_p3), 261120  }
   0x7   : > { %348 = sbr.rel (%p345_p3) target bundleno = 1057 (0x421), region = 56  ;;  %917 = vmatprep.subr.bf16.mxu0 (!%p345_p3), %v1013_v1  ;;  %925 = vmatprep.subr.bf16.mxu1 (!%p345_p3), %v1013_v1  ;;  %v889_v14 = vld [vmem:[%s1175_s4] ss:$0 sm:$0xff] (!%p345_p3)  ;;  %vm587_vm2 = vcmask (!%p345_p3), 130048   ;;  %v976_v41 = vld [vmem:[%s1176_s5 + $0x8] sm:$0xff] (!%p345_p3)  }
   0x8   : > { %918 = vmatpush3.bf16.msra.mxu0 (!%p345_p3), %v971_v0  ;;  %921 = vmatprep.mubr.msk.bf16.mxu0 (!%p345_p3), %vm1014_vm0, %v1013_v1  ;;  %v975_v40 = vld [vmem:[%s1176_s5] sm:$0xff] (!%p345_p3)  }
   0x9   : > { %919 = vmatprep.subr.bf16.mxu0 (!%p345_p3), %v1013_v1  ;;  %927 = vmatprep.mubr.msk.bf16.mxu1 (!%p345_p3), %vm1014_vm0, %v1013_v1 }
   0xc   : > { %920 = vmatpush3.bf16.msra.mxu0 (!%p345_p3), %v972_v2 }
   0xd   : > { %931 = vmatprep.subr.bf16.mxu0 (!%p345_p3), %v1013_v1 }
   0xe   : > { %s1186_s30 = smov (!%p405_p4, %s1003_s30), 1 }
   0xf   : > { %s903_s17 = sshll.u32 %s1186_s30, 4  ;;  %s416_s20 = scalar_lea.vmem %s1172_s1, %s1186_s30 }
  0x10   : > { %s412_s23 = scalar_lea.vmem %s1171_s0, %s903_s17  ;;  %s419_s26 = scalar_lea.vmem %s1173_s2, %s1186_s30  ;;  %v887_v3 = vld [vmem:[%s416_s20] ss:$0 sm:$0xff] }
  0x11   : > { %v1113_v4 = vld [vmem:[%s412_s23] sm:$0xff]  ;;  %v1115_v5 = vld [vmem:[%s412_s23 + $0x8] sm:$0xff]  ;;  %s904_s27 = sshll.u32 %s1186_s30, 3  ;;  %s438_s28 = scalar_lea.vmem %s1180_s9, %s903_s17 }
  0x12   : > { %v888_v6 = vld [vmem:[%s419_s26] ss:$0 sm:$0xff]  ;;  %v450_v7 = vsub.f32 %v1113_v4, %v887_v3  ;;  %v451_v8 = vsub.f32 %v1115_v5, %v887_v3  ;;  %s424_s13 = scalar_lea.vmem %s1178_s7, %s904_s27  ;;  %s429_s16 = scalar_lea.vmem %s1179_s8, %s904_s27 }
  0x13   : > { %v973_v12 = vld [vmem:[%s424_s13] sm:$0xff]  }
  0x14   : > { %v459_v9 = vmul.f32 %v888_v6, %v450_v7  ;;  %v460_v10 = vmul.f32 %v888_v6, %v451_v8  ;;  %v544_v13 = vsel %vm485_vm1, %v973_v12, 0  ;;  %v974_v28 = vld [vmem:[%s429_s16] sm:$0xff]  }
  0x15   : > { %926 = vmatpush3.bf16.xpose.msra.mxu1 %v544_v13 }
  0x16   : > { %v461_v11 = vpack.c.bf16 %v460_v10, %v459_v9  ;;  %937 = vmatprep.subr.bf16.mxu1 %v1013_v1 }
  0x18   : > { %922 = vmatmul.mubr.msk.bf16.vlgmr.msra.gmra.mrb[0].mxu0 %vm485_vm1, %v461_v11 }
  0x19   : > { %933 = vmatprep.mubr.msk.bf16.mxu0 %vm1014_vm0, %v1013_v1  ;;  %932 = vmatpush3.bf16.msra.mxu0 %v974_v28 }
  0xeb   : > { %v523_v15 = vpop.f32.mrb[0].mxu0 }
  0xec   : > { %v923_v16 = vpop.f32.mrb[1].mxu0  ;;  %v524_v18 = vadd.f32 %v889_v14, %v523_v15 }
  0xed   : > { %v526_v17 = vpop.f32.mrb[2].mxu0 }
  0xee   : > { %v527_v19 = vadd.f32 %v889_v14, %v526_v17  ;;  %v924_v20 = vpop.f32.mrb[3].mxu0 }
  0xf0   : > { %v530_v21 = vpack.c.bf16 %v527_v19, %v524_v18 }
  0xf2   : > { %928 = vmatmul.mubr.msk.bf16.vlgmr.msra.gmra.mrb[0].mxu1 %vm485_vm1, %v530_v21 }
  0xf3   : > { %941 = vmatprep.mubr.msk.bf16.mxu1 %vm1014_vm0, %v1013_v1  ;;  %938 = vmatpush3.bf16.msra.mxu1 %v975_v40 }
  0xf4   : > { %939 = vmatprep.subr.bf16.mxu1 %v1013_v1  ;;  %v897_v1 = vld [vmem:[%s1177_s6] ss:$0 sm:$0xff] }
  0xf7   : > { %940 = vmatpush3.bf16.msra.mxu1 %v976_v41 }
 0x1c5   : > { %v580_v22 = vpop.f32.mrb[0].mxu1 }
 0x1c6   : > { %v929_v23 = vpop.f32.mrb[1].mxu1  ;;  %v588_v24 = vsel %vm587_vm2, %v580_v22, -inf }
 0x1c7   : > { %589 = vmax.xlane.f32.xlu0 %v588_v24  ;;  %v583_v25 = vpop.f32.mrb[2].mxu1 }
 0x1c8   : > { %v930_v26 = vpop.f32.mrb[3].mxu1  ;;  %v591_v27 = vsel %vm587_vm2, %v583_v25, -inf }
 0x1cb   : > { %592 = vmax.xlane.f32.xlu0 %v591_v27 }
 0x254   : > { %v590_v29 = vpop.xlane.xlu0 %589 }
 0x255   : > { %v600_v30 = vsub.f32 %v580_v22, %v590_v29  ;;  %v594_v42 = vsub.f32 -inf, %v590_v29 }
 0x257   : > { %v602_v31 = vmul.f32 1.442695, %v600_v30  ;;  %v596_v44 = vmul.f32 1.442695, %v594_v42 }
 0x258   : > { %v593_v32 = vpop.xlane.xlu0 %592 }
 0x259   : > { %v601_v33 = vsub.f32 %v583_v25, %v593_v32  ;;  %977 = vpow2.f32 %v602_v31  ;;  %v595_v43 = vsub.f32 -inf, %v593_v32 }
 0x25b   : > { %v604_v34 = vmul.f32 1.442695, %v601_v33  ;;  %v598_v45 = vmul.f32 1.442695, %v595_v43 }
 0x25d   : > { %979 = vpow2.f32 %v604_v34 }
 0x25e   : > { %981 = vpow2.f32 %v596_v44 }
 0x25f   : > { %983 = vpow2.f32 %v598_v45 }
 0x263   : > { %v978_v35 = vpop.eup %977 }
 0x264   : > { %v608_v36 = vsel %vm587_vm2, %v978_v35, 0.0 }
 0x265   : > { %609 = vadd.xlane.f32.xlu1 %v608_v36 }
 0x267   : > { %v980_v37 = vpop.eup %979 }
 0x268   : > { %v611_v38 = vsel %vm587_vm2, %v980_v37, 0.0  ;;  %v616_v39 = vpack.c.bf16 %v980_v37, %v978_v35  ;;  %v982_v47 = vpop.eup %981 }
 0x269   : > { %612 = vadd.xlane.f32.xlu1 %v611_v38  ;;  %v984_v48 = vpop.eup %983  ;;  %v606_v49 = vmul.f32 0.0, %v982_v47 }
 0x26a   : > { %934 = vmatmul.mubr.msk.bf16.vlgmr.msra.gmra.mrb[4].mxu0 %vm587_vm2, %v616_v39  ;;  %v607_v52 = vmul.f32 0.0, %v984_v48 }
 0x2f2   : > { %v610_v46 = vpop.xlane.xlu1 %609 }
 0x2f3   : > { %v614_v51 = vadd.f32 %v610_v46, %v606_v49 }
 0x2f5   : > { %985 = vrcp.f32 %v614_v51 }
 0x2f6   : > { %v613_v50 = vpop.xlane.xlu1 %612 }
 0x2f7   : > { %v615_v53 = vadd.f32 %v613_v50, %v607_v52 }
 0x2f9   : > { %987 = vrcp.f32 %v615_v53 }
 0x2ff   : > { %v986_v57 = vpop.eup %985 }
 0x303   : > { %v988_v62 = vpop.eup %987 }
 0x33d   : > { %v660_v54 = vpop.f32.mrb[4].mxu0 }
 0x33e   : > { %v667_v55 = vadd.f32 %v660_v54, %v606_v49  ;;  %v935_v56 = vpop.f32.mrb[5].mxu0 }
 0x33f   : > { %v663_v58 = vpop.f32.mrb[6].mxu0 }
 0x340   : > { %v671_v59 = vmul.f32 %v986_v57, %v667_v55  ;;  %v668_v60 = vadd.f32 %v663_v58, %v607_v52  ;;  %v936_v61 = vpop.f32.mrb[7].mxu0 }
 0x342   : > { %v672_v63 = vmul.f32 %v988_v62, %v668_v60 }
 0x344   : > { %v673_v0 = vpack.c.bf16 %v672_v63, %v671_v59 }
 0x346   : > { %942 = vmatmul.mubr.msk.bf16.vlgmr.msra.gmra.mrb[4].mxu1 %vm485_vm1, %v673_v0 }
 0x419   : > { %v734_v2 = vpop.f32.mrb[4].mxu1 }
 0x41a   : > { %v735_v3 = vadd.f32 %v897_v1, %v734_v2  ;;  %v943_v6 = vpop.f32.mrb[5].mxu1 }
 0x41b   : > { %v737_v7 = vpop.f32.mrb[6].mxu1 }
 0x41c   : > { %v741_v8 = vadd.f32 %v735_v3, %v1113_v4  ;;  %v738_v9 = vadd.f32 %v897_v1, %v737_v7  ;;  %v944_v10 = vpop.f32.mrb[7].mxu1 }
 0x41e   : > { %743 = vst.msk [vmem:[%s438_s28] sm:$0xff] %vm485_vm1, %v741_v8  ;;  %v742_v11 = vadd.f32 %v738_v9, %v1115_v5 }
 0x420   : > { %744 = vst.msk [vmem:[%s438_s28 + $0x8] sm:$0xff] %vm485_vm1, %v742_v11 }
 0x421 PF: > { %s19_s11 = sadd.s32 1, %s1011_s11   ;;  %s1181_s30 = smov %s1007_s10 }
 0x422   : > { %p16_p5 = scmp.ge.s32.totalorder %s19_s11, 4   ;;  %s1182_s10 = smov %s1184_s12 }
 0x424   :  { %18 = sbr.rel (!%p16_p5) target bundleno = 2 (0x2), region = 98 }

// kernel: transform_net_forward.5
= control target key start
LH: loop header
LB: loop body
LE: loop exit
PB: predicated region body
PF: predicated region fallthrough
CT: control target
= control target key end

     0   :  { %s1078_s27 = smov 0   ;;  %s1080_s28 = smov 0   ;;  %s1188_s0 = inlined_call_operand.vmem [shape: f32[2,64,32], index: 0, kind: input, shape index: {}]   ;;  %s1189_s1 = inlined_call_operand.vmem [shape: f32[2,1,32], index: 1, kind: input, shape index: {}]   ;;  %s1190_s2 = inlined_call_operand.vmem [shape: f32[2,1,32], index: 2, kind: input, shape index: {}]   ;;  %s1191_s3 = inlined_call_operand.vmem [shape: bf16[32,32], index: 3, kind: input, shape index: {}]   ;;  %s1192_s4 = inlined_call_operand.vmem [shape: f32[1,32], index: 4, kind: input, shape index: {}]   ;;  %s1193_s5 = inlined_call_operand.vmem [shape: bf16[32,32], index: 5, kind: input, shape index: {}]   ;;  %s1194_s6 = inlined_call_operand.vmem [shape: f32[1,32], index: 6, kind: input, shape index: {}]   ;;  %s1195_s7 = inlined_call_operand.vmem [shape: bf16[2,64,32], index: 7, kind: output, shape index: {0}]   ;;  %s1196_s8 = inlined_call_operand.vmem [shape: bf16[2,64,32], index: 8, kind: output, shape index: {1}]  }
   0x1   :  { %s1082_s29 = smov 0  }
   0x2 LB: > { %s31_s30 = sadd.s32 1, %s1027_s28  ;;  %p885_p0 = scmp.ge.s32.totalorder %s1031_s29, 1  ;;  %s1031_s29 = sphi %s1082_s29, %s19_s29   ;;  %s1027_s28 = sphi %s1080_s28, %s1198_s28   ;;  %s1023_s27 = sphi %s1078_s27, %s1197_s27  }
   0x3   : > { %p33_p1 = scmp.ge.s32.totalorder %s31_s30, 2  ;;  %p304_p2 = scmp.lt.s32.totalorder %s1031_s29, 3 }
   0x5   : > { %s1200_s30 = smov (%p33_p1, %s31_s30), 0  ;;  %p305_p3 = pnand %p885_p0, %p304_p2 }
   0x6   : > { %v1005_v0 = vld [vmem:[%s1193_s5] sm:$0xff] (!%p305_p3)   ;;  %p362_p4 = scmp.lt.s32.totalorder (!%p305_p3), %s1023_s27, 1  ;;  %v1007_v2 = vld [vmem:[%s1193_s5 + $0x8] sm:$0xff] (!%p305_p3)   ;;  %vm463_vm0 = vcmask (!%p305_p3), 261120   ;;  %vm677_vm1 = vcmask (!%p305_p3), 257024  }
   0x7   : > { %308 = sbr.rel (%p305_p3) target bundleno = 253 (0xfd), region = 48  ;;  %v1006_v1 = vld [vmem:[%s1191_s3] sm:$0xff] (!%p305_p3)   ;;  %969 = vmatprep.subr.bf16.mxu1 (!%p305_p3), %v1005_v0  ;;  %v1008_v3 = vld [vmem:[%s1191_s3 + $0x8] sm:$0xff] (!%p305_p3)  }
   0x8   : > { %970 = vmatpush3.bf16.msra.mxu1 (!%p305_p3), %v1005_v0  ;;  %957 = vmatprep.subr.bf16.mxu0 (!%p305_p3), %v1006_v1  ;;  %v901_v38 = vld [vmem:[%s1194_s6] ss:$0 sm:$0xff] (!%p305_p3) }
   0x9   : > { %958 = vmatpush3.bf16.msra.mxu0 (!%p305_p3), %v1006_v1  ;;  %971 = vmatprep.subr.bf16.mxu1 (!%p305_p3), %v1007_v2  ;;  %v894_v44 = vld [vmem:[%s1192_s4] ss:$0 sm:$0xff] (!%p305_p3) }
   0xa   : > { %959 = vmatprep.subr.bf16.mxu0 (!%p305_p3), %v1008_v3 }
   0xc   : > { %972 = vmatpush3.bf16.msra.mxu1 (!%p305_p3), %v1007_v2 }
   0xd   : > { %960 = vmatpush3.bf16.msra.mxu0 (!%p305_p3), %v1008_v3 }
   0xe   : > { %s1202_s27 = smov (!%p362_p4, %s1023_s27), 1 }
   0xf   : > { %s926_s17 = sshll.u32 %s1202_s27, 6  ;;  %s373_s20 = scalar_lea.vmem %s1189_s1, %s1202_s27 }
  0x10   : > { %s369_s23 = scalar_lea.vmem %s1188_s0, %s926_s17  ;;  %v892_v4 = vld [vmem:[%s373_s20] ss:$0 sm:$0xff]  ;;  %s376_s26 = scalar_lea.vmem %s1190_s2, %s1202_s27 }
  0x11   : > { %v398_v5 = vld [vmem:[%s369_s23] sm:$0xff]  ;;  %v399_v6 = vld [vmem:[%s369_s23 + $0x8] sm:$0xff]  ;;  %v400_v7 = vld [vmem:[%s369_s23 + $0x10] sm:$0xff]  ;;  %s927_s11 = sshll.u32 %s1202_s27, 5 }
  0x12   : > { %v413_v8 = vsub.f32 %v398_v5, %v892_v4  ;;  %v414_v9 = vsub.f32 %v399_v6, %v892_v4  ;;  %v541_v10 = vpack.c.bf16 %v399_v6, %v398_v5  ;;  %v401_v11 = vld [vmem:[%s369_s23 + $0x18] sm:$0xff]  ;;  %v415_v12 = vsub.f32 %v400_v7, %v892_v4  ;;  %v893_v13 = vld [vmem:[%s376_s26] ss:$0 sm:$0xff]  ;;  %v403_v17 = vld [vmem:[%s369_s23 + $0x28] sm:$0xff]  ;;  %s1137_s14 = scalar_lea.vmem %s1196_s8, %s927_s11  ;;  %s1149_s18 = scalar_lea.vmem %s1195_s7, %s927_s11 }
  0x13   : > { %v402_v14 = vld [vmem:[%s369_s23 + $0x20] sm:$0xff]  ;;  %v416_v15 = vsub.f32 %v401_v11, %v892_v4  ;;  %v542_v16 = vpack.c.bf16 %v401_v11, %v400_v7  ;;  %v404_v19 = vld [vmem:[%s369_s23 + $0x30] sm:$0xff]  ;;  %v405_v20 = vld [vmem:[%s369_s23 + $0x38] sm:$0xff]  ;;  %v418_v24 = vsub.f32 %v403_v17, %v892_v4 }
  0x14   : > { %v417_v18 = vsub.f32 %v402_v14, %v892_v4  ;;  %973 = vmatprep.mubr.msk.bf16.mxu1 %vm463_vm0, %v541_v10  ;;  %v428_v21 = vmul.f32 %v893_v13, %v413_v8  ;;  %v429_v22 = vmul.f32 %v893_v13, %v414_v9  ;;  %v430_v23 = vmul.f32 %v893_v13, %v415_v12 }
  0x15   : > { %974 = vmatmul.mubr.msk.bf16.vlgmr.msra.gmra.mrb[0].mxu1 %vm463_vm0, %v542_v16  ;;  %v431_v25 = vmul.f32 %v893_v13, %v416_v15  ;;  %v543_v26 = vpack.c.bf16 %v403_v17, %v402_v14  ;;  %v419_v27 = vsub.f32 %v404_v19, %v892_v4  ;;  %v420_v28 = vsub.f32 %v405_v20, %v892_v4 }
  0x16   : > { %v436_v29 = vpack.c.bf16 %v429_v22, %v428_v21  ;;  %v432_v30 = vmul.f32 %v893_v13, %v417_v18  ;;  %v433_v31 = vmul.f32 %v893_v13, %v418_v24  ;;  %v544_v34 = vpack.c.bf16 %v405_v20, %v404_v19 }
  0x17   : > { %v437_v32 = vpack.c.bf16 %v431_v25, %v430_v23  ;;  %977 = vmatprep.mubr.msk.bf16.mxu1 %vm463_vm0, %v543_v26  ;;  %v434_v35 = vmul.f32 %v893_v13, %v419_v27  ;;  %v435_v36 = vmul.f32 %v893_v13, %v420_v28 }
  0x18   : > { %961 = vmatprep.mubr.msk.bf16.mxu0 %vm463_vm0, %v436_v29  ;;  %v438_v33 = vpack.c.bf16 %v433_v31, %v432_v30 }
  0x19   : > { %962 = vmatmul.mubr.msk.bf16.vlgmr.msra.gmra.mrb[0].mxu0 %vm463_vm0, %v437_v32  ;;  %v439_v37 = vpack.c.bf16 %v435_v36, %v434_v35 }
  0x1a   : > { %965 = vmatprep.mubr.msk.bf16.mxu0 %vm463_vm0, %v438_v33 }
  0x1d   : > { %978 = vmatmul.mubr.msk.bf16.gmra.mrb[4].mxu1 %vm463_vm0, %v544_v34 }
  0x21   : > { %966 = vmatmul.mubr.msk.bf16.gmra.mrb[4].mxu0 %vm463_vm0, %v439_v37 }
  0xe8   : > { %v975_v39 = vpop.f32.mrb[0].mxu1 }
  0xe9   : > { %v623_v40 = vadd.f32 %v975_v39, %v901_v38  ;;  %v614_v41 = vpop.f32.mrb[1].mxu1 }
  0xea   : > { %v615_v42 = vadd.f32 %v901_v38, %v614_v41  ;;  %v976_v43 = vpop.f32.mrb[2].mxu1 }
  0xeb   : > { %v939_v45 = vpack.c.bf16 %v623_v40, %v623_v40  ;;  %v626_v46 = vadd.f32 %v976_v43, %v901_v38  ;;  %v617_v47 = vpop.f32.mrb[3].mxu1 }
  0xec   : > { %v937_v48 = vpack.c.bf16 %v615_v42, %v615_v42  ;;  %v963_v49 = vpop.f32.mrb[0].mxu0  ;;  %v618_v50 = vadd.f32 %v901_v38, %v617_v47 }
  0xed   : > { %720 = vst.msk [vmem:[%s1137_s14 + $0x8] sm:$0xf] %vm677_vm1, %v939_v45  ;;  %v940_v51 = vpack.c.bf16 %v626_v46, %v626_v46  ;;  %v519_v52 = vadd.f32 %v963_v49, %v894_v44  ;;  %v510_v53 = vpop.f32.mrb[1].mxu0 }
  0xee   : > { %718 = vst.msk [vmem:[%s1137_s14] sm:$0xf] %vm677_vm1, %v937_v48  ;;  %v938_v54 = vpack.c.bf16 %v618_v50, %v618_v50  ;;  %v511_v55 = vadd.f32 %v894_v44, %v510_v53  ;;  %v964_v56 = vpop.f32.mrb[2].mxu0 }
  0xef   : > { %721 = vst.msk [vmem:[%s1137_s14 + $0xc] sm:$0xf] %vm677_vm1, %v940_v51  ;;  %v931_v57 = vpack.c.bf16 %v519_v52, %v519_v52  ;;  %v522_v58 = vadd.f32 %v964_v56, %v894_v44  ;;  %v513_v59 = vpop.f32.mrb[3].mxu0 }
  0xf0   : > { %719 = vst.msk [vmem:[%s1137_s14 + $0x4] sm:$0xf] %vm677_vm1, %v938_v54  ;;  %v929_v60 = vpack.c.bf16 %v511_v55, %v511_v55  ;;  %v514_v61 = vadd.f32 %v894_v44, %v513_v59  ;;  %v979_v62 = vpop.f32.mrb[4].mxu1 }
  0xf1   : > { %680 = vst.msk [vmem:[%s1149_s18 + $0x8] sm:$0xf] %vm677_vm1, %v931_v57  ;;  %v932_v63 = vpack.c.bf16 %v522_v58, %v522_v58  ;;  %v639_v0 = vadd.f32 %v979_v62, %v901_v38  ;;  %v630_v1 = vpop.f32.mrb[5].mxu1 }
  0xf2   : > { %678 = vst.msk [vmem:[%s1149_s18] sm:$0xf] %vm677_vm1, %v929_v60  ;;  %v930_v2 = vpack.c.bf16 %v514_v61, %v514_v61  ;;  %v631_v3 = vadd.f32 %v901_v38, %v630_v1  ;;  %v980_v4 = vpop.f32.mrb[6].mxu1 }
  0xf3   : > { %681 = vst.msk [vmem:[%s1149_s18 + $0xc] sm:$0xf] %vm677_vm1, %v932_v63  ;;  %v943_v5 = vpack.c.bf16 %v639_v0, %v639_v0  ;;  %v642_v6 = vadd.f32 %v980_v4, %v901_v38  ;;  %v633_v7 = vpop.f32.mrb[7].mxu1 }
  0xf4   : > { %679 = vst.msk [vmem:[%s1149_s18 + $0x4] sm:$0xf] %vm677_vm1, %v930_v2  ;;  %v941_v8 = vpack.c.bf16 %v631_v3, %v631_v3  ;;  %v967_v9 = vpop.f32.mrb[4].mxu0  ;;  %v634_v10 = vadd.f32 %v901_v38, %v633_v7 }
  0xf5   : > { %724 = vst.msk [vmem:[%s1137_s14 + $0x18] sm:$0xf] %vm677_vm1, %v943_v5  ;;  %v944_v11 = vpack.c.bf16 %v642_v6, %v642_v6  ;;  %v535_v12 = vadd.f32 %v967_v9, %v894_v44  ;;  %v526_v13 = vpop.f32.mrb[5].mxu0 }
  0xf6   : > { %722 = vst.msk [vmem:[%s1137_s14 + $0x10] sm:$0xf] %vm677_vm1, %v941_v8  ;;  %v942_v14 = vpack.c.bf16 %v634_v10, %v634_v10  ;;  %v527_v15 = vadd.f32 %v894_v44, %v526_v13  ;;  %v968_v16 = vpop.f32.mrb[6].mxu0 }
  0xf7   : > { %725 = vst.msk [vmem:[%s1137_s14 + $0x1c] sm:$0xf] %vm677_vm1, %v944_v11  ;;  %v935_v17 = vpack.c.bf16 %v535_v12, %v535_v12  ;;  %v538_v18 = vadd.f32 %v968_v16, %v894_v44  ;;  %v529_v19 = vpop.f32.mrb[7].mxu0 }
  0xf8   : > { %723 = vst.msk [vmem:[%s1137_s14 + $0x14] sm:$0xf] %vm677_vm1, %v942_v14  ;;  %v933_v20 = vpack.c.bf16 %v527_v15, %v527_v15  ;;  %v530_v21 = vadd.f32 %v894_v44, %v529_v19 }
  0xf9   : > { %684 = vst.msk [vmem:[%s1149_s18 + $0x18] sm:$0xf] %vm677_vm1, %v935_v17  ;;  %v936_v22 = vpack.c.bf16 %v538_v18, %v538_v18 }
  0xfa   : > { %682 = vst.msk [vmem:[%s1149_s18 + $0x10] sm:$0xf] %vm677_vm1, %v933_v20  ;;  %v934_v23 = vpack.c.bf16 %v530_v21, %v530_v21 }
  0xfb   : > { %685 = vst.msk [vmem:[%s1149_s18 + $0x1c] sm:$0xf] %vm677_vm1, %v936_v22 }
  0xfc   : > { %683 = vst.msk [vmem:[%s1149_s18 + $0x14] sm:$0xf] %vm677_vm1, %v934_v23 }
  0xfd PF: > { %s19_s29 = sadd.s32 1, %s1031_s29   ;;  %s1197_s27 = smov %s1027_s28 }
  0xfe   : > { %p16_p5 = scmp.ge.s32.totalorder %s19_s29, 4   ;;  %s1198_s28 = smov %s1200_s30 }
 0x100   :  { %18 = sbr.rel (!%p16_p5) target bundleno = 2 (0x2), region = 96 }

// kernel: transform_net_forward.6
= control target key start
LH: loop header
LB: loop body
LE: loop exit
PB: predicated region body
PF: predicated region fallthrough
CT: control target
= control target key end

     0   :  { %s1501_s30 = smov 0   ;;  %s1503_s10 = smov 0   ;;  %s1702_s0 = inlined_call_operand.vmem [shape: f32[2,64,32], index: 0, kind: input, shape index: {}]   ;;  %s1703_s1 = inlined_call_operand.vmem [shape: f32[2,1,32], index: 1, kind: input, shape index: {}]   ;;  %s1704_s2 = inlined_call_operand.vmem [shape: f32[2,1,32], index: 2, kind: input, shape index: {}]   ;;  %s1705_s3 = inlined_call_operand.vmem [shape: bf16[32,32], index: 3, kind: input, shape index: {}]   ;;  %s1706_s4 = inlined_call_operand.vmem [shape: f32[1,32], index: 4, kind: input, shape index: {}]   ;;  %s1707_s5 = inlined_call_operand.vmem [shape: bf16[32,32], index: 5, kind: input, shape index: {}]   ;;  %s1708_s6 = inlined_call_operand.vmem [shape: f32[1,32], index: 6, kind: input, shape index: {}]   ;;  %s1709_s7 = inlined_call_operand.vmem [shape: bf16[2,64,32], index: 7, kind: input, shape index: {}]   ;;  %s1710_s8 = inlined_call_operand.vmem [shape: bf16[2,64,32], index: 8, kind: input, shape index: {}]   ;;  %s1711_s9 = inlined_call_operand.vmem [shape: f32[2,64,32], index: 9, kind: output, shape index: {}]  }
   0x1   :  { %s1505_s11 = smov 0  }
   0x2 LB: > { %s31_s12 = sadd.s32 1, %s1445_s10  ;;  %p1208_p0 = scmp.ge.s32.totalorder %s1449_s11, 1  ;;  %s1449_s11 = sphi %s1505_s11, %s19_s11   ;;  %s1445_s10 = sphi %s1503_s10, %s1713_s10   ;;  %s1441_s30 = sphi %s1501_s30, %s1712_s30  }
   0x3   : > { %p33_p1 = scmp.ge.s32.totalorder %s31_s12, 2  ;;  %p344_p2 = scmp.lt.s32.totalorder %s1449_s11, 3 }
   0x5   : > { %s1715_s12 = smov (%p33_p1, %s31_s12), 0  ;;  %p345_p3 = pnand %p1208_p0, %p344_p2 }
   0x6   : > { %v1367_v0 = vld [vmem:[%s1705_s3] sm:$0xff] (!%p345_p3)   ;;  %p405_p4 = scmp.lt.s32.totalorder (!%p345_p3), %s1441_s30, 1  ;;  %v1368_v1 = vld [vmem:[%s1705_s3 + $0x8] sm:$0xff] (!%p345_p3)   ;;  %vm506_vm0 = vcmask (!%p345_p3), 261120   ;;  %vm713_vm1 = vcmask (!%p345_p3), 523264  }
   0x7   : > { %348 = sbr.rel (%p345_p3) target bundleno = 1074 (0x432), region = 56  ;;  %1283 = vmatprep.subr.bf16.mxu0 (!%p345_p3), %v1367_v0  ;;  %v1219_v41 = vld [vmem:[%s1706_s4] ss:$0 sm:$0xff] (!%p345_p3) }
   0x8   : > { %1284 = vmatpush3.bf16.msra.mxu0 (!%p345_p3), %v1367_v0 }
   0x9   : > { %1285 = vmatprep.subr.bf16.mxu0 (!%p345_p3), %v1368_v1 }
   0xc   : > { %1286 = vmatpush3.bf16.msra.mxu0 (!%p345_p3), %v1368_v1 }
   0xe   : > { %s1717_s30 = smov (!%p405_p4, %s1441_s30), 1 }
   0xf   : > { %s1251_s17 = sshll.u32 %s1717_s30, 6  ;;  %s416_s20 = scalar_lea.vmem %s1703_s1, %s1717_s30 }
  0x10   : > { %s412_s23 = scalar_lea.vmem %s1702_s0, %s1251_s17  ;;  %s419_s26 = scalar_lea.vmem %s1704_s2, %s1717_s30  ;;  %v1217_v2 = vld [vmem:[%s416_s20] ss:$0 sm:$0xff] }
  0x11   : > { %v1541_v3 = vld [vmem:[%s412_s23] sm:$0xff]  ;;  %v1543_v4 = vld [vmem:[%s412_s23 + $0x8] sm:$0xff]  ;;  %s1252_s27 = sshll.u32 %s1717_s30, 5  ;;  %v1548_v8 = vld [vmem:[%s412_s23 + $0x10] sm:$0xff]  ;;  %s438_s28 = scalar_lea.vmem %s1711_s9, %s1251_s17 }
  0x12   : > { %v1218_v5 = vld [vmem:[%s419_s26] ss:$0 sm:$0xff]  ;;  %v456_v6 = vsub.f32 %v1541_v3, %v1217_v2  ;;  %v457_v7 = vsub.f32 %v1543_v4, %v1217_v2  ;;  %v1550_v9 = vld [vmem:[%s412_s23 + $0x18] sm:$0xff]  ;;  %s1559_s13 = scalar_lea.vmem %s1709_s7, %s1252_s27  ;;  %v458_v11 = vsub.f32 %v1548_v8, %v1217_v2  ;;  %v1563_v13 = vld [vmem:[%s412_s23 + $0x28] sm:$0xff]  ;;  %s1582_s16 = scalar_lea.vmem %s1710_s8, %s1252_s27 }
  0x13   : > { %v1552_v10 = vld [vmem:[%s412_s23 + $0x20] sm:$0xff]  ;;  %v459_v12 = vsub.f32 %v1550_v9, %v1217_v2  ;;  %v1566_v15 = vld [vmem:[%s412_s23 + $0x30] sm:$0xff]  ;;  %v1568_v16 = vld [vmem:[%s412_s23 + $0x38] sm:$0xff]  ;;  %v461_v19 = vsub.f32 %v1563_v13, %v1217_v2 }
  0x14   : > { %v460_v14 = vsub.f32 %v1552_v10, %v1217_v2  ;;  %v471_v17 = vmul.f32 %v1218_v5, %v456_v6  ;;  %v472_v18 = vmul.f32 %v1218_v5, %v457_v7  ;;  %v462_v20 = vsub.f32 %v1566_v15, %v1217_v2  ;;  %v1369_v21 = vld [vmem:[%s1559_s13] sm:$0xff]   ;;  %v1370_v26 = vld [vmem:[%s1559_s13 + $0x8] sm:$0xff]   ;;  %v1371_v35 = vld [vmem:[%s1559_s13 + $0x10] sm:$0xff]  }
  0x15   : > { %v473_v22 = vmul.f32 %v1218_v5, %v458_v11  ;;  %v474_v23 = vmul.f32 %v1218_v5, %v459_v12  ;;  %v463_v25 = vsub.f32 %v1568_v16, %v1217_v2  ;;  %v476_v28 = vmul.f32 %v1218_v5, %v461_v19  ;;  %1339 = vmatprep.subr.msk.bf16.mxu1 %vm506_vm0, %v1369_v21  ;;  %v1372_v38 = vld [vmem:[%s1559_s13 + $0x18] sm:$0xff]  }
  0x16   : > { %v475_v24 = vmul.f32 %v1218_v5, %v460_v14  ;;  %v479_v27 = vpack.c.bf16 %v472_v18, %v471_v17  ;;  %v637_v29 = vsel %vm506_vm0, %v1369_v21, 0  ;;  %v477_v32 = vmul.f32 %v1218_v5, %v462_v20  ;;  %v1373_v21 = vld [vmem:[%s1582_s16] sm:$0xff]  }
  0x17   : > { %v480_v30 = vpack.c.bf16 %v474_v23, %v473_v22  ;;  %1296 = vmatpush3.bf16.xpose.msra.mxu1 %v637_v29  ;;  %v478_v33 = vmul.f32 %v1218_v5, %v463_v25  ;;  %v640_v34 = vsel %vm506_vm0, %v1370_v26, 0  ;;  %v643_v37 = vsel %vm506_vm0, %v1371_v35, 0  ;;  %1311 = vmatprep.subr.bf16.mxu0 %v1373_v21  ;;  %v1374_v22 = vld [vmem:[%s1582_s16 + $0x8] sm:$0xff]   ;;  %v1375_v23 = vld [vmem:[%s1582_s16 + $0x10] sm:$0xff]  }
  0x18   : > { %1287 = vmatprep.mubr.msk.bf16.mxu0 %vm506_vm0, %v479_v27  ;;  %v481_v31 = vpack.c.bf16 %v476_v28, %v475_v24  ;;  %1340 = vmatprep.subr.msk.bf16.mxu1 %vm506_vm0, %v1370_v26  ;;  %v646_v39 = vsel %vm506_vm0, %v1372_v38, 0  ;;  %v1376_v24 = vld [vmem:[%s1582_s16 + $0x18] sm:$0xff]  }
  0x19   : > { %1288 = vmatmul.mubr.msk.bf16.vlgmr.msra.gmra.mrb[0].mxu0 %vm506_vm0, %v480_v30  ;;  %v482_v36 = vpack.c.bf16 %v478_v33, %v477_v32 }
  0x1a   : > { %1291 = vmatprep.mubr.msk.bf16.mxu0 %vm506_vm0, %v481_v31  ;;  %1312 = vmatpush3.bf16.msra.mxu0 %v1373_v21 }
  0x1b   : > { %1313 = vmatprep.subr.bf16.mxu0 %v1374_v22 }
  0x1e   : > { %1314 = vmatpush3.bf16.msra.mxu0 %v1374_v22 }
  0x1f   : > { %1298 = vmatpush3.bf16.xpose.msra.mxu1 %v640_v34  ;;  %1315 = vmatprep.subr.bf16.mxu0 %v1375_v23 }
  0x20   : > { %1341 = vmatprep.subr.msk.bf16.mxu1 %vm506_vm0, %v1371_v35 }
  0x21   : > { %1292 = vmatmul.mubr.msk.bf16.gmra.mrb[4].mxu0 %vm506_vm0, %v482_v36 }
  0x22   : > { %1316 = vmatpush3.bf16.msra.mxu0 %v1375_v23 }
  0x23   : > { %1317 = vmatprep.subr.bf16.mxu0 %v1376_v24 }
  0x26   : > { %1318 = vmatpush3.bf16.msra.mxu0 %v1376_v24 }
  0x27   : > { %1300 = vmatpush3.bf16.xpose.msra.mxu1 %v643_v37 }
  0x28   : > { %1342 = vmatprep.subr.msk.bf16.mxu1 %vm506_vm0, %v1372_v38 }
  0x2f   : > { %1302 = vmatpush3.bf16.xpose.msra.mxu1 %v646_v39 }
  0xec   : > { %v1289_v40 = vpop.f32.mrb[0].mxu0 }
  0xed   : > { %v553_v42 = vpop.f32.mrb[1].mxu0  ;;  %v562_v44 = vadd.f32 %v1289_v40, %v1219_v41 }
  0xee   : > { %v1290_v43 = vpop.f32.mrb[2].mxu0  ;;  %v554_v47 = vadd.f32 %v1219_v41, %v553_v42 }
  0xef   : > { %v565_v45 = vadd.f32 %v1290_v43, %v1219_v41  ;;  %v556_v46 = vpop.f32.mrb[3].mxu0 }
  0xf0   : > { %v557_v48 = vadd.f32 %v1219_v41, %v556_v46 }
  0xf1   : > { %v585_v49 = vpack.c.bf16 %v565_v45, %v562_v44 }
  0xf2   : > { %v584_v50 = vpack.c.bf16 %v557_v48, %v554_v47 }
  0xf4   : > { %v1293_v51 = vpop.f32.mrb[4].mxu0  ;;  %1303 = vmatprep.mubr.msk.bf16.mxu1 %vm506_vm0, %v584_v50 }
  0xf5   : > { %v569_v52 = vpop.f32.mrb[5].mxu0  ;;  %1304 = vmatmul.mubr.msk.bf16.vlgmr.msra.gmra.mrb[0].mxu1 %vm506_vm0, %v585_v49  ;;  %v578_v54 = vadd.f32 %v1293_v51, %v1219_v41 }
  0xf6   : > { %v1294_v53 = vpop.f32.mrb[6].mxu0  ;;  %v570_v57 = vadd.f32 %v1219_v41, %v569_v52 }
  0xf7   : > { %v581_v55 = vadd.f32 %v1294_v53, %v1219_v41  ;;  %v572_v56 = vpop.f32.mrb[7].mxu0 }
  0xf8   : > { %v573_v58 = vadd.f32 %v1219_v41, %v572_v56 }
  0xf9   : > { %v587_v59 = vpack.c.bf16 %v581_v55, %v578_v54 }
  0xfa   : > { %v586_v60 = vpack.c.bf16 %v573_v58, %v570_v57 }
  0xfc   : > { %1307 = vmatprep.mubr.msk.bf16.mxu1 %vm506_vm0, %v586_v60 }
  0xfd   : > { %1308 = vmatmul.mubr.msk.bf16.gmra.mrb[4].mxu1 %vm506_vm0, %v587_v59 }
 0x1c8   : > { %v1305_v61 = vpop.f32.mrb[0].mxu1 }
 0x1c9   : > { %v682_v62 = vpop.f32.mrb[1].mxu1  ;;  %v720_v63 = vsel %vm713_vm1, %v1305_v61, -inf }
 0x1ca   : > { %721 = vmax.xlane.f32.xlu1 %v720_v63  ;;  %v1306_v0 = vpop.f32.mrb[2].mxu1  ;;  %v714_v1 = vsel %vm713_vm1, %v682_v62, -inf }
 0x1cb   : > { %715 = vmax.xlane.f32.xlu0 %v714_v1  ;;  %v685_v2 = vpop.f32.mrb[3].mxu1  ;;  %v723_v5 = vsel %vm713_vm1, %v1306_v0, -inf }
 0x1cc   : > { %v717_v6 = vsel %vm713_vm1, %v685_v2, -inf }
 0x1ce   : > { %724 = vmax.xlane.f32.xlu1 %v723_v5 }
 0x1cf   : > { %718 = vmax.xlane.f32.xlu0 %v717_v6 }
 0x1d0   : > { %v1309_v7 = vpop.f32.mrb[4].mxu1 }
 0x1d1   : > { %v698_v11 = vpop.f32.mrb[5].mxu1  ;;  %v732_v19 = vsel %vm713_vm1, %v1309_v7, -inf }
 0x1d2   : > { %v1310_v12 = vpop.f32.mrb[6].mxu1  ;;  %v726_v14 = vsel %vm713_vm1, %v698_v11, -inf }
 0x1d3   : > { %727 = vmax.xlane.f32.xlu0 %v726_v14  ;;  %v701_v17 = vpop.f32.mrb[7].mxu1  ;;  %v735_v20 = vsel %vm713_vm1, %v1310_v12, -inf }
 0x1d4   : > { %v729_v18 = vsel %vm713_vm1, %v701_v17, -inf }
 0x1d5   : > { %730 = vmax.xlane.f32.xlu1 %v729_v18 }
 0x1d7   : > { %733 = vmax.xlane.f32.xlu0 %v732_v19 }
 0x1d9   : > { %736 = vmax.xlane.f32.xlu1 %v735_v20 }
 0x257   : > { %v1615_v25 = vpop.xlane.xlu1 %721 }
 0x258   : > { %v764_v26 = vsub.f32 %v1305_v61, %v1615_v25  ;;  %v1618_v27 = vpop.xlane.xlu0 %715 }
 0x259   : > { %v762_v28 = vsub.f32 %v682_v62, %v1618_v27  ;;  %v738_v14 = vsub.f32 -inf, %v1618_v27 }
 0x25a   : > { %v774_v31 = vmul.f32 1.442695, %v764_v26 }
 0x25b   : > { %v770_v29 = vmul.f32 1.442695, %v762_v28  ;;  %v1621_v30 = vpop.xlane.xlu1 %724  ;;  %v746_v20 = vmul.f32 1.442695, %v738_v14 }
 0x25c   : > { %v765_v32 = vsub.f32 %v1306_v0, %v1621_v30  ;;  %v1624_v33 = vpop.xlane.xlu0 %718 }
 0x25d   : > { %v763_v34 = vsub.f32 %v685_v2, %v1624_v33  ;;  %1379 = vpow2.f32 %v770_v29  ;;  %v739_v18 = vsub.f32 -inf, %v1624_v33 }
 0x25e   : > { %v776_v35 = vmul.f32 1.442695, %v765_v32  ;;  %1381 = vpow2.f32 %v774_v31 }
 0x25f   : > { %v772_v36 = vmul.f32 1.442695, %v763_v34  ;;  %v748_v22 = vmul.f32 1.442695, %v739_v18 }
 0x260   : > { %v1627_v37 = vpop.xlane.xlu0 %727  ;;  %1383 = vpow2.f32 %v776_v35 }
 0x261   : > { %v766_v38 = vsub.f32 %v698_v11, %v1627_v37  ;;  %1385 = vpow2.f32 %v772_v36  ;;  %v1378_v11 = vld [vmem:[%s1707_s5 + $0x8] sm:$0xff]   ;;  %v742_v23 = vsub.f32 -inf, %v1627_v37 }
 0x262   : > { %v1630_v39 = vpop.xlane.xlu1 %730 }
 0x263   : > { %v778_v40 = vmul.f32 1.442695, %v766_v38  ;;  %v767_v41 = vsub.f32 %v701_v17, %v1630_v39  ;;  %v741_v17 = vsub.f32 -inf, %v1621_v30  ;;  %v754_v28 = vmul.f32 1.442695, %v742_v23 }
 0x264   : > { %v1633_v42 = vpop.xlane.xlu0 %733 }
 0x265   : > { %v768_v43 = vsub.f32 %v1309_v7, %v1633_v42  ;;  %1387 = vpow2.f32 %v778_v40  ;;  %v780_v44 = vmul.f32 1.442695, %v767_v41  ;;  %v1377_v7 = vld [vmem:[%s1707_s5] sm:$0xff]   ;;  %v752_v21 = vmul.f32 1.442695, %v741_v17 }
 0x266   : > { %v1636_v45 = vpop.xlane.xlu1 %736  ;;  %1327 = vmatprep.subr.bf16.mxu0 %v1377_v7  ;;  %v744_v24 = vsub.f32 -inf, %v1633_v42 }
 0x267   : > { %v782_v46 = vmul.f32 1.442695, %v768_v43  ;;  %1389 = vpow2.f32 %v780_v44  ;;  %v769_v47 = vsub.f32 %v1310_v12, %v1636_v45  ;;  %v1380_v48 = vpop.eup %1379  ;;  %v740_v12 = vsub.f32 -inf, %v1615_v25 }
 0x268   : > { %v1382_v49 = vpop.eup %1381  ;;  %v794_v51 = vsel %vm713_vm1, %v1380_v48, 0.0  ;;  %v745_v26 = vsub.f32 -inf, %v1636_v45  ;;  %v743_v25 = vsub.f32 -inf, %v1630_v39  ;;  %v758_v30 = vmul.f32 1.442695, %v744_v24 }
 0x269   : > { %1391 = vpow2.f32 %v782_v46  ;;  %v784_v50 = vmul.f32 1.442695, %v769_v47  ;;  %795 = vadd.xlane.f32.xlu0 %v794_v51  ;;  %v800_v55 = vsel %vm713_vm1, %v1382_v49, 0.0  ;;  %v750_v19 = vmul.f32 1.442695, %v740_v12 }
 0x26a   : > { %v1384_v52 = vpop.eup %1383  ;;  %v760_v31 = vmul.f32 1.442695, %v745_v26  ;;  %v756_v32 = vmul.f32 1.442695, %v743_v25 }
 0x26b   : > { %v827_v53 = vpack.c.bf16 %v1384_v52, %v1382_v49  ;;  %1393 = vpow2.f32 %v784_v50  ;;  %v1386_v54 = vpop.eup %1385  ;;  %v803_v61 = vsel %vm713_vm1, %v1384_v52, 0.0 }
 0x26c   : > { %v797_v56 = vsel %vm713_vm1, %v1386_v54, 0.0  ;;  %v826_v57 = vpack.c.bf16 %v1386_v54, %v1380_v48  ;;  %1395 = vpow2.f32 %v750_v19 }
 0x26d   : > { %801 = vadd.xlane.f32.xlu0 %v800_v55  ;;  %798 = vadd.xlane.f32.xlu1 %v797_v56  ;;  %1397 = vpow2.f32 %v746_v20 }
 0x26e   : > { %1319 = vmatprep.mubr.msk.bf16.mxu0 %vm713_vm1, %v826_v57  ;;  %1399 = vpow2.f32 %v752_v21 }
 0x26f   : > { %v1388_v58 = vpop.eup %1387  ;;  %1320 = vmatmul.mubr.msk.bf16.vlgmr.msra.gmra.mrb[8].mxu0 %vm713_vm1, %v827_v53  ;;  %1401 = vpow2.f32 %v748_v22 }
 0x270   : > { %v806_v59 = vsel %vm713_vm1, %v1388_v58, 0.0  ;;  %1328 = vmatpush3.bf16.msra.mxu0 %v1377_v7  ;;  %1403 = vpow2.f32 %v754_v28 }
 0x271   : > { %v1390_v60 = vpop.eup %1389  ;;  %807 = vadd.xlane.f32.xlu0 %v806_v59  ;;  %804 = vadd.xlane.f32.xlu1 %v803_v61  ;;  %1405 = vpow2.f32 %v758_v30 }
 0x272   : > { %v828_v62 = vpack.c.bf16 %v1390_v60, %v1388_v58  ;;  %v809_v2 = vsel %vm713_vm1, %v1390_v60, 0.0  ;;  %1329 = vmatprep.subr.bf16.mxu0 %v1378_v11  ;;  %1407 = vpow2.f32 %v760_v31 }
 0x273   : > { %v1392_v63 = vpop.eup %1391  ;;  %1409 = vpow2.f32 %v756_v32 }
 0x274   : > { %1323 = vmatprep.mubr.msk.bf16.mxu0 %vm713_vm1, %v828_v62  ;;  %v812_v0 = vsel %vm713_vm1, %v1392_v63, 0.0  ;;  %1330 = vmatpush3.bf16.msra.mxu0 %v1378_v11 }
 0x275   : > { %v1394_v1 = vpop.eup %1393  ;;  %813 = vadd.xlane.f32.xlu0 %v812_v0  ;;  %810 = vadd.xlane.f32.xlu1 %v809_v2 }
 0x276   : > { %v829_v5 = vpack.c.bf16 %v1394_v1, %v1392_v63  ;;  %v815_v6 = vsel %vm713_vm1, %v1394_v1, 0.0  ;;  %v1396_v34 = vpop.eup %1395 }
 0x277   : > { %v1398_v36 = vpop.eup %1397  ;;  %v788_v40 = vmul.f32 0.0, %v1396_v34 }
 0x278   : > { %1324 = vmatmul.mubr.msk.bf16.gmra.mrb[12].mxu0 %vm713_vm1, %v829_v5  ;;  %v1400_v37 = vpop.eup %1399  ;;  %v786_v41 = vmul.f32 0.0, %v1398_v36 }
 0x279   : > { %816 = vadd.xlane.f32.xlu1 %v815_v6  ;;  %v1402_v38 = vpop.eup %1401  ;;  %v789_v43 = vmul.f32 0.0, %v1400_v37 }
 0x27a   : > { %v787_v45 = vmul.f32 0.0, %v1402_v38  ;;  %v1404_v48 = vpop.eup %1403 }
 0x27b   : > { %v1406_v50 = vpop.eup %1405  ;;  %v790_v53 = vmul.f32 0.0, %v1404_v48 }
 0x27c   : > { %v1408_v51 = vpop.eup %1407  ;;  %v792_v55 = vmul.f32 0.0, %v1406_v50 }
 0x27d   : > { %v1410_v52 = vpop.eup %1409  ;;  %v793_v58 = vmul.f32 0.0, %v1408_v51 }
 0x27e   : > { %v791_v60 = vmul.f32 0.0, %v1410_v52 }
 0x2f6   : > { %v796_v27 = vpop.xlane.xlu0 %795 }
 0x2f7   : > { %v818_v44 = vadd.f32 %v796_v27, %v786_v41 }
 0x2fa   : > { %v799_v29 = vpop.xlane.xlu1 %798  ;;  %v802_v33 = vpop.xlane.xlu0 %801 }
 0x2fb   : > { %v820_v42 = vadd.f32 %v802_v33, %v788_v40  ;;  %v819_v49 = vadd.f32 %v799_v29, %v787_v45 }
 0x2fd   : > { %1411 = vrcp.f32 %v820_v42 }
 0x2fe   : > { %v805_v35 = vpop.xlane.xlu1 %804  ;;  %v808_v39 = vpop.xlane.xlu0 %807  ;;  %1413 = vrcp.f32 %v818_v44 }
 0x2ff   : > { %v821_v47 = vadd.f32 %v805_v35, %v789_v43  ;;  %v822_v57 = vadd.f32 %v808_v39, %v790_v53 }
 0x301   : > { %1415 = vrcp.f32 %v821_v47 }
 0x302   : > { %v811_v46 = vpop.xlane.xlu1 %810  ;;  %v814_v54 = vpop.xlane.xlu0 %813  ;;  %1417 = vrcp.f32 %v819_v49 }
 0x303   : > { %v824_v59 = vadd.f32 %v814_v54, %v792_v55  ;;  %v823_v62 = vadd.f32 %v811_v46, %v791_v60  ;;  %1419 = vrcp.f32 %v822_v57 }
 0x305   : > { %1421 = vrcp.f32 %v824_v59 }
 0x306   : > { %v817_v56 = vpop.xlane.xlu1 %816 }
 0x307   : > { %v825_v61 = vadd.f32 %v817_v56, %v793_v58  ;;  %v1412_v2 = vpop.eup %1411 }
 0x308   : > { %v1414_v7 = vpop.eup %1413 }
 0x309   : > { %1423 = vrcp.f32 %v825_v61 }
 0x30a   : > { %1425 = vrcp.f32 %v823_v62 }
 0x30b   : > { %v1416_v17 = vpop.eup %1415 }
 0x30c   : > { %v1418_v20 = vpop.eup %1417 }
 0x30d   : > { %v1420_v28 = vpop.eup %1419 }
 0x30f   : > { %v1422_v31 = vpop.eup %1421 }
 0x313   : > { %v1424_v34 = vpop.eup %1423 }
 0x314   : > { %v1426_v37 = vpop.eup %1425 }
 0x342   : > { %v1321_v63 = vpop.f32.mrb[8].mxu0 }
 0x343   : > { %v933_v0 = vadd.f32 %v1321_v63, %v788_v40  ;;  %v900_v1 = vpop.f32.mrb[9].mxu0 }
 0x344   : > { %v931_v5 = vadd.f32 %v900_v1, %v786_v41  ;;  %v1322_v6 = vpop.f32.mrb[10].mxu0 }
 0x345   : > { %v949_v11 = vmul.f32 %v1412_v2, %v933_v0  ;;  %v934_v12 = vadd.f32 %v1322_v6, %v789_v43  ;;  %v903_v14 = vpop.f32.mrb[11].mxu0  ;;  %v1242_v43 = vld [vmem:[%s1708_s6] ss:$0 sm:$0xff] }
 0x346   : > { %v947_v18 = vmul.f32 %v1414_v7, %v931_v5  ;;  %v932_v19 = vadd.f32 %v903_v14, %v787_v45 }
 0x347   : > { %v950_v21 = vmul.f32 %v1416_v17, %v934_v12 }
 0x348   : > { %v948_v22 = vmul.f32 %v1418_v20, %v932_v19 }
 0x349   : > { %v956_v23 = vpack.c.bf16 %v950_v21, %v949_v11 }
 0x34a   : > { %v955_v24 = vpack.c.bf16 %v948_v22, %v947_v18 }
 0x34b   : > { %v1325_v26 = vpop.f32.mrb[12].mxu0 }
 0x34c   : > { %v937_v25 = vadd.f32 %v1325_v26, %v792_v55  ;;  %v916_v27 = vpop.f32.mrb[13].mxu0  ;;  %1331 = vmatprep.mubr.msk.bf16.mxu0 %vm506_vm0, %v955_v24 }
 0x34d   : > { %v935_v29 = vadd.f32 %v916_v27, %v790_v53  ;;  %v1326_v30 = vpop.f32.mrb[14].mxu0  ;;  %1332 = vmatmul.mubr.msk.bf16.vlgmr.msra.gmra.mrb[16].mxu0 %vm506_vm0, %v956_v23 }
 0x34e   : > { %v938_v32 = vadd.f32 %v1326_v30, %v793_v58  ;;  %v919_v33 = vpop.f32.mrb[15].mxu0  ;;  %v953_v38 = vmul.f32 %v1422_v31, %v937_v25 }
 0x34f   : > { %v951_v35 = vmul.f32 %v1420_v28, %v935_v29  ;;  %v936_v36 = vadd.f32 %v919_v33, %v791_v60 }
 0x350   : > { %v954_v40 = vmul.f32 %v1424_v34, %v938_v32 }
 0x351   : > { %v952_v41 = vmul.f32 %v1426_v37, %v936_v36 }
 0x352   : > { %v958_v42 = vpack.c.bf16 %v954_v40, %v953_v38 }
 0x353   : > { %v957_v39 = vpack.c.bf16 %v952_v41, %v951_v35 }
 0x355   : > { %1335 = vmatprep.mubr.msk.bf16.mxu0 %vm506_vm0, %v957_v39 }
 0x356   : > { %1336 = vmatmul.mubr.msk.bf16.gmra.mrb[20].mxu0 %vm506_vm0, %v958_v42 }
 0x420   : > { %v1333_v44 = vpop.f32.mrb[16].mxu0 }
 0x421   : > { %v1037_v45 = vadd.f32 %v1333_v44, %v1242_v43  ;;  %v1028_v46 = vpop.f32.mrb[17].mxu0 }
 0x422   : > { %v1029_v47 = vadd.f32 %v1242_v43, %v1028_v46  ;;  %v1334_v48 = vpop.f32.mrb[18].mxu0 }
 0x423   : > { %v1061_v49 = vadd.f32 %v1037_v45, %v1548_v8  ;;  %v1040_v50 = vadd.f32 %v1334_v48, %v1242_v43  ;;  %v1031_v51 = vpop.f32.mrb[19].mxu0 }
 0x424   : > { %v1059_v52 = vadd.f32 %v1029_v47, %v1541_v3  ;;  %v1032_v53 = vadd.f32 %v1242_v43, %v1031_v51 }
 0x425   : > { %1069 = vst.msk [vmem:[%s438_s28 + $0x10] sm:$0xff] %vm506_vm0, %v1061_v49  ;;  %v1062_v54 = vadd.f32 %v1040_v50, %v1550_v9 }
 0x426   : > { %1067 = vst.msk [vmem:[%s438_s28] sm:$0xff] %vm506_vm0, %v1059_v52  ;;  %v1060_v55 = vadd.f32 %v1032_v53, %v1543_v4 }
 0x427   : > { %1070 = vst.msk [vmem:[%s438_s28 + $0x18] sm:$0xff] %vm506_vm0, %v1062_v54 }
 0x428   : > { %1068 = vst.msk [vmem:[%s438_s28 + $0x8] sm:$0xff] %vm506_vm0, %v1060_v55 }
 0x429   : > { %v1337_v56 = vpop.f32.mrb[20].mxu0 }
 0x42a   : > { %v1053_v57 = vadd.f32 %v1337_v56, %v1242_v43  ;;  %v1044_v8 = vpop.f32.mrb[21].mxu0 }
 0x42b   : > { %v1045_v58 = vadd.f32 %v1242_v43, %v1044_v8  ;;  %v1338_v59 = vpop.f32.mrb[22].mxu0 }
 0x42c   : > { %v1065_v3 = vadd.f32 %v1053_v57, %v1566_v15  ;;  %v1056_v60 = vadd.f32 %v1338_v59, %v1242_v43  ;;  %v1047_v61 = vpop.f32.mrb[23].mxu0 }
 0x42d   : > { %v1063_v62 = vadd.f32 %v1045_v58, %v1552_v10  ;;  %v1048_v9 = vadd.f32 %v1242_v43, %v1047_v61 }
 0x42e   : > { %1073 = vst.msk [vmem:[%s438_s28 + $0x30] sm:$0xff] %vm506_vm0, %v1065_v3  ;;  %v1066_v4 = vadd.f32 %v1056_v60, %v1568_v16 }
 0x42f   : > { %1071 = vst.msk [vmem:[%s438_s28 + $0x20] sm:$0xff] %vm506_vm0, %v1063_v62  ;;  %v1064_v63 = vadd.f32 %v1048_v9, %v1563_v13 }
 0x430   : > { %1074 = vst.msk [vmem:[%s438_s28 + $0x38] sm:$0xff] %vm506_vm0, %v1066_v4 }
 0x431   : > { %1072 = vst.msk [vmem:[%s438_s28 + $0x28] sm:$0xff] %vm506_vm0, %v1064_v63 }
 0x432 PF: > { %s19_s11 = sadd.s32 1, %s1449_s11   ;;  %s1712_s30 = smov %s1445_s10 }
 0x433   : > { %p16_p5 = scmp.ge.s32.totalorder %s19_s11, 4   ;;  %s1713_s10 = smov %s1715_s12 }
 0x435   :  { %18 = sbr.rel (!%p16_p5) target bundleno = 2 (0x2), region = 98 }

// kernel: transform_net_forward.9
= control target key start
LH: loop header
LB: loop body
LE: loop exit
PB: predicated region body
PF: predicated region fallthrough
CT: control target
= control target key end

     0   :  { %8 = vsyncpa [#allocation3], 0  ;;  %s3170_s0 = inlined_call_operand.vmem [shape: bf16[2,10,10,32], index: 0, kind: input, shape index: {}]   ;;  %s3171_s1 = inlined_call_operand.vmem [shape: bf16[3,3,32,32], index: 1, kind: input, shape index: {}]   ;;  %s3172_s2 = inlined_call_operand.vmem [shape: f32[1,32], index: 2, kind: input, shape index: {}]   ;;  %s3173_s3 = inlined_call_operand.hbm [shape: f32[2,8,8,32], index: 3, kind: output, shape index: {}]  }
   0x1   :  { %10 = vsyncpa [#allocation3 + $0x1], 0  ;;  %s2476_s12 = smov 0   ;;  %s2478_s13 = smov 0  }
   0x2   :  { %s2480_s14 = smov 0   ;;  %s2482_s15 = smov 0  }
   0x3   :  { %s2484_s16 = smov 0   ;;  %s2486_s17 = smov 0  }
   0x4 LB: > { %s1863_s18 = sadd.s32 4294967295, %s2451_s17   ;;  %s1864_s19 = sadd.s32 4294967294, %s2451_s17   ;;  %s2451_s17 = sphi %s2486_s17, %s16_s17   ;;  %s2447_s16 = sphi %s2484_s16, %s3193_s16   ;;  %s2443_s15 = sphi %s2482_s15, %s3192_s15   ;;  %s2439_s14 = sphi %s2480_s14, %s3191_s14   ;;  %s2435_s13 = sphi %s2478_s13, %s3190_s13   ;;  %s2431_s12 = sphi %s2476_s12, %s3189_s12  }
   0x5   : > { %s28_s20 = sadd.s32 1, %s2447_s16  ;;  %s105_s21 = sadd.s32 1, %s2439_s14 }
   0x6   : > { %p30_p0 = scmp.ge.s32.totalorder %s28_s20, 2  ;;  %p115_p1 = scmp.ne.s32.totalorder %s2439_s14, %s2435_s13 }
   0x7   : > { %p116_p2 = scmp.eq.s32.totalorder %s1863_s18, 1  ;;  %p121_p3 = scmp.ne.s32.totalorder %s2435_s13, %s2431_s12 }
   0x8   : > { %s3195_s20 = smov (%p30_p0, %s28_s20), 0  ;;  %p122_p5 = scmp.eq.s32.totalorder %s1864_s19, 1 }
   0x9   : > { %p2516_p4 = por %p116_p2, %p115_p1  ;;  %s100_s23 = ssub.s32 %s2447_s16, %s3195_s20 }
   0xa   : > { %p1867_p6 = scmp.ge.s32.totalorder %s2451_s17, 1  ;;  %p103_p7 = scmp.eq.s32.totalorder %s100_s23, 0 }
   0xb   : > { %p2523_p8 = por %p122_p5, %p121_p3  ;;  %p154_p9 = scmp.lt.s32.totalorder %s2451_s17, 3 }
   0xc   : > { %s2529_s25 = scalar_select %p103_p7, %s2439_s14, %s105_s21  }
   0xd   : > { %p155_p10 = pnand %p1867_p6, %p154_p9 }
   0xe   : > { %v2343_v0 = vld [vmem:[%s3171_s1 + $0x10] sm:$0xff] (!%p155_p10)   ;;  %p178_p11 = scmp.lt.s32.totalorder (!%p155_p10), %s2443_s15, 1  ;;  %v2538_v1 = vld [vmem:[%s3171_s1 + $0x40] sm:$0xff] (!%p155_p10)   ;;  %v2345_v2 = vld [vmem:[%s3171_s1 + $0x18] sm:$0xff] (!%p155_p10)   ;;  %vm209_vm0 = vsmask.f32 (!%p155_p10), 3328 }
   0xf   : > { %158 = sbr.rel (%p155_p10) target bundleno = 358 (0x166), region = 32  ;;  %2109 = vmatprep.subr.bf16.mxu1 (!%p155_p10), %v2343_v0  ;;  %2157 = vmatprep.subr.bf16.mxu0 (!%p155_p10), %v2538_v1  ;;  %v2548_v3 = vld [vmem:[%s3171_s1 + $0x48] sm:$0xff] (!%p155_p10)   ;;  %v2554_v4 = vld [vmem:[%s3171_s1] sm:$0xff] (!%p155_p10)   ;;  %v2565_v5 = vld [vmem:[%s3171_s1 + $0x50] sm:$0xff] (!%p155_p10)   ;;  %vm210_vm1 = vsmask.f32 (!%p155_p10), 7440 }
  0x10   : > { %2110 = vmatpush3.bf16.msra.mxu1 (!%p155_p10), %v2343_v0  ;;  %2158 = vmatpush3.bf16.msra.mxu0 (!%p155_p10), %v2538_v1  ;;  %vm2605_vm2 = vmor (!%p155_p10), %vm209_vm0, %vm210_vm1  ;;  %vm353_vm3 = vcmask (!%p155_p10), 261120   ;;  %vm548_vm4 = vcmask (!%p155_p10), 1042432   ;;  %vm549_vm5 = vcmask (!%p155_p10), 1046532   ;;  %s175_s6 = sand.u32 (!%p155_p10), 1, %s2435_s13   ;;  %s2054_s11 = sshll.u32 (!%p155_p10), %s2443_s15, 10 }
  0x11   : > { %2111 = vmatprep.subr.bf16.mxu1 (!%p155_p10), %v2345_v2  ;;  %2159 = vmatprep.subr.bf16.mxu0 (!%p155_p10), %v2548_v3  ;;  %vm2720_vm6 = vmor (!%p155_p10), %vm548_vm4, %vm549_vm5  ;;  %s1868_s7 = sshll.u32 (!%p155_p10), %s175_s6, 6  ;;  %s3115_s26 = scalar_lea.hbm (!%p155_p10), %s3173_s3, %s2054_s11 }
  0x12   : > { %s177_s10 = scalar_lea.vmem (!%p155_p10), [#allocation2], %s1868_s7  ;;  %s2453_s28 = smov (!%p155_p10), [#allocation2]  }
  0x13   : > { %s1780_s18 = sshll.u32 (!%p155_p10), %s177_s10, 4  ;;  %s2377_s29 = sshll.u32 (!%p155_p10), %s2453_s28, 4  ;;  %s3117_s18 = int_to_ptr.vmem [resolvable:$true] %s1780_s18  ;;  %s2378_s29 = int_to_ptr.vmem [resolvable:$false] %s2377_s29 }
  0x14   : > { %2112 = vmatpush3.bf16.msra.mxu1 (!%p155_p10), %v2345_v2  ;;  %2160 = vmatpush3.bf16.msra.mxu0 (!%p155_p10), %v2548_v3  ;;  %s2373_s27 = scalar_lea.vmem (!%p155_p10), %s3117_s18, 1024  ;;  %s2379_s30 = scalar_lea.vmem (!%p155_p10), %s2378_s29, 2048 }
  0x15   : > { %2121 = vmatprep.subr.bf16.mxu1 (!%p155_p10), %v2554_v4  ;;  %2169 = vmatprep.subr.bf16.mxu0 (!%p155_p10), %v2565_v5  ;;  %p2374_p12 = scmp.ne.s32.totalorder (!%p155_p10), %s3117_s18, %s2373_s27  ;;  %p2380_p1 = scmp.lt.s32.totalorder (!%p155_p10), %s3117_s18, %s2378_s29 }
  0x16   : > { %s179_s5 = scalar_select %p178_p11, %s2443_s15, 1 }
  0x17   : > { %s3124_s15 = scalar_lea.sflag [#allocation3], %s175_s6  ;;  %p2375_p13 = pnand %p2374_p12, %p2516_p4 }
  0x18   : > { %s2285_s8 = smul.u32 80, %s179_s5  ;;  %p2381_p2 = scmp.lt.s32.totalorder %s2379_s30, %s2373_s27 }
  0x19   : > { %p2376_p0 = pneg %p2375_p13 }
  0x1a   : > { %s2560_s19 = scalar_lea.vmem %s3170_s0, %s2285_s8  ;;  %p2382_p3 = por %p2381_p2, %p2380_p1 }
  0x1b   : > { %v2568_v6 = vld [vmem:[%s2560_s19] sm:$0xf]  ;;  %v2571_v7 = vld [vmem:[%s2560_s19 + $0x4] sm:$0x1]  ;;  %v2574_v8 = vld [vmem:[%s2560_s19 + $0x8] sm:$0xf] }
  0x1c   : > { %v2578_v9 = vld [vmem:[%s2560_s19 + $0xc] sm:$0x1]  ;;  %v213_v10 = vshrl.u32 %v2568_v6, 16  ;;  %v216_v11 = vshll.u32 %v2568_v6, 16  ;;  %v222_v12 = vshll.u32 %v2571_v7, 16  ;;  %v227_v13 = vshrl.u32 %v2574_v8, 16  ;;  %p2383_p5 = pnand %p2382_p3, %p2376_p0 }
  0x1d   : > { %v230_v14 = vshll.u32 %v2574_v8, 16  ;;  %v236_v15 = vshll.u32 %v2578_v9, 16  ;;  %v2588_v16 = vld [vmem:[%s2560_s19 + $0x8] sm:$0xf]  ;;  %v2592_v21 = vld [vmem:[%s2560_s19 + $0xc] sm:$0x1] }
  0x1e   : > { %v215_v17 = vrot.slane %v213_v10, 4  ;;  %v218_v18 = vrot.slane %v216_v11, 5  ;;  %v224_v19 = vrot.slane %v222_v12, 5  ;;  %v229_v20 = vrot.slane %v227_v13, 4  ;;  %v2595_v24 = vld [vmem:[%s2560_s19 + $0x10] sm:$0xf] }
  0x1f   : > { %v232_v22 = vrot.slane %v230_v14, 5  ;;  %v238_v23 = vrot.slane %v236_v15, 5  ;;  %v2598_v25 = vld [vmem:[%s2560_s19 + $0x14] sm:$0x1]  ;;  %v840_v27 = vshrl.u32 %v2588_v16, 16  ;;  %v843_v28 = vshll.u32 %v2588_v16, 16 }
  0x20   : > { %v219_v26 = vor.u32 %v218_v18, %v215_v17  ;;  %v849_v29 = vshll.u32 %v2592_v21, 16  ;;  %v854_v32 = vshrl.u32 %v2595_v24, 16  ;;  %v857_v33 = vshll.u32 %v2595_v24, 16  ;;  %v2613_v35 = vld [vmem:[%s2560_s19 + $0x10] sm:$0xf] }
  0x21   : > { %v233_v31 = vor.u32 %v232_v22, %v229_v20  ;;  %v863_v34 = vshll.u32 %v2598_v25, 16  ;;  %v842_v37 = vrot.slane %v840_v27, 4  ;;  %v845_v38 = vrot.slane %v843_v28, 5  ;;  %v2616_v39 = vld [vmem:[%s2560_s19 + $0x14] sm:$0x1] }
  0x22   : > { %v220_v36 = vrot.slane %v219_v26, 4  ;;  %v856_v41 = vrot.slane %v854_v32, 4  ;;  %v859_v42 = vrot.slane %v857_v33, 5  ;;  %v2619_v43 = vld [vmem:[%s2560_s19 + $0x18] sm:$0xf]  ;;  %v851_v46 = vrot.slane %v849_v29, 5 }
  0x23   : > { %v234_v40 = vrot.slane %v233_v31, 4  ;;  %v846_v45 = vor.u32 %v845_v38, %v842_v37  ;;  %v865_v47 = vrot.slane %v863_v34, 5  ;;  %v2626_v50 = vld [vmem:[%s2560_s19 + $0x1c] sm:$0x1]  ;;  %v241_v51 = vshrl.u32 %v2613_v35, 16 }
  0x24   : > { %v225_v44 = vsel %vm2605_vm2, %v220_v36, %v224_v19  ;;  %v860_v49 = vor.u32 %v859_v42, %v856_v41  ;;  %v244_v52 = vshll.u32 %v2613_v35, 16  ;;  %v2631_v53 = vld [vmem:[%s2560_s19 + $0x18] sm:$0xf]  ;;  %v250_v56 = vshll.u32 %v2616_v39, 16  ;;  %v2642_v10 = vld [vmem:[%s2560_s19 + $0x1c] sm:$0x1] }
  0x25   : > { %v239_v48 = vsel %vm2605_vm2, %v234_v40, %v238_v23  ;;  %v847_v55 = vrot.slane %v846_v45, 4  ;;  %v255_v57 = vshrl.u32 %v2619_v43, 16  ;;  %v243_v59 = vrot.slane %v241_v51, 4  ;;  %v2647_v15 = vld [vmem:[%s2560_s19 + $0x20] sm:$0xf] }
  0x26   : > { %v1874_v54 = vcombine.low %v225_v44, %v239_v48  ;;  %v861_v58 = vrot.slane %v860_v49, 4  ;;  %v246_v60 = vrot.slane %v244_v52, 5  ;;  %v258_v61 = vshll.u32 %v2619_v43, 16  ;;  %v2650_v17 = vld [vmem:[%s2560_s19 + $0x24] sm:$0x1]  ;;  %v2350_v48 = vld [vmem:[%s3171_s1 + $0x8] sm:$0xff]  }
  0x27   : > { %v852_v62 = vsel %vm2605_vm2, %v847_v55, %v851_v46  ;;  %v1075_v63 = vrot.slane %v2592_v21, 5  ;;  %v257_v0 = vrot.slane %v255_v57, 4  ;;  %v264_v2 = vshll.u32 %v2626_v50, 16  ;;  %v2655_v23 = vld [vmem:[%s2560_s19 + $0x20] sm:$0xf] }
  0x28   : > { %2113 = vmatprep.mubr.msk.bf16.mxu1 %vm353_vm3, %v1874_v54  ;;  %v866_v11 = vsel %vm2605_vm2, %v861_v58, %v865_v47  ;;  %v247_v12 = vor.u32 %v246_v60, %v243_v59  ;;  %v252_v13 = vrot.slane %v250_v56, 5  ;;  %v260_v14 = vrot.slane %v258_v61, 5  ;;  %v2666_v41 = vld [vmem:[%s2560_s19 + $0x24] sm:$0x1]  ;;  %v2670_v47 = vld [vmem:[%s2560_s19 + $0x28] sm:$0xf] }
  0x29   : > { %v1950_v18 = vcombine.low %v852_v62, %v866_v11  ;;  %v1079_v19 = vrot.slane %v2598_v25, 5  ;;  %v266_v20 = vrot.slane %v264_v2, 5  ;;  %v868_v22 = vshrl.u32 %v2631_v53, 16  ;;  %v2679_v54 = vld [vmem:[%s2560_s19 + $0x2c] sm:$0x1] }
  0x2a   : > { %v248_v26 = vrot.slane %v247_v12, 4  ;;  %v261_v27 = vor.u32 %v260_v14, %v257_v0  ;;  %v871_v28 = vshll.u32 %v2631_v53, 16  ;;  %v877_v29 = vshll.u32 %v2642_v10, 16  ;;  %v2683_v56 = vld [vmem:[%s2560_s19 + $0x30] sm:$0xf] }
  0x2b   : > { %2161 = vmatprep.mubr.msk.bf16.mxu0 %vm353_vm3, %v1950_v18  ;;  %v870_v31 = vrot.slane %v868_v22, 4  ;;  %v882_v32 = vshrl.u32 %v2647_v15, 16  ;;  %v885_v33 = vshll.u32 %v2647_v15, 16  ;;  %v891_v34 = vshll.u32 %v2650_v17, 16  ;;  %v2688_v61 = vld [vmem:[%s2560_s19 + $0x34] sm:$0x1] }
  0x2c   : > { %v253_v36 = vsel %vm2605_vm2, %v248_v26, %v252_v13  ;;  %v262_v37 = vrot.slane %v261_v27, 4  ;;  %v873_v38 = vrot.slane %v871_v28, 5  ;;  %v879_v40 = vrot.slane %v877_v29, 5  ;;  %v2698_v27 = vld [vmem:[%s2560_s19 + $0x38] sm:$0xf] }
  0x2d   : > { %v884_v42 = vrot.slane %v882_v32, 4  ;;  %v887_v44 = vrot.slane %v885_v33, 5  ;;  %v893_v45 = vrot.slane %v891_v34, 5  ;;  %v1083_v46 = vrot.slane %v2642_v10, 5  ;;  %v2704_v33 = vld [vmem:[%s2560_s19 + $0x3c] sm:$0x1] }
  0x2e   : > { %v267_v49 = vsel %vm2605_vm2, %v262_v37, %v266_v20  ;;  %v874_v51 = vor.u32 %v873_v38, %v870_v31  ;;  %v1087_v52 = vrot.slane %v2650_v17, 5  ;;  %v269_v55 = vshrl.u32 %v2655_v23, 16  ;;  %v2349_v37 = vld [vmem:[%s3171_s1 + $0x58] sm:$0xff]  }
  0x2f   : > { %v1875_v57 = vcombine.low %v253_v36, %v267_v49  ;;  %v888_v58 = vor.u32 %v887_v44, %v884_v42  ;;  %v272_v59 = vshll.u32 %v2655_v23, 16  ;;  %v278_v60 = vshll.u32 %v2666_v41, 16 }
  0x30   : > { %v875_v62 = vrot.slane %v874_v51, 4  ;;  %v271_v0 = vrot.slane %v269_v55, 4  ;;  %v283_v2 = vshrl.u32 %v2670_v47, 16  ;;  %v286_v11 = vshll.u32 %v2670_v47, 16 }
  0x31   : > { %2114 = vmatmul.mubr.msk.bf16.vlgmr.msra.gmra.mrb[0].mxu1 %vm353_vm3, %v1875_v57  ;;  %v889_v12 = vrot.slane %v888_v58, 4  ;;  %v274_v13 = vrot.slane %v272_v59, 5  ;;  %v280_v14 = vrot.slane %v278_v60, 5  ;;  %v292_v18 = vshll.u32 %v2679_v54, 16 }
  0x32   : > { %2122 = vmatpush3.bf16.msra.mxu1 %v2554_v4  ;;  %v880_v20 = vsel %vm2605_vm2, %v875_v62, %v879_v40  ;;  %v285_v22 = vrot.slane %v283_v2, 4  ;;  %v288_v26 = vrot.slane %v286_v11, 5  ;;  %v297_v28 = vshrl.u32 %v2683_v56, 16  ;;  %v2710_v4 = vld [vmem:[%s3171_s1 + $0x20] sm:$0xff]  }
  0x33   : > { %v894_v29 = vsel %vm2605_vm2, %v889_v12, %v893_v45  ;;  %v275_v31 = vor.u32 %v274_v13, %v271_v0  ;;  %v294_v32 = vrot.slane %v292_v18, 5  ;;  %2123 = vmatprep.subr.bf16.mxu1 %v2350_v48  ;;  %v300_v34 = vshll.u32 %v2683_v56, 16  ;;  %v2351_v62 = vld [vmem:[%s3171_s1 + $0x60] sm:$0xff]   ;;  %v2735_v13 = vld [vmem:[%s2560_s19 + $0x28] sm:$0xf] }
  0x34   : > { %v1951_v36 = vcombine.low %v880_v20, %v894_v29  ;;  %v289_v38 = vor.u32 %v288_v26, %v285_v22  ;;  %v299_v40 = vrot.slane %v297_v28, 4  ;;  %v306_v42 = vshll.u32 %v2688_v61, 16  ;;  %v2748_v22 = vld [vmem:[%s2560_s19 + $0x30] sm:$0xf] }
  0x35   : > { %v276_v44 = vrot.slane %v275_v31, 4  ;;  %v302_v45 = vrot.slane %v300_v34, 5  ;;  %v311_v49 = vshrl.u32 %v2698_v27, 16  ;;  %v314_v51 = vshll.u32 %v2698_v27, 16  ;;  %v2752_v34 = vld [vmem:[%s2560_s19 + $0x34] sm:$0x1] }
  0x36   : > { %2162 = vmatmul.mubr.msk.bf16.vlgmr.msra.gmra.mrb[0].mxu0 %vm353_vm3, %v1951_v36  ;;  %v290_v57 = vrot.slane %v289_v38, 4  ;;  %v308_v58 = vrot.slane %v306_v42, 5  ;;  %v320_v59 = vshll.u32 %v2704_v33, 16  ;;  %2124 = vmatpush3.bf16.msra.mxu1 %v2350_v48  ;;  %v1960_v60 = vrot.slane %v2588_v16, 9  ;;  %v2738_v48 = vld [vmem:[%s2560_s19 + $0x2c] sm:$0x1] }
  0x37   : > { %2170 = vmatpush3.bf16.msra.mxu0 %v2565_v5  ;;  %v281_v0 = vsel %vm2605_vm2, %v276_v44, %v280_v14  ;;  %v303_v2 = vor.u32 %v302_v45, %v299_v40  ;;  %v313_v11 = vrot.slane %v311_v49, 4  ;;  %v316_v12 = vrot.slane %v314_v51, 5  ;;  %2133 = vmatprep.subr.bf16.mxu1 %v2710_v4  ;;  %v2780_v45 = vld [vmem:[%s2560_s19 + $0x38] sm:$0xf] }
  0x38   : > { %2171 = vmatprep.subr.bf16.mxu0 %v2349_v37  ;;  %v295_v18 = vsel %vm2605_vm2, %v290_v57, %v294_v32  ;;  %v322_v20 = vrot.slane %v320_v59, 5  ;;  %v1076_v5 = vsel %vm2720_vm6, %v1960_v60, %v1075_v63  ;;  %v1961_v14 = vrot.slane %v2595_v24, 9  ;;  %v2787_v57 = vld [vmem:[%s2560_s19 + $0x3c] sm:$0x1]  ;;  %v2793_v59 = vld [vmem:[%s2560_s19 + $0x44] sm:$0x1] }
  0x39   : > { %v1876_v26 = vcombine.low %v281_v0, %v295_v18  ;;  %v304_v28 = vrot.slane %v303_v2, 4  ;;  %v317_v29 = vor.u32 %v316_v12, %v313_v11  ;;  %v1962_v31 = vrot.slane %v2631_v53, 9  ;;  %v2355_v2 = vld [vmem:[%s3171_s1 + $0x68] sm:$0xff]  }
  0x3a   : > { %v1080_v32 = vsel %vm2720_vm6, %v1961_v14, %v1079_v19  ;;  %v1963_v21 = vrot.slane %v2647_v15, 9  ;;  %v1964_v63 = vrot.slane %v2735_v13, 9  ;;  %v1965_v42 = vrot.slane %v2748_v22, 9  ;;  %v2811_v14 = vld [vmem:[%s2560_s19 + $0x18] sm:$0xf] }
  0x3b   : > { %2172 = vmatpush3.bf16.msra.mxu0 %v2349_v37  ;;  %2117 = vmatprep.mubr.msk.bf16.mxu1 %vm353_vm3, %v1876_v26  ;;  %v309_v36 = vsel %vm2605_vm2, %v304_v28, %v308_v58  ;;  %v318_v38 = vrot.slane %v317_v29, 4  ;;  %v1972_v40 = vcombine.low %v1076_v5, %v1080_v32  ;;  %v1084_v25 = vsel %vm2720_vm6, %v1962_v31, %v1083_v46  ;;  %v2790_v58 = vld [vmem:[%s2560_s19 + $0x40] sm:$0xf] }
  0x3c   : > { %2181 = vmatprep.subr.bf16.mxu0 %v2351_v62  ;;  %v1088_v19 = vsel %vm2720_vm6, %v1963_v21, %v1087_v52  ;;  %v1091_v37 = vrot.slane %v2738_v48, 5  ;;  %v1095_v44 = vrot.slane %v2752_v34, 5  ;;  %v1884_v46 = vcombine.low %v2568_v6, %v2574_v8  ;;  %v2821_v31 = vld [vmem:[%s2560_s19 + $0x20] sm:$0xf] }
  0x3d   : > { %v323_v10 = vsel %vm2605_vm2, %v318_v38, %v322_v20  ;;  %2173 = vmatprep.mubr.msk.bf16.mxu0 %vm353_vm3, %v1972_v40  ;;  %v1973_v49 = vcombine.low %v1084_v25, %v1088_v19  ;;  %v553_v0 = vrot.slane %v2571_v7, 5  ;;  %v1966_v11 = vrot.slane %v2780_v45, 9  ;;  %v2808_v7 = vld [vmem:[%s2560_s19 + $0x10] sm:$0xf] }
  0x3e   : > { %v1877_v17 = vcombine.low %v309_v36, %v323_v10  ;;  %v1092_v52 = vsel %vm2720_vm6, %v1964_v63, %v1091_v37  ;;  %v1096_v51 = vsel %vm2720_vm6, %v1965_v42, %v1095_v44  ;;  %v557_v12 = vrot.slane %v2578_v9, 5  ;;  %v2836_v63 = vld [vmem:[%s3171_s1 + $0x70] sm:$0xff]   ;;  %v2839_v36 = vld [vmem:[%s2560_s19 + $0x28] sm:$0xf]  ;;  %v2849_v42 = vld [vmem:[%s2560_s19 + $0x38] sm:$0xf] }
  0x3f   : > { %v1974_v60 = vcombine.low %v1092_v52, %v1096_v51  ;;  %v1099_v18 = vrot.slane %v2787_v57, 5  ;;  %v1967_v20 = vrot.slane %v2790_v58, 9  ;;  %v1103_v5 = vrot.slane %v2793_v59, 5  ;;  %v2842_v38 = vld [vmem:[%s2560_s19 + $0x30] sm:$0xf] }
  0x40   : > { %2118 = vmatmul.mubr.msk.bf16.gmra.mrb[4].mxu1 %vm353_vm3, %v1877_v17  ;;  %v561_v26 = vrot.slane %v2616_v39, 5  ;;  %v565_v9 = vrot.slane %v2626_v50, 5  ;;  %v1885_v32 = vcombine.low %v2613_v35, %v2619_v43  ;;  %v1886_v50 = vcombine.low %v2655_v23, %v2670_v47 }
  0x41   : > { %2125 = vmatprep.mubr.msk.bf16.mxu1 %vm353_vm3, %v1884_v46  ;;  %v1100_v28 = vsel %vm2720_vm6, %v1966_v11, %v1099_v18  ;;  %v1104_v29 = vsel %vm2720_vm6, %v1967_v20, %v1103_v5  ;;  %v1887_v21 = vcombine.low %v2683_v56, %v2698_v27  ;;  %v2002_v25 = vcombine.low %v2808_v7, %v2811_v14  ;;  %v2869_v11 = vld [vmem:[%s2560_s19 + $0x40] sm:$0xf]  ;;  %v2872_v18 = vld [vmem:[%s2560_s19 + $0x48] sm:$0xf]  ;;  %v2891_v5 = vld [vmem:[%s3171_s1 + $0x30] sm:$0xff]  }
  0x42   : > { %2174 = vmatmul.mubr.msk.bf16.vlgmr.msra.gmra.mrb[0].mxu0 %vm353_vm3, %v1973_v49  ;;  %v1975_v40 = vcombine.low %v1100_v28, %v1104_v29  ;;  %v1362_v19 = vshrl.u32 %v2808_v7, 16  ;;  %v1365_v37 = vshll.u32 %v2808_v7, 16  ;;  %v1376_v44 = vshrl.u32 %v2811_v14, 16 }
  0x43   : > { %2182 = vmatpush3.bf16.msra.mxu0 %v2351_v62  ;;  %2177 = vmatprep.mubr.msk.bf16.mxu0 %vm353_vm3, %v1974_v60  ;;  %v2357_v62 = vld [vmem:[%s3171_s1 + $0x28] sm:$0xff]   ;;  %v1894_v10 = vrot.slane %v2568_v6, 9  ;;  %v1895_v46 = vrot.slane %v2574_v8, 9  ;;  %v1896_v17 = vrot.slane %v2613_v35, 9  ;;  %v1379_v49 = vshll.u32 %v2811_v14, 16 }
  0x44   : > { %2183 = vmatprep.subr.bf16.mxu0 %v2355_v2  ;;  %v2003_v52 = vcombine.low %v2821_v31, %v2839_v36  ;;  %v1390_v51 = vshrl.u32 %v2821_v31, 16  ;;  %v1897_v60 = vrot.slane %v2619_v43, 9  ;;  %v1393_v6 = vshll.u32 %v2821_v31, 16 }
  0x45   : > { %v1404_v8 = vshrl.u32 %v2839_v36, 16  ;;  %v554_v35 = vsel %vm2720_vm6, %v1894_v10, %v553_v0  ;;  %v1407_v43 = vshll.u32 %v2839_v36, 16  ;;  %v2879_v20 = vsel %vm2720_vm6, %v1896_v17, %v561_v26  ;;  %v2903_v10 = vld [vmem:[%s2560_s19 + $0x14] sm:$0x1] }
  0x46   : > { %v2883_v0 = vsel %vm2720_vm6, %v1897_v60, %v565_v9  ;;  %v1418_v28 = vshrl.u32 %v2842_v38, 16  ;;  %v1421_v26 = vshll.u32 %v2842_v38, 16  ;;  %v1899_v60 = vrot.slane %v2670_v47, 9 }
  0x47   : > { %2184 = vmatpush3.bf16.msra.mxu0 %v2355_v2  ;;  %v558_v2 = vsel %vm2720_vm6, %v1895_v46, %v557_v12  ;;  %v2004_v12 = vcombine.low %v2842_v38, %v2849_v42  ;;  %v1367_v39 = vrot.slane %v1365_v37, 5  ;;  %v1900_v17 = vrot.slane %v2683_v56, 9  ;;  %v2364_v37 = vld [vmem:[%s3171_s1 + $0x78] sm:$0xff]  }
  0x48   : > { %2126 = vmatmul.mubr.msk.bf16.vlgmr.msra.gmra.mrb[0].mxu1 %vm353_vm3, %v1885_v32  ;;  %2193 = vmatprep.subr.bf16.mxu0 %v2836_v63  ;;  %v1371_v47 = vshll.u32 %v2903_v10, 16  ;;  %v1378_v46 = vrot.slane %v1376_v44, 4  ;;  %v1381_v29 = vrot.slane %v1379_v49, 5  ;;  %v1409_v9 = vrot.slane %v1407_v43, 5  ;;  %v2954_v43 = vld [vmem:[%s3171_s1 + $0x80] sm:$0xff]  }
  0x49   : > { %2134 = vmatpush3.bf16.msra.mxu1 %v2710_v4  ;;  %2129 = vmatprep.mubr.msk.bf16.mxu1 %vm353_vm3, %v1886_v50  ;;  %v1906_v4 = vcombine.low %v554_v35, %v558_v2  ;;  %v1898_v50 = vrot.slane %v2655_v23, 9  ;;  %v2913_v2 = vld [vmem:[%s2560_s19 + $0x1c] sm:$0x1]  ;;  %v577_v23 = vrot.slane %v2688_v61, 5  ;;  %v1392_v61 = vrot.slane %v1390_v51, 4 }
  0x4a   : > { %2178 = vmatmul.mubr.msk.bf16.gmra.mrb[4].mxu0 %vm353_vm3, %v1975_v40  ;;  %2135 = vmatprep.subr.bf16.mxu1 %v2357_v62  ;;  %v569_v40 = vrot.slane %v2666_v41, 5  ;;  %v1364_v41 = vrot.slane %v1362_v19, 4  ;;  %v2926_v19 = vld [vmem:[%s2560_s19 + $0x2c] sm:$0x1]  ;;  %v1373_v32 = vrot.slane %v1371_v47, 5  ;;  %v1382_v49 = vor.u32 %v1381_v29, %v1378_v46 }
  0x4b   : > { %2185 = vmatprep.mubr.msk.bf16.mxu0 %vm353_vm3, %v2002_v25  ;;  %v573_v25 = vrot.slane %v2679_v54, 5  ;;  %v2920_v54 = vld [vmem:[%s2560_s19 + $0x24] sm:$0x1]  ;;  %v1901_v51 = vrot.slane %v2698_v27, 9  ;;  %v2948_v46 = vld [vmem:[%s2560_s19 + $0x34] sm:$0x1] }
  0x4c   : > { %v1368_v35 = vor.u32 %v1367_v39, %v1364_v41  ;;  %v1399_v56 = vshll.u32 %v2920_v54, 16  ;;  %v1406_v41 = vrot.slane %v1404_v8, 4  ;;  %v581_v8 = vrot.slane %v2704_v33, 5  ;;  %v2957_v27 = vld [vmem:[%s2560_s19 + $0x3c] sm:$0x1] }
  0x4d   : > { %2136 = vmatpush3.bf16.msra.mxu1 %v2357_v62  ;;  %v570_v62 = vsel %vm2720_vm6, %v1898_v50, %v569_v40  ;;  %v574_v44 = vsel %vm2720_vm6, %v1899_v60, %v573_v25  ;;  %v1385_v50 = vshll.u32 %v2913_v2, 16  ;;  %v1395_v40 = vrot.slane %v1393_v6, 5  ;;  %v2366_v33 = vld [vmem:[%s3171_s1 + $0x38] sm:$0xff]  }
  0x4e   : > { %2145 = vmatprep.subr.bf16.mxu1 %v2891_v5  ;;  %v1369_v39 = vrot.slane %v1368_v35, 4  ;;  %v1413_v60 = vshll.u32 %v2926_v19, 16  ;;  %v1383_v6 = vrot.slane %v1382_v49, 4  ;;  %v1420_v35 = vrot.slane %v1418_v28, 4 }
  0x4f   : > { %v1396_v29 = vor.u32 %v1395_v40, %v1392_v61  ;;  %v1423_v47 = vrot.slane %v1421_v26, 5  ;;  %v3181_v40 = vshll.u32 %v2849_v42, 16  ;;  %v1441_v28 = vshll.u32 %v2957_v27, 16  ;;  %v2971_v26 = vld [vmem:[%s2560_s19 + $0x44] sm:$0x1] }
  0x50   : > { %2130 = vmatmul.mubr.msk.bf16.gmra.mrb[4].mxu1 %vm353_vm3, %v1887_v21  ;;  %v1387_v21 = vrot.slane %v1385_v50, 5  ;;  %v1415_v25 = vrot.slane %v1413_v60, 5  ;;  %v1427_v50 = vshll.u32 %v2948_v46, 16  ;;  %v2981_v60 = vld [vmem:[%s2560_s19 + $0x4c] sm:$0x1] }
  0x51   : > { %2137 = vmatprep.mubr.msk.bf16.mxu1 %vm353_vm3, %v1906_v4  ;;  %v1374_v4 = vsel %vm2605_vm2, %v1369_v39, %v1373_v32  ;;  %v1424_v49 = vor.u32 %v1423_v47, %v1420_v35  ;;  %v1455_v47 = vshll.u32 %v2971_v26, 16 }
  0x52   : > { %2186 = vmatmul.mubr.msk.bf16.vlgmr.msra.gmra.mrb[0].mxu0 %vm353_vm3, %v2003_v52  ;;  %v1908_v52 = vcombine.low %v570_v62, %v574_v44  ;;  %v1388_v32 = vsel %vm2605_vm2, %v1383_v6, %v1387_v21  ;;  %v1397_v44 = vrot.slane %v1396_v29, 4  ;;  %v3182_v21 = vcombine.low %v2879_v20, %v2883_v0 }
  0x53   : > { %2194 = vmatpush3.bf16.msra.mxu0 %v2836_v63  ;;  %2189 = vmatprep.mubr.msk.bf16.mxu0 %vm353_vm3, %v2004_v12  ;;  %v1401_v63 = vrot.slane %v1399_v56, 5  ;;  %v1410_v12 = vor.u32 %v1409_v9, %v1406_v41  ;;  %v2016_v62 = vcombine.low %v1374_v4, %v1388_v32  ;;  %v3180_v9 = vshrl.u32 %v2849_v42, 16 }
  0x54   : > { %2195 = vmatprep.subr.bf16.mxu0 %v2364_v37  ;;  %v1437_v56 = vrot.slane %v3181_v40, 5  ;;  %v578_v41 = vsel %vm2720_vm6, %v1900_v17, %v577_v23  ;;  %v3183_v4 = vshrl.u32 %v2869_v11, 16  ;;  %v3184_v29 = vshll.u32 %v2869_v11, 16 }
  0x55   : > { %v1434_v61 = vrot.slane %v3180_v9, 4  ;;  %v1411_v39 = vrot.slane %v1410_v12, 4  ;;  %v582_v20 = vsel %vm2720_vm6, %v1901_v51, %v581_v8  ;;  %v1425_v0 = vrot.slane %v1424_v49, 4 }
  0x56   : > { %v1448_v6 = vrot.slane %v3183_v4, 4  ;;  %v1451_v12 = vrot.slane %v3184_v29, 5  ;;  %v1443_v23 = vrot.slane %v1441_v28, 5  ;;  %v3185_v32 = vcombine.low %v2869_v11, %v2872_v18 }
  0x57   : > { %2196 = vmatpush3.bf16.msra.mxu0 %v2364_v37  ;;  %v1429_v37 = vrot.slane %v1427_v50, 5  ;;  %v1438_v17 = vor.u32 %v1437_v56, %v1434_v61  ;;  %v3186_v50 = vshrl.u32 %v2872_v18, 16  ;;  %v1402_v51 = vsel %vm2605_vm2, %v1397_v44, %v1401_v63 }
  0x58   : > { %2138 = vmatmul.mubr.msk.bf16.vlgmr.msra.gmra.mrb[0].mxu1 %vm353_vm3, %v3182_v21  ;;  %2205 = vmatprep.subr.bf16.mxu0 %v2954_v43  ;;  %v1452_v35 = vor.u32 %v1451_v12, %v1448_v6  ;;  %v1416_v8 = vsel %vm2605_vm2, %v1411_v39, %v1415_v25  ;;  %v1469_v49 = vshll.u32 %v2981_v60, 16  ;;  %v1909_v40 = vcombine.low %v578_v41, %v582_v20 }
  0x59   : > { %2146 = vmatpush3.bf16.msra.mxu1 %v2891_v5  ;;  %2141 = vmatprep.mubr.msk.bf16.mxu1 %vm353_vm3, %v1908_v52  ;;  %v1462_v5 = vrot.slane %v3186_v50, 4  ;;  %v3187_v52 = vshll.u32 %v2872_v18, 16  ;;  %v1439_v61 = vrot.slane %v1438_v17, 4  ;;  %v1430_v56 = vsel %vm2605_vm2, %v1425_v0, %v1429_v37 }
  0x5a   : > { %2190 = vmatmul.mubr.msk.bf16.gmra.mrb[4].mxu0 %vm353_vm3, %v3185_v32  ;;  %2147 = vmatprep.subr.bf16.mxu1 %v2366_v33  ;;  %v927_v21 = vshll.u32 %v2780_v45, 16  ;;  %v3188_v44 = vshrl.u32 %v2780_v45, 16  ;;  %v2017_v39 = vcombine.low %v1402_v51, %v1416_v8  ;;  %v1453_v41 = vrot.slane %v1452_v35, 4 }
  0x5b   : > { %v1465_v9 = vrot.slane %v3187_v52, 5  ;;  %2197 = vmatprep.mubr.msk.bf16.mxu0 %vm353_vm3, %v2016_v62  ;;  %v1936_v62 = vcombine.low %v2588_v16, %v2595_v24  ;;  %v1444_v63 = vsel %vm2605_vm2, %v1439_v61, %v1443_v23  ;;  %v1457_v4 = vrot.slane %v1455_v47, 5  ;;  %v2370_v16 = vld [vmem:[%s3171_s1 + $0x88] sm:$0xff]  }
  0x5c   : > { %v3015_v25 = vrot.slane %v3188_v44, 4  ;;  %v2018_v37 = vcombine.low %v1430_v56, %v1444_v63  ;;  %v1471_v29 = vrot.slane %v1469_v49, 5  ;;  %v1597_v24 = vrot.slane %v2903_v10, 5 }
  0x5d   : > { %v1466_v28 = vor.u32 %v1465_v9, %v1462_v5  ;;  %2148 = vmatpush3.bf16.msra.mxu1 %v2366_v33  ;;  %v2026_v33 = vrot.slane %v2808_v7, 9  ;;  %v2027_v12 = vrot.slane %v2811_v14, 9  ;;  %v1601_v20 = vrot.slane %v2913_v2, 5 }
  0x5e   : > { %2217 = vmatprep.subr.bf16.mxu1 %v2538_v1  ;;  %v896_v0 = vshrl.u32 %v2735_v13, 16  ;;  %v938_v17 = vshrl.u32 %v2790_v58, 16  ;;  %v941_v23 = vshll.u32 %v2790_v58, 16  ;;  %v1937_v7 = vcombine.low %v2631_v53, %v2647_v15 }
  0x5f   : > { %v1467_v6 = vrot.slane %v1466_v28, 4  ;;  %v899_v32 = vshll.u32 %v2735_v13, 16  ;;  %v1458_v14 = vsel %vm2605_vm2, %v1453_v41, %v1457_v4  ;;  %v1938_v10 = vcombine.low %v2735_v13, %v2748_v22 }
  0x60   : > { %2142 = vmatmul.mubr.msk.bf16.gmra.mrb[4].mxu1 %vm353_vm3, %v1909_v40  ;;  %v898_v2 = vrot.slane %v896_v0, 4  ;;  %v905_v35 = vshll.u32 %v2738_v48, 16  ;;  %v910_v47 = vshrl.u32 %v2748_v22, 16  ;;  %v913_v50 = vshll.u32 %v2748_v22, 16 }
  0x61   : > { %2149 = vmatprep.mubr.msk.bf16.mxu1 %vm353_vm3, %v1936_v62  ;;  %v1472_v53 = vsel %vm2605_vm2, %v1467_v6, %v1471_v29  ;;  %v901_v15 = vrot.slane %v899_v32, 5  ;;  %v1598_v5 = vsel %vm2720_vm6, %v2026_v33, %v1597_v24  ;;  %v1602_v13 = vsel %vm2720_vm6, %v2027_v12, %v1601_v20 }
  0x62   : > { %2198 = vmatmul.mubr.msk.bf16.vlgmr.msra.gmra.mrb[0].mxu0 %vm353_vm3, %v2017_v39  ;;  %v2028_v48 = vrot.slane %v2821_v31, 9  ;;  %v1605_v52 = vrot.slane %v2920_v54, 5  ;;  %v912_v51 = vrot.slane %v910_v47, 4  ;;  %v915_v8 = vrot.slane %v913_v50, 5 }
  0x63   : > { %2206 = vmatpush3.bf16.msra.mxu0 %v2954_v43  ;;  %2201 = vmatprep.mubr.msk.bf16.mxu0 %vm353_vm3, %v2018_v37  ;;  %v919_v43 = vshll.u32 %v2752_v34, 16  ;;  %v902_v9 = vor.u32 %v901_v15, %v898_v2  ;;  %v2019_v61 = vcombine.low %v1458_v14, %v1472_v53  ;;  %v2029_v49 = vrot.slane %v2839_v36, 9  ;;  %v2048_v2 = vld [vmem:[%s3172_s2] ss:$0 sm:$0xff] }
  0x64   : > { %2207 = vmatprep.subr.bf16.mxu0 %v2370_v16  ;;  %v1609_v22 = vrot.slane %v2926_v19, 5  ;;  %v907_v40 = vrot.slane %v905_v35, 5  ;;  %v2038_v56 = vcombine.low %v1598_v5, %v1602_v13  ;;  %v916_v62 = vor.u32 %v915_v8, %v912_v51 }
  0x65   : > { %v903_v28 = vrot.slane %v902_v9, 4  ;;  %v921_v63 = vrot.slane %v919_v43, 5  ;;  %v2030_v34 = vrot.slane %v2842_v38, 9  ;;  %v1613_v31 = vrot.slane %v2948_v46, 5 }
  0x66   : > { %v2031_v54 = vrot.slane %v2849_v42, 9  ;;  %v1617_v44 = vrot.slane %v2957_v27, 5  ;;  %v929_v39 = vrot.slane %v927_v21, 5  ;;  %v940_v36 = vrot.slane %v938_v17, 4 }
  0x67   : > { %2208 = vmatpush3.bf16.msra.mxu0 %v2370_v16  ;;  %v943_v41 = vrot.slane %v941_v23, 5  ;;  %v917_v19 = vrot.slane %v916_v62, 4  ;;  %v908_v38 = vsel %vm2605_vm2, %v903_v28, %v907_v40  ;;  %v1606_v42 = vsel %vm2720_vm6, %v2028_v48, %v1605_v52 }
  0x68   : > { %2150 = vmatmul.mubr.msk.bf16.vlgmr.msra.gmra.mrb[0].mxu1 %vm353_vm3, %v1937_v7  ;;  %v1610_v46 = vsel %vm2720_vm6, %v2029_v49, %v1609_v22  ;;  %v933_v27 = vshll.u32 %v2787_v57, 16  ;;  %v1939_v21 = vcombine.low %v2780_v45, %v2790_v58  ;;  %v1614_v4 = vsel %vm2720_vm6, %v2030_v34, %v1613_v31 }
  0x69   : > { %2219 = vmatpush3.bf16.msra.mxu1 %v2538_v1  ;;  %2153 = vmatprep.mubr.msk.bf16.mxu1 %vm353_vm3, %v1938_v10  ;;  %v922_v1 = vsel %vm2605_vm2, %v917_v19, %v921_v63  ;;  %v1618_v37 = vsel %vm2720_vm6, %v2031_v54, %v1617_v44  ;;  %v947_v6 = vshll.u32 %v2793_v59, 16  ;;  %v930_v33 = vor.u32 %v929_v39, %v3015_v25 }
  0x6a   : > { %2202 = vmatmul.mubr.msk.bf16.gmra.mrb[4].mxu0 %vm353_vm3, %v2019_v61  ;;  %2218 = vmatprep.subr.bf16.mxu1 %v2548_v3  ;;  %v1952_v29 = vcombine.low %v908_v38, %v922_v1  ;;  %v944_v16 = vor.u32 %v943_v41, %v940_v36  ;;  %v2039_v24 = vcombine.low %v1606_v42, %v1610_v46  ;;  %v2032_v57 = vrot.slane %v2869_v11, 9 }
  0x6b   : > { %2209 = vmatprep.mubr.msk.bf16.mxu0 %vm353_vm3, %v2038_v56  ;;  %v2040_v12 = vcombine.low %v1614_v4, %v1618_v37  ;;  %v1621_v45 = vrot.slane %v2971_v26, 5  ;;  %v2033_v58 = vrot.slane %v2872_v18, 9  ;;  %v1625_v20 = vrot.slane %v2981_v60, 5 }
  0x6c   : > { %v935_v0 = vrot.slane %v933_v27, 5  ;;  %v949_v59 = vrot.slane %v947_v6, 5  ;;  %v945_v25 = vrot.slane %v944_v16, 4 }
  0x6d   : > { %2220 = vmatpush3.bf16.msra.mxu1 %v2548_v3  ;;  %v931_v3 = vrot.slane %v930_v33, 4  ;;  %v1622_v11 = vsel %vm2720_vm6, %v2032_v57, %v1621_v45  ;;  %v1626_v18 = vsel %vm2720_vm6, %v2033_v58, %v1625_v20 }
  0x6e   : > { %v950_v60 = vsel %vm2605_vm2, %v945_v25, %v949_v59  ;;  %v2041_v17 = vcombine.low %v1622_v11, %v1626_v18 }
  0x6f   : > { %v936_v26 = vsel %vm2605_vm2, %v931_v3, %v935_v0 }
  0x70   : > { %2154 = vmatmul.mubr.msk.bf16.gmra.mrb[4].mxu1 %vm353_vm3, %v1939_v21  ;;  %v1953_v23 = vcombine.low %v936_v26, %v950_v60 }
  0x71   : > { %2165 = vmatprep.mubr.msk.bf16.mxu1 %vm353_vm3, %v1952_v29 }
  0x72   : > { %2210 = vmatmul.mubr.msk.bf16.vlgmr.msra.gmra.mrb[0].mxu0 %vm353_vm3, %v2039_v24 }
  0x73   : > { %2213 = vmatprep.mubr.msk.bf16.mxu0 %vm353_vm3, %v2040_v12 }
  0x7a   : > { %2214 = vmatmul.mubr.msk.bf16.gmra.mrb[4].mxu0 %vm353_vm3, %v2041_v17 }
  0x7c   : > { %2166 = vmatmul.mubr.msk.bf16.vlgmr.msra.gmra.mrb[4].mxu1 %vm353_vm3, %v1953_v23 }
 0x13b   : > { %v2151_v7 = vpop.f32.mrb[0].mxu1 }
 0x13c   : > { %v800_v32 = vpop.f32.mrb[1].mxu1 }
 0x13d   : > { %v2152_v14 = vpop.f32.mrb[2].mxu1 }
 0x13e   : > { %v803_v10 = vpop.f32.mrb[3].mxu1 }
 0x145   : > { %v2211_v55 = vpop.f32.mrb[0].mxu0 }
 0x146   : > { %v2221_v30 = vadd.f32 %v2211_v55, %v2151_v7  ;;  %v1702_v35 = vpop.f32.mrb[1].mxu0 }
 0x147   : > { %v2222_v53 = vadd.f32 %v1702_v35, %v800_v32  ;;  %v2212_v15 = vpop.f32.mrb[2].mxu0 }
 0x148   : > { %v1750_v47 = vadd.f32 %v2221_v30, %v2048_v2  ;;  %v2223_v50 = vadd.f32 %v2212_v15, %v2152_v14  ;;  %v1705_v5 = vpop.f32.mrb[3].mxu0 }
 0x149   : > { %v1748_v13 = vadd.f32 %v2222_v53, %v2048_v2  ;;  %v2224_v48 = vadd.f32 %v1705_v5, %v803_v10 }
 0x14a   : > { %1758 = vst.msk [vmem:[%s177_s10 + $0x10] sm:$0xff] %vm353_vm3, %v1750_v47  ;;  %v1751_v43 = vadd.f32 %v2223_v50, %v2048_v2 }
 0x14b   : > { %1756 = vst.msk [vmem:[%s177_s10] sm:$0xff] %vm353_vm3, %v1748_v13  ;;  %v1749_v52 = vadd.f32 %v2224_v48, %v2048_v2 }
 0x14c   : > { %1759 = vst.msk [vmem:[%s177_s10 + $0x18] sm:$0xff] %vm353_vm3, %v1751_v43 }
 0x14d   : > { %1757 = vst.msk [vmem:[%s177_s10 + $0x8] sm:$0xff] %vm353_vm3, %v1749_v52  ;;  %v2215_v9 = vpop.f32.mrb[4].mxu0 }
 0x14e   : > { %v1718_v51 = vpop.f32.mrb[5].mxu0 }
 0x14f   : > { %v2167_v8 = vpop.f32.mrb[4].mxu1  ;;  %v2216_v61 = vpop.f32.mrb[6].mxu0 }
 0x150   : > { %v2225_v49 = vadd.f32 %v2215_v9, %v2167_v8  ;;  %v1042_v22 = vpop.f32.mrb[5].mxu1  ;;  %v1721_v40 = vpop.f32.mrb[7].mxu0 }
 0x151   : > { %v2226_v56 = vadd.f32 %v1718_v51, %v1042_v22  ;;  %v2168_v28 = vpop.f32.mrb[6].mxu1 }
 0x152   : > { %v1754_v62 = vadd.f32 %v2225_v49, %v2048_v2  ;;  %v2227_v63 = vadd.f32 %v2216_v61, %v2168_v28  ;;  %v1045_v34 = vpop.f32.mrb[7].mxu1 }
 0x153   : > { %v1752_v31 = vadd.f32 %v2226_v56, %v2048_v2  ;;  %v2228_v54 = vadd.f32 %v1721_v40, %v1045_v34 }
 0x154   : > { %1762 = vst.msk [vmem:[%s177_s10 + $0x30] sm:$0xff] %vm353_vm3, %v1754_v62  ;;  %v1755_v44 = vadd.f32 %v2227_v63, %v2048_v2 }
 0x155   : > { %1760 = vst.msk [vmem:[%s177_s10 + $0x20] sm:$0xff] %vm353_vm3, %v1752_v31  ;;  %v1753_v39 = vadd.f32 %v2228_v54, %v2048_v2 }
 0x156   : > { %1763 = vst.msk [vmem:[%s177_s10 + $0x38] sm:$0xff] %vm353_vm3, %v1755_v44 }
 0x157   : > { %1761 = vst.msk [vmem:[%s177_s10 + $0x28] sm:$0xff] %vm353_vm3, %v1753_v39 }
 0x158   : > { %2386 = shalt.err (!%p2383_p5)
}
 0x159   : > { %s2387_s4 = scalar_lea.hbm %s3115_s26, 1024  ;;  %s2391_s6 = scalar_lea.hbm %s3173_s3, 2048 }
 0x15a   : > { %p2388_p6 = scmp.ne.s32.totalorder %s3115_s26, %s2387_s4  ;;  %p2392_p10 = scmp.lt.u32.totalorder %s3115_s26, %s3173_s3 }
 0x15b   : > { %p2393_p11 = scmp.lt.u32.totalorder %s2391_s6, %s2387_s4  ;;  %p2395_p13 = scmp.lt.u32.totalorder %s2387_s4, %s3115_s26 }
 0x15c   : > { %p2389_p7 = pnand %p2388_p6, %p2516_p4 }
 0x15d   : > { %p2394_p12 = por %p2393_p11, %p2392_p10 }
 0x15e   : > { %p2390_p9 = pneg %p2389_p7 }
 0x15f   : > { %p2396_p0 = por %p2395_p13, %p2394_p12 }
 0x161   : > { %p2397_p1 = pnand %p2396_p0, %p2390_p9 }
 0x163   : > { %2400 = shalt.err (!%p2397_p1)
}
 0x164   : > { %s2454_s9 = smov 128   ;;  %s2455_s10 = smov 8  }
 0x165   : > { %2286 = dma.vmem_to_hbm [thread:$0]  (%p2516_p4), %s3117_s18, 1024, %s3115_s26, %s3124_s15, %s2454_s9, %s2454_s9, %s2455_s10  }
 0x166 PF: > { %p2292_p2 = scmp.ge.s32.totalorder %s2451_s17, 2  ;;  %s1795_s11 = sand.u32 1, %s2431_s12  }
 0x167   : > { %s1796_s21 = scalar_lea.sflag [#allocation3], %s1795_s11 }
 0x168   : > { %p2289_p3 = pnand %p2292_p2, %p2523_p8 }
 0x16a   : > { %2426 = dma.done.wait (!%p2289_p3), %s1796_s21, 1024  }
 0x16b   : > { %2428 = vsyncadd (!%p2289_p3), %s1796_s21, 4294966272  ;;  %s16_s17 = sadd.s32 1, %s2451_s17   ;;  %s3189_s12 = smov %s2435_s13 }
 0x16c   : > { %p13_p5 = scmp.ge.s32.totalorder %s16_s17, 4   ;;  %s3190_s13 = smov %s2439_s14 }
 0x16d   : > { %s3191_s14 = smov %s2529_s25  ;;  %s3192_s15 = smov %s2447_s16 }
 0x16e   : > { %s3193_s16 = smov %s3195_s20  ;;  %15 = sbr.rel (!%p13_p5) target bundleno = 4 (0x4), region = 78 }
 0x175   :  { %1801 = vsyncpa [#allocation3], 1 }
 0x176   :  { %1803 = vsyncpa [#allocation3 + $0x1], 1 }

</bundles_post_ra>
